<compile_context>
chip_gen: v6e
topology: v6e:2x2x1
jax: 0.10.0
libtpu: 0.0.40
codegen_flags: <defaults>
</compile_context>

<pallas_src>
import jax
import jax.numpy as jnp
from jax.experimental import pallas as pl
from jax.experimental.pallas import tpu as pltpu

# ----------------------------- configuration ------------------------------ #
PATCH = 16
PIXELS_PER_PATCH = PATCH * PATCH          # 256 (hard-coded in BINMODEL)
IMG_H = IMG_W = 64
N_PATCHES = (IMG_H // PATCH) * (IMG_W // PATCH)   # 16
ENC_DIM = 48
DEC_DIM = 32
ENC_HEADS, ENC_DIM_HEAD = 4, 16
DEC_HEADS, DEC_DIM_HEAD = 8, 64           # module defaults
ENC_DEPTH, DEC_DEPTH = 1, 1
LN_EPS = 1e-5


# --------------------------- in-kernel helpers ----------------------------- #
def _ln(x, g, b):
    """LayerNorm over the last dim, stats in f32."""
    x = x.astype(jnp.float32)
    mu = jnp.mean(x, axis=-1, keepdims=True)
    xc = x - mu
    var = jnp.mean(xc * xc, axis=-1, keepdims=True)
    return xc * jax.lax.rsqrt(var + LN_EPS) * g + b


def _mm(x, w):
    """bf16 MXU matmul with f32 accumulation."""
    return jax.lax.dot_general(
        x.astype(jnp.bfloat16), w.astype(jnp.bfloat16),
        dimension_numbers=(((1,), (0,)), ((), ())),
        preferred_element_type=jnp.float32)


def _attention(x, w_qkv, w_out, b_out, heads, dh):
    """Multi-head self attention on a (N, D) token slab; heads statically unrolled."""
    inner = heads * dh
    scale = dh ** -0.5
    qkv = _mm(x, w_qkv)                       # (N, 3*inner), f32, no bias
    outs = []
    for h in range(heads):
        q = qkv[:, h * dh:(h + 1) * dh]
        k = qkv[:, inner + h * dh: inner + (h + 1) * dh]
        v = qkv[:, 2 * inner + h * dh: 2 * inner + (h + 1) * dh]
        # q . k^T without an explicit transpose: contract last dims of both.
        s = jax.lax.dot_general(
            q.astype(jnp.bfloat16), k.astype(jnp.bfloat16),
            dimension_numbers=(((1,), (1,)), ((), ())),
            preferred_element_type=jnp.float32) * scale
        s = s - jnp.max(s, axis=-1, keepdims=True)
        p = jnp.exp(s)
        p = p * pl.reciprocal(jnp.sum(p, axis=-1, keepdims=True))   # exact
        o = jax.lax.dot_general(
            p.astype(jnp.bfloat16), v.astype(jnp.bfloat16),
            dimension_numbers=(((1,), (0,)), ((), ())),
            preferred_element_type=jnp.float32)
        outs.append(o)
    o = jnp.concatenate(outs, axis=-1)        # (N, inner)
    return _mm(o, w_out) + b_out


def _transformer_block(x, ln1_g, ln1_b, w_qkv, w_out, b_out,
                       ln2_g, ln2_b, w_ff1, b_ff1, w_ff2, b_ff2, heads, dh):
    h = _ln(x, ln1_g, ln1_b)
    x = x + _attention(h, w_qkv, w_out, b_out, heads, dh)
    h2 = _ln(x, ln2_g, ln2_b)
    h2 = _mm(h2, w_ff1) + b_ff1
    h2 = jax.nn.gelu(h2, approximate=True)    # TODO(synk): exact erf GELU in PyTorch
    x = x + _mm(h2, w_ff2) + b_ff2
    return x


# ------------------------------ fused kernel ------------------------------- #
def _binmodel_kernel(
    # per-batch data
    patches_ref, gt_ref, pos_ref,
    # patch_to_emb
    pe_ln1_g_ref, pe_ln1_b_ref, pe_w_ref, pe_b_ref, pe_ln2_g_ref, pe_ln2_b_ref,
    # encoder block + final LN
    e_ln1_g_ref, e_ln1_b_ref, e_wqkv_ref, e_wout_ref, e_bout_ref,
    e_ln2_g_ref, e_ln2_b_ref, e_wff1_ref, e_bff1_ref, e_wff2_ref, e_bff2_ref,
    e_fing_ref, e_finb_ref,
    # enc_to_dec
    e2d_w_ref, e2d_b_ref,
    # decoder block + final LN
    d_ln1_g_ref, d_ln1_b_ref, d_wqkv_ref, d_wout_ref, d_bout_ref,
    d_ln2_g_ref, d_ln2_b_ref, d_wff1_ref, d_bff1_ref, d_wff2_ref, d_bff2_ref,
    d_fing_ref, d_finb_ref,
    # to_pixels
    pix_w_ref, pix_b_ref,
    # outputs
    pred_ref, sse_ref,
):
    patches = patches_ref[...].astype(jnp.float32)                 # (N, 256)

    # --- patch_to_emb: LayerNorm -> Linear -> LayerNorm ---------------------
    x = _ln(patches, pe_ln1_g_ref[...], pe_ln1_b_ref[...])
    x = _mm(x, pe_w_ref[...]) + pe_b_ref[...]
    x = _ln(x, pe_ln2_g_ref[...], pe_ln2_b_ref[...])

    # --- + positional embedding ---------------------------------------------
    x = x + pos_ref[...]

    # --- encoder transformer block + final LN -------------------------------
    x = _transformer_block(
        x,
        e_ln1_g_ref[...], e_ln1_b_ref[...], e_wqkv_ref[...], e_wout_ref[...], e_bout_ref[...],
        e_ln2_g_ref[...], e_ln2_b_ref[...],
        e_wff1_ref[...], e_bff1_ref[...], e_wff2_ref[...], e_bff2_ref[...],
        ENC_HEADS, ENC_DIM_HEAD)
    x = _ln(x, e_fing_ref[...], e_finb_ref[...])

    # --- enc_to_dec ----------------------------------------------------------
    x = _mm(x, e2d_w_ref[...]) + e2d_b_ref[...]

    # --- decoder block (ConvTransformer stand-in) + final LN ----------------
    x = _transformer_block(
        x,
        d_ln1_g_ref[...], d_ln1_b_ref[...], d_wqkv_ref[...], d_wout_ref[...], d_bout_ref[...],
        d_ln2_g_ref[...], d_ln2_b_ref[...],
        d_wff1_ref[...], d_bff1_ref[...], d_wff2_ref[...], d_bff2_ref[...],
        DEC_HEADS, DEC_DIM_HEAD)
    x = _ln(x, d_fing_ref[...], d_finb_ref[...])

    # --- to_pixels (lane-dense 256-wide) + in-kernel squared-error reduce ----
    pred = _mm(x, pix_w_ref[...]) + pix_b_ref[...]                 # (N, 256)
    pred_ref[...] = pred
    diff = pred - gt_ref[...].astype(jnp.float32)
    sse = jnp.sum(diff * diff)
    sse_ref[...] = jnp.full(sse_ref.shape, sse, dtype=jnp.float32)


# ------------------------------- glue / wrapper ----------------------------- #
def to_patch(img):
    """'b c (h p1) (w p2) -> b (h w) (p1 p2 c)' for NCHW input, c == 1."""
    B, C, H, W = img.shape
    x = img.reshape(B, C, H // PATCH, PATCH, W // PATCH, PATCH)
    x = x.transpose(0, 2, 4, 3, 5, 1)          # b, h, w, p1, p2, c
    return x.reshape(B, (H // PATCH) * (W // PATCH), PATCH * PATCH * C)


def binmodel_forward(params, img, gt_img):
    assert len(params["enc_blocks"]) == 1 and len(params["dec_blocks"]) == 1
    B = img.shape[0]
    f32 = jnp.float32
    bf16 = jnp.bfloat16

    patches = to_patch(img).reshape(B * N_PATCHES, PIXELS_PER_PATCH).astype(f32)
    gt_patches = to_patch(gt_img).reshape(B * N_PATCHES, PIXELS_PER_PATCH).astype(f32)
    pos = params["pos_emb"][0].astype(f32)                      # (N, ENC_DIM)

    eb = params["enc_blocks"][0]
    db = params["dec_blocks"][0]

    def w(a):                       # matmul weight -> bf16 (MXU-native, half DMA bytes)
        return a.astype(bf16)

    def r(a):                       # 1-D param -> (1, D) f32 row for in-kernel broadcast
        return a.reshape(1, -1).astype(f32)

    inputs = [
        patches, gt_patches, pos,
        # patch_to_emb
        r(params["pe_ln1_g"]), r(params["pe_ln1_b"]), w(params["pe_w"]), r(params["pe_b"]),
        r(params["pe_ln2_g"]), r(params["pe_ln2_b"]),
        # encoder block + final LN
        r(eb["ln1_g"]), r(eb["ln1_b"]), w(eb["w_qkv"]), w(eb["w_out"]), r(eb["b_out"]),
        r(eb["ln2_g"]), r(eb["ln2_b"]), w(eb["w_ff1"]), r(eb["b_ff1"]), w(eb["w_ff2"]), r(eb["b_ff2"]),
        r(params["enc_final_ln"]["g"]), r(params["enc_final_ln"]["b"]),
        # enc_to_dec
        w(params["e2d_w"]), r(params["e2d_b"]),
        # decoder block + final LN
        r(db["ln1_g"]), r(db["ln1_b"]), w(db["w_qkv"]), w(db["w_out"]), r(db["b_out"]),
        r(db["ln2_g"]), r(db["ln2_b"]), w(db["w_ff1"]), r(db["b_ff1"]), w(db["w_ff2"]), r(db["b_ff2"]),
        r(params["dec_final_ln"]["g"]), r(params["dec_final_ln"]["b"]),
        # to_pixels
        w(params["pix_w"]), r(params["pix_b"]),
    ]

    def const_spec(arr):
        zeros = (0,) * arr.ndim
        return pl.BlockSpec(arr.shape, lambda b, zeros=zeros: zeros)

    in_specs = [
        pl.BlockSpec((N_PATCHES, PIXELS_PER_PATCH), lambda b: (b, 0)),   # patches
        pl.BlockSpec((N_PATCHES, PIXELS_PER_PATCH), lambda b: (b, 0)),   # gt patches
    ] + [const_spec(a) for a in inputs[2:]]

    out_shape = (
        jax.ShapeDtypeStruct((B * N_PATCHES, PIXELS_PER_PATCH), f32),    # pred
        jax.ShapeDtypeStruct((B, 8, 128), f32),                          # per-batch SSE (broadcast tile)
    )
    out_specs = (
        pl.BlockSpec((N_PATCHES, PIXELS_PER_PATCH), lambda b: (b, 0)),
        pl.BlockSpec((1, 8, 128), lambda b: (b, 0, 0)),
    )

    pred_flat, sse = pl.pallas_call(
        _binmodel_kernel,
        grid=(B,),
        in_specs=in_specs,
        out_specs=out_specs,
        out_shape=out_shape,
        compiler_params=pltpu.CompilerParams(dimension_semantics=("parallel",)),
    )(*inputs)

    loss = jnp.sum(sse[:, 0, 0]) / float(B * N_PATCHES * PIXELS_PER_PATCH)
    pred = pred_flat.reshape(B, N_PATCHES, PIXELS_PER_PATCH)
    return loss, pred


# ------------------------------ parameter init ----------------------------- #
def _init_block(key, dim, heads, dim_head, mlp_dim):
    inner = heads * dim_head
    ks = jax.random.split(key, 4)
    return {
        "ln1_g": jnp.ones((dim,), jnp.float32), "ln1_b": jnp.zeros((dim,), jnp.float32),
        "w_qkv": 0.02 * jax.random.normal(ks[0], (dim, 3 * inner), jnp.float32),
        "w_out": 0.02 * jax.random.normal(ks[1], (inner, dim), jnp.float32),
        "b_out": jnp.zeros((dim,), jnp.float32),
        "ln2_g": jnp.ones((dim,), jnp.float32), "ln2_b": jnp.zeros((dim,), jnp.float32),
        "w_ff1": 0.02 * jax.random.normal(ks[2], (dim, mlp_dim), jnp.float32),
        "b_ff1": jnp.zeros((mlp_dim,), jnp.float32),
        "w_ff2": 0.02 * jax.random.normal(ks[3], (mlp_dim, dim), jnp.float32),
        "b_ff2": jnp.zeros((dim,), jnp.float32),
    }


def init_params(key):
    ks = jax.random.split(key, 8)
    return {
        "pe_ln1_g": jnp.ones((PIXELS_PER_PATCH,), jnp.float32),
        "pe_ln1_b": jnp.zeros((PIXELS_PER_PATCH,), jnp.float32),
        "pe_w": 0.02 * jax.random.normal(ks[0], (PIXELS_PER_PATCH, ENC_DIM), jnp.float32),
        "pe_b": jnp.zeros((ENC_DIM,), jnp.float32),
        "pe_ln2_g": jnp.ones((ENC_DIM,), jnp.float32),
        "pe_ln2_b": jnp.zeros((ENC_DIM,), jnp.float32),
        "pos_emb": 0.02 * jax.random.normal(ks[1], (1, N_PATCHES, ENC_DIM), jnp.float32),
        "enc_blocks": [_init_block(k, ENC_DIM, ENC_HEADS, ENC_DIM_HEAD, ENC_DIM * 4)
                       for k in jax.random.split(ks[2], ENC_DEPTH)],
        "enc_final_ln": {"g": jnp.ones((ENC_DIM,), jnp.float32),
                         "b": jnp.zeros((ENC_DIM,), jnp.float32)},
        "e2d_w": 0.02 * jax.random.normal(ks[3], (ENC_DIM, DEC_DIM), jnp.float32),
        "e2d_b": jnp.zeros((DEC_DIM,), jnp.float32),
        "dec_blocks": [_init_block(k, DEC_DIM, DEC_HEADS, DEC_DIM_HEAD, DEC_DIM * 4)
                       for k in jax.random.split(ks[4], DEC_DEPTH)],
        "dec_final_ln": {"g": jnp.ones((DEC_DIM,), jnp.float32),
                         "b": jnp.zeros((DEC_DIM,), jnp.float32)},
        "pix_w": 0.02 * jax.random.normal(ks[5], (DEC_DIM, PIXELS_PER_PATCH), jnp.float32),
        "pix_b": jnp.zeros((PIXELS_PER_PATCH,), jnp.float32),
    }


# ---------------------------------- main ----------------------------------- #
if __name__ == "__main__":
    key = jax.random.PRNGKey(0)
    k_p, k_img, k_gt = jax.random.split(key, 3)
    params = init_params(k_p)

    img = jax.random.normal(k_img, (2, 1, IMG_H, IMG_W), jnp.float32)     # NCHW
    gt_img = jax.random.normal(k_gt, (2, 1, IMG_H, IMG_W), jnp.float32)   # NCHW

    fwd = jax.jit(binmodel_forward)
    loss, pred = fwd(params, img, gt_img)
    jax.block_until_ready((loss, pred))

    assert pred.shape == (2, N_PATCHES, PIXELS_PER_PATCH)
    assert loss.shape == ()
    assert bool(jnp.isfinite(loss))
    print("KERNEL_OK")
</pallas_src>

<mosaic_0001>
module attributes {stable_mosaic.version = 11 : i64} {
  func.func @_binmodel_kernel(%arg0: i32, %arg1: memref<16x256xf32, #tpu.memory_space<vmem>>, %arg2: memref<16x256xf32, #tpu.memory_space<vmem>>, %arg3: memref<16x48xf32, #tpu.memory_space<vmem>>, %arg4: memref<1x256xf32, #tpu.memory_space<vmem>>, %arg5: memref<1x256xf32, #tpu.memory_space<vmem>>, %arg6: memref<256x48xbf16, #tpu.memory_space<vmem>>, %arg7: memref<1x48xf32, #tpu.memory_space<vmem>>, %arg8: memref<1x48xf32, #tpu.memory_space<vmem>>, %arg9: memref<1x48xf32, #tpu.memory_space<vmem>>, %arg10: memref<1x48xf32, #tpu.memory_space<vmem>>, %arg11: memref<1x48xf32, #tpu.memory_space<vmem>>, %arg12: memref<48x192xbf16, #tpu.memory_space<vmem>>, %arg13: memref<64x48xbf16, #tpu.memory_space<vmem>>, %arg14: memref<1x48xf32, #tpu.memory_space<vmem>>, %arg15: memref<1x48xf32, #tpu.memory_space<vmem>>, %arg16: memref<1x48xf32, #tpu.memory_space<vmem>>, %arg17: memref<48x192xbf16, #tpu.memory_space<vmem>>, %arg18: memref<1x192xf32, #tpu.memory_space<vmem>>, %arg19: memref<192x48xbf16, #tpu.memory_space<vmem>>, %arg20: memref<1x48xf32, #tpu.memory_space<vmem>>, %arg21: memref<1x48xf32, #tpu.memory_space<vmem>>, %arg22: memref<1x48xf32, #tpu.memory_space<vmem>>, %arg23: memref<48x32xbf16, #tpu.memory_space<vmem>>, %arg24: memref<1x32xf32, #tpu.memory_space<vmem>>, %arg25: memref<1x32xf32, #tpu.memory_space<vmem>>, %arg26: memref<1x32xf32, #tpu.memory_space<vmem>>, %arg27: memref<32x1536xbf16, #tpu.memory_space<vmem>>, %arg28: memref<512x32xbf16, #tpu.memory_space<vmem>>, %arg29: memref<1x32xf32, #tpu.memory_space<vmem>>, %arg30: memref<1x32xf32, #tpu.memory_space<vmem>>, %arg31: memref<1x32xf32, #tpu.memory_space<vmem>>, %arg32: memref<32x128xbf16, #tpu.memory_space<vmem>>, %arg33: memref<1x128xf32, #tpu.memory_space<vmem>>, %arg34: memref<128x32xbf16, #tpu.memory_space<vmem>>, %arg35: memref<1x32xf32, #tpu.memory_space<vmem>>, %arg36: memref<1x32xf32, #tpu.memory_space<vmem>>, %arg37: memref<1x32xf32, #tpu.memory_space<vmem>>, %arg38: memref<32x256xbf16, #tpu.memory_space<vmem>>, %arg39: memref<1x256xf32, #tpu.memory_space<vmem>>, %arg40: memref<16x256xf32, #tpu.memory_space<vmem>>, %arg41: memref<1x8x128xf32, #tpu.memory_space<vmem>>) attributes {dimension_semantics = [#tpu.dimension_semantics<parallel>], iteration_bounds = array<i64: 2>, scalar_prefetch = 0 : i64, scratch_operands = 0 : i64, tpu.core_type = #tpu.core_type<tc>, window_params = [{transform_indices = @transform_0, window_bounds = array<i64: 16, 256>}, {transform_indices = @transform_1, window_bounds = array<i64: 16, 256>}, {pipeline_mode = #tpu.pipeline_mode<synchronous>, transform_indices = @transform_2, window_bounds = array<i64: 16, 48>}, {pipeline_mode = #tpu.pipeline_mode<synchronous>, transform_indices = @transform_3, window_bounds = array<i64: 1, 256>}, {pipeline_mode = #tpu.pipeline_mode<synchronous>, transform_indices = @transform_4, window_bounds = array<i64: 1, 256>}, {pipeline_mode = #tpu.pipeline_mode<synchronous>, transform_indices = @transform_5, window_bounds = array<i64: 256, 48>}, {pipeline_mode = #tpu.pipeline_mode<synchronous>, transform_indices = @transform_6, window_bounds = array<i64: 1, 48>}, {pipeline_mode = #tpu.pipeline_mode<synchronous>, transform_indices = @transform_7, window_bounds = array<i64: 1, 48>}, {pipeline_mode = #tpu.pipeline_mode<synchronous>, transform_indices = @transform_8, window_bounds = array<i64: 1, 48>}, {pipeline_mode = #tpu.pipeline_mode<synchronous>, transform_indices = @transform_9, window_bounds = array<i64: 1, 48>}, {pipeline_mode = #tpu.pipeline_mode<synchronous>, transform_indices = @transform_10, window_bounds = array<i64: 1, 48>}, {pipeline_mode = #tpu.pipeline_mode<synchronous>, transform_indices = @transform_11, window_bounds = array<i64: 48, 192>}, {pipeline_mode = #tpu.pipeline_mode<synchronous>, transform_indices = @transform_12, window_bounds = array<i64: 64, 48>}, {pipeline_mode = #tpu.pipeline_mode<synchronous>, transform_indices = @transform_13, window_bounds = array<i64: 1, 48>}, {pipeline_mode = #tpu.pipeline_mode<synchronous>, transform_indices = @transform_14, window_bounds = array<i64: 1, 48>}, {pipeline_mode = #tpu.pipeline_mode<synchronous>, transform_indices = @transform_15, window_bounds = array<i64: 1, 48>}, {pipeline_mode = #tpu.pipeline_mode<synchronous>, transform_indices = @transform_16, window_bounds = array<i64: 48, 192>}, {pipeline_mode = #tpu.pipeline_mode<synchronous>, transform_indices = @transform_17, window_bounds = array<i64: 1, 192>}, {pipeline_mode = #tpu.pipeline_mode<synchronous>, transform_indices = @transform_18, window_bounds = array<i64: 192, 48>}, {pipeline_mode = #tpu.pipeline_mode<synchronous>, transform_indices = @transform_19, window_bounds = array<i64: 1, 48>}, {pipeline_mode = #tpu.pipeline_mode<synchronous>, transform_indices = @transform_20, window_bounds = array<i64: 1, 48>}, {pipeline_mode = #tpu.pipeline_mode<synchronous>, transform_indices = @transform_21, window_bounds = array<i64: 1, 48>}, {pipeline_mode = #tpu.pipeline_mode<synchronous>, transform_indices = @transform_22, window_bounds = array<i64: 48, 32>}, {pipeline_mode = #tpu.pipeline_mode<synchronous>, transform_indices = @transform_23, window_bounds = array<i64: 1, 32>}, {pipeline_mode = #tpu.pipeline_mode<synchronous>, transform_indices = @transform_24, window_bounds = array<i64: 1, 32>}, {pipeline_mode = #tpu.pipeline_mode<synchronous>, transform_indices = @transform_25, window_bounds = array<i64: 1, 32>}, {pipeline_mode = #tpu.pipeline_mode<synchronous>, transform_indices = @transform_26, window_bounds = array<i64: 32, 1536>}, {pipeline_mode = #tpu.pipeline_mode<synchronous>, transform_indices = @transform_27, window_bounds = array<i64: 512, 32>}, {pipeline_mode = #tpu.pipeline_mode<synchronous>, transform_indices = @transform_28, window_bounds = array<i64: 1, 32>}, {pipeline_mode = #tpu.pipeline_mode<synchronous>, transform_indices = @transform_29, window_bounds = array<i64: 1, 32>}, {pipeline_mode = #tpu.pipeline_mode<synchronous>, transform_indices = @transform_30, window_bounds = array<i64: 1, 32>}, {pipeline_mode = #tpu.pipeline_mode<synchronous>, transform_indices = @transform_31, window_bounds = array<i64: 32, 128>}, {pipeline_mode = #tpu.pipeline_mode<synchronous>, transform_indices = @transform_32, window_bounds = array<i64: 1, 128>}, {pipeline_mode = #tpu.pipeline_mode<synchronous>, transform_indices = @transform_33, window_bounds = array<i64: 128, 32>}, {pipeline_mode = #tpu.pipeline_mode<synchronous>, transform_indices = @transform_34, window_bounds = array<i64: 1, 32>}, {pipeline_mode = #tpu.pipeline_mode<synchronous>, transform_indices = @transform_35, window_bounds = array<i64: 1, 32>}, {pipeline_mode = #tpu.pipeline_mode<synchronous>, transform_indices = @transform_36, window_bounds = array<i64: 1, 32>}, {pipeline_mode = #tpu.pipeline_mode<synchronous>, transform_indices = @transform_37, window_bounds = array<i64: 32, 256>}, {pipeline_mode = #tpu.pipeline_mode<synchronous>, transform_indices = @transform_38, window_bounds = array<i64: 1, 256>}, {transform_indices = @transform_39, window_bounds = array<i64: 16, 256>}, {transform_indices = @transform_40, window_bounds = array<i64: 1, 8, 128>}]} {
    %c0 = arith.constant 0 : index
    %c0_0 = arith.constant 0 : index
    %0 = vector.load %arg1[%c0, %c0_0] : memref<16x256xf32, #tpu.memory_space<vmem>>, vector<16x256xf32>
    %c0_1 = arith.constant 0 : index
    %c0_2 = arith.constant 0 : index
    %1 = vector.load %arg4[%c0_1, %c0_2] : memref<1x256xf32, #tpu.memory_space<vmem>>, vector<1x256xf32>
    %c0_3 = arith.constant 0 : index
    %c0_4 = arith.constant 0 : index
    %2 = vector.load %arg5[%c0_3, %c0_4] : memref<1x256xf32, #tpu.memory_space<vmem>>, vector<1x256xf32>
    %cst = arith.constant dense<0.000000e+00> : vector<16xf32>
    %3 = vector.multi_reduction <add>, %0, %cst [1] : vector<16x256xf32> to vector<16xf32>
    %4 = vector.shape_cast %3 : vector<16xf32> to vector<16x1xf32>
    %cst_5 = arith.constant 2.560000e+02 : f32
    %5 = vector.broadcast %cst_5 : f32 to vector<16x1xf32>
    %6 = arith.divf %4, %5 : vector<16x1xf32>
    %7 = vector.broadcast %6 : vector<16x1xf32> to vector<16x256xf32>
    %8 = arith.subf %0, %7 : vector<16x256xf32>
    %9 = arith.mulf %8, %8 : vector<16x256xf32>
    %cst_6 = arith.constant dense<0.000000e+00> : vector<16xf32>
    %10 = vector.multi_reduction <add>, %9, %cst_6 [1] : vector<16x256xf32> to vector<16xf32>
    %11 = vector.shape_cast %10 : vector<16xf32> to vector<16x1xf32>
    %cst_7 = arith.constant 2.560000e+02 : f32
    %12 = vector.broadcast %cst_7 : f32 to vector<16x1xf32>
    %13 = arith.divf %11, %12 : vector<16x1xf32>
    %cst_8 = arith.constant 9.99999974E-6 : f32
    %14 = vector.broadcast %cst_8 : f32 to vector<16x1xf32>
    %15 = arith.addf %13, %14 : vector<16x1xf32>
    %16 = math.rsqrt %15 : vector<16x1xf32>
    %17 = vector.broadcast %16 : vector<16x1xf32> to vector<16x256xf32>
    %18 = arith.mulf %8, %17 : vector<16x256xf32>
    %19 = vector.broadcast %1 : vector<1x256xf32> to vector<16x256xf32>
    %20 = arith.mulf %18, %19 : vector<16x256xf32>
    %21 = vector.broadcast %2 : vector<1x256xf32> to vector<16x256xf32>
    %22 = arith.addf %20, %21 : vector<16x256xf32>
    %c0_9 = arith.constant 0 : index
    %c0_10 = arith.constant 0 : index
    %23 = vector.load %arg6[%c0_9, %c0_10] : memref<256x48xbf16, #tpu.memory_space<vmem>>, vector<256x48xbf16>
    %24 = arith.truncf %22 : vector<16x256xf32> to vector<16x256xbf16>
    %cst_11 = arith.constant dense<0.000000e+00> : vector<16x48xf32>
    %25 = tpu.matmul %24, %23, %cst_11 {dimension_numbers = #tpu.dot_dimension_numbers<[1], [0], [0], [1], [0, 0, 1, 1], [], []>} : vector<16x256xbf16>, vector<256x48xbf16>, vector<16x48xf32> -> vector<16x48xf32>
    %c0_12 = arith.constant 0 : index
    %c0_13 = arith.constant 0 : index
    %26 = vector.load %arg7[%c0_12, %c0_13] : memref<1x48xf32, #tpu.memory_space<vmem>>, vector<1x48xf32>
    %27 = vector.broadcast %26 : vector<1x48xf32> to vector<16x48xf32>
    %28 = arith.addf %25, %27 : vector<16x48xf32>
    %c0_14 = arith.constant 0 : index
    %c0_15 = arith.constant 0 : index
    %29 = vector.load %arg8[%c0_14, %c0_15] : memref<1x48xf32, #tpu.memory_space<vmem>>, vector<1x48xf32>
    %c0_16 = arith.constant 0 : index
    %c0_17 = arith.constant 0 : index
    %30 = vector.load %arg9[%c0_16, %c0_17] : memref<1x48xf32, #tpu.memory_space<vmem>>, vector<1x48xf32>
    %cst_18 = arith.constant dense<0.000000e+00> : vector<16xf32>
    %31 = vector.multi_reduction <add>, %28, %cst_18 [1] : vector<16x48xf32> to vector<16xf32>
    %32 = vector.shape_cast %31 : vector<16xf32> to vector<16x1xf32>
    %cst_19 = arith.constant 4.800000e+01 : f32
    %33 = vector.broadcast %cst_19 : f32 to vector<16x1xf32>
    %34 = arith.divf %32, %33 : vector<16x1xf32>
    %35 = vector.broadcast %34 : vector<16x1xf32> to vector<16x48xf32>
    %36 = arith.subf %28, %35 : vector<16x48xf32>
    %37 = arith.mulf %36, %36 : vector<16x48xf32>
    %cst_20 = arith.constant dense<0.000000e+00> : vector<16xf32>
    %38 = vector.multi_reduction <add>, %37, %cst_20 [1] : vector<16x48xf32> to vector<16xf32>
    %39 = vector.shape_cast %38 : vector<16xf32> to vector<16x1xf32>
    %cst_21 = arith.constant 4.800000e+01 : f32
    %40 = vector.broadcast %cst_21 : f32 to vector<16x1xf32>
    %41 = arith.divf %39, %40 : vector<16x1xf32>
    %cst_22 = arith.constant 9.99999974E-6 : f32
    %42 = vector.broadcast %cst_22 : f32 to vector<16x1xf32>
    %43 = arith.addf %41, %42 : vector<16x1xf32>
    %44 = math.rsqrt %43 : vector<16x1xf32>
    %45 = vector.broadcast %44 : vector<16x1xf32> to vector<16x48xf32>
    %46 = arith.mulf %36, %45 : vector<16x48xf32>
    %47 = vector.broadcast %29 : vector<1x48xf32> to vector<16x48xf32>
    %48 = arith.mulf %46, %47 : vector<16x48xf32>
    %49 = vector.broadcast %30 : vector<1x48xf32> to vector<16x48xf32>
    %50 = arith.addf %48, %49 : vector<16x48xf32>
    %c0_23 = arith.constant 0 : index
    %c0_24 = arith.constant 0 : index
    %51 = vector.load %arg3[%c0_23, %c0_24] : memref<16x48xf32, #tpu.memory_space<vmem>>, vector<16x48xf32>
    %52 = arith.addf %50, %51 : vector<16x48xf32>
    %c0_25 = arith.constant 0 : index
    %c0_26 = arith.constant 0 : index
    %53 = vector.load %arg10[%c0_25, %c0_26] : memref<1x48xf32, #tpu.memory_space<vmem>>, vector<1x48xf32>
    %c0_27 = arith.constant 0 : index
    %c0_28 = arith.constant 0 : index
    %54 = vector.load %arg11[%c0_27, %c0_28] : memref<1x48xf32, #tpu.memory_space<vmem>>, vector<1x48xf32>
    %c0_29 = arith.constant 0 : index
    %c0_30 = arith.constant 0 : index
    %55 = vector.load %arg12[%c0_29, %c0_30] : memref<48x192xbf16, #tpu.memory_space<vmem>>, vector<48x192xbf16>
    %c0_31 = arith.constant 0 : index
    %c0_32 = arith.constant 0 : index
    %56 = vector.load %arg13[%c0_31, %c0_32] : memref<64x48xbf16, #tpu.memory_space<vmem>>, vector<64x48xbf16>
    %c0_33 = arith.constant 0 : index
    %c0_34 = arith.constant 0 : index
    %57 = vector.load %arg14[%c0_33, %c0_34] : memref<1x48xf32, #tpu.memory_space<vmem>>, vector<1x48xf32>
    %c0_35 = arith.constant 0 : index
    %c0_36 = arith.constant 0 : index
    %58 = vector.load %arg15[%c0_35, %c0_36] : memref<1x48xf32, #tpu.memory_space<vmem>>, vector<1x48xf32>
    %c0_37 = arith.constant 0 : index
    %c0_38 = arith.constant 0 : index
    %59 = vector.load %arg16[%c0_37, %c0_38] : memref<1x48xf32, #tpu.memory_space<vmem>>, vector<1x48xf32>
    %c0_39 = arith.constant 0 : index
    %c0_40 = arith.constant 0 : index
    %60 = vector.load %arg17[%c0_39, %c0_40] : memref<48x192xbf16, #tpu.memory_space<vmem>>, vector<48x192xbf16>
    %c0_41 = arith.constant 0 : index
    %c0_42 = arith.constant 0 : index
    %61 = vector.load %arg18[%c0_41, %c0_42] : memref<1x192xf32, #tpu.memory_space<vmem>>, vector<1x192xf32>
    %c0_43 = arith.constant 0 : index
    %c0_44 = arith.constant 0 : index
    %62 = vector.load %arg19[%c0_43, %c0_44] : memref<192x48xbf16, #tpu.memory_space<vmem>>, vector<192x48xbf16>
    %c0_45 = arith.constant 0 : index
    %c0_46 = arith.constant 0 : index
    %63 = vector.load %arg20[%c0_45, %c0_46] : memref<1x48xf32, #tpu.memory_space<vmem>>, vector<1x48xf32>
    %cst_47 = arith.constant dense<0.000000e+00> : vector<16xf32>
    %64 = vector.multi_reduction <add>, %52, %cst_47 [1] : vector<16x48xf32> to vector<16xf32>
    %65 = vector.shape_cast %64 : vector<16xf32> to vector<16x1xf32>
    %cst_48 = arith.constant 4.800000e+01 : f32
    %66 = vector.broadcast %cst_48 : f32 to vector<16x1xf32>
    %67 = arith.divf %65, %66 : vector<16x1xf32>
    %68 = vector.broadcast %67 : vector<16x1xf32> to vector<16x48xf32>
    %69 = arith.subf %52, %68 : vector<16x48xf32>
    %70 = arith.mulf %69, %69 : vector<16x48xf32>
    %cst_49 = arith.constant dense<0.000000e+00> : vector<16xf32>
    %71 = vector.multi_reduction <add>, %70, %cst_49 [1] : vector<16x48xf32> to vector<16xf32>
    %72 = vector.shape_cast %71 : vector<16xf32> to vector<16x1xf32>
    %cst_50 = arith.constant 4.800000e+01 : f32
    %73 = vector.broadcast %cst_50 : f32 to vector<16x1xf32>
    %74 = arith.divf %72, %73 : vector<16x1xf32>
    %cst_51 = arith.constant 9.99999974E-6 : f32
    %75 = vector.broadcast %cst_51 : f32 to vector<16x1xf32>
    %76 = arith.addf %74, %75 : vector<16x1xf32>
    %77 = math.rsqrt %76 : vector<16x1xf32>
    %78 = vector.broadcast %77 : vector<16x1xf32> to vector<16x48xf32>
    %79 = arith.mulf %69, %78 : vector<16x48xf32>
    %80 = vector.broadcast %53 : vector<1x48xf32> to vector<16x48xf32>
    %81 = arith.mulf %79, %80 : vector<16x48xf32>
    %82 = vector.broadcast %54 : vector<1x48xf32> to vector<16x48xf32>
    %83 = arith.addf %81, %82 : vector<16x48xf32>
    %84 = arith.truncf %83 : vector<16x48xf32> to vector<16x48xbf16>
    %cst_52 = arith.constant dense<0.000000e+00> : vector<16x192xf32>
    %85 = tpu.matmul %84, %55, %cst_52 {dimension_numbers = #tpu.dot_dimension_numbers<[1], [0], [0], [1], [0, 0, 1, 1], [], []>} : vector<16x48xbf16>, vector<48x192xbf16>, vector<16x192xf32> -> vector<16x192xf32>
    %86 = vector.extract_strided_slice %85 {offsets = [0, 0], sizes = [16, 16], strides = [1, 1]} : vector<16x192xf32> to vector<16x16xf32>
    %87 = vector.extract_strided_slice %85 {offsets = [0, 64], sizes = [16, 16], strides = [1, 1]} : vector<16x192xf32> to vector<16x16xf32>
    %88 = vector.extract_strided_slice %85 {offsets = [0, 128], sizes = [16, 16], strides = [1, 1]} : vector<16x192xf32> to vector<16x16xf32>
    %89 = arith.truncf %86 : vector<16x16xf32> to vector<16x16xbf16>
    %90 = arith.truncf %87 : vector<16x16xf32> to vector<16x16xbf16>
    %cst_53 = arith.constant dense<0.000000e+00> : vector<16x16xf32>
    %91 = tpu.matmul %89, %90, %cst_53 {dimension_numbers = #tpu.dot_dimension_numbers<[1], [1], [0], [0], [0, 0, 1, 0], [], []>} : vector<16x16xbf16>, vector<16x16xbf16>, vector<16x16xf32> -> vector<16x16xf32>
    %cst_54 = arith.constant 2.500000e-01 : f32
    %92 = vector.broadcast %cst_54 : f32 to vector<16x16xf32>
    %93 = arith.mulf %91, %92 : vector<16x16xf32>
    %cst_55 = arith.constant dense<0xFF800000> : vector<16xf32>
    %94 = vector.multi_reduction <maximumf>, %93, %cst_55 [1] : vector<16x16xf32> to vector<16xf32>
    %95 = vector.shape_cast %94 : vector<16xf32> to vector<16x1xf32>
    %96 = vector.broadcast %95 : vector<16x1xf32> to vector<16x16xf32>
    %97 = arith.subf %93, %96 : vector<16x16xf32>
    %98 = math.exp %97 : vector<16x16xf32>
    %cst_56 = arith.constant dense<0.000000e+00> : vector<16xf32>
    %99 = vector.multi_reduction <add>, %98, %cst_56 [1] : vector<16x16xf32> to vector<16xf32>
    %100 = vector.shape_cast %99 : vector<16xf32> to vector<16x1xf32>
    %101 = tpu.reciprocal %100 : vector<16x1xf32> -> vector<16x1xf32>
    %102 = vector.broadcast %101 : vector<16x1xf32> to vector<16x16xf32>
    %103 = arith.mulf %98, %102 : vector<16x16xf32>
    %104 = arith.truncf %103 : vector<16x16xf32> to vector<16x16xbf16>
    %105 = arith.truncf %88 : vector<16x16xf32> to vector<16x16xbf16>
    %cst_57 = arith.constant dense<0.000000e+00> : vector<16x16xf32>
    %106 = tpu.matmul %104, %105, %cst_57 {dimension_numbers = #tpu.dot_dimension_numbers<[1], [0], [0], [1], [0, 0, 1, 1], [], []>} : vector<16x16xbf16>, vector<16x16xbf16>, vector<16x16xf32> -> vector<16x16xf32>
    %107 = vector.extract_strided_slice %85 {offsets = [0, 16], sizes = [16, 16], strides = [1, 1]} : vector<16x192xf32> to vector<16x16xf32>
    %108 = vector.extract_strided_slice %85 {offsets = [0, 80], sizes = [16, 16], strides = [1, 1]} : vector<16x192xf32> to vector<16x16xf32>
    %109 = vector.extract_strided_slice %85 {offsets = [0, 144], sizes = [16, 16], strides = [1, 1]} : vector<16x192xf32> to vector<16x16xf32>
    %110 = arith.truncf %107 : vector<16x16xf32> to vector<16x16xbf16>
    %111 = arith.truncf %108 : vector<16x16xf32> to vector<16x16xbf16>
    %cst_58 = arith.constant dense<0.000000e+00> : vector<16x16xf32>
    %112 = tpu.matmul %110, %111, %cst_58 {dimension_numbers = #tpu.dot_dimension_numbers<[1], [1], [0], [0], [0, 0, 1, 0], [], []>} : vector<16x16xbf16>, vector<16x16xbf16>, vector<16x16xf32> -> vector<16x16xf32>
    %cst_59 = arith.constant 2.500000e-01 : f32
    %113 = vector.broadcast %cst_59 : f32 to vector<16x16xf32>
    %114 = arith.mulf %112, %113 : vector<16x16xf32>
    %cst_60 = arith.constant dense<0xFF800000> : vector<16xf32>
    %115 = vector.multi_reduction <maximumf>, %114, %cst_60 [1] : vector<16x16xf32> to vector<16xf32>
    %116 = vector.shape_cast %115 : vector<16xf32> to vector<16x1xf32>
    %117 = vector.broadcast %116 : vector<16x1xf32> to vector<16x16xf32>
    %118 = arith.subf %114, %117 : vector<16x16xf32>
    %119 = math.exp %118 : vector<16x16xf32>
    %cst_61 = arith.constant dense<0.000000e+00> : vector<16xf32>
    %120 = vector.multi_reduction <add>, %119, %cst_61 [1] : vector<16x16xf32> to vector<16xf32>
    %121 = vector.shape_cast %120 : vector<16xf32> to vector<16x1xf32>
    %122 = tpu.reciprocal %121 : vector<16x1xf32> -> vector<16x1xf32>
    %123 = vector.broadcast %122 : vector<16x1xf32> to vector<16x16xf32>
    %124 = arith.mulf %119, %123 : vector<16x16xf32>
    %125 = arith.truncf %124 : vector<16x16xf32> to vector<16x16xbf16>
    %126 = arith.truncf %109 : vector<16x16xf32> to vector<16x16xbf16>
    %cst_62 = arith.constant dense<0.000000e+00> : vector<16x16xf32>
    %127 = tpu.matmul %125, %126, %cst_62 {dimension_numbers = #tpu.dot_dimension_numbers<[1], [0], [0], [1], [0, 0, 1, 1], [], []>} : vector<16x16xbf16>, vector<16x16xbf16>, vector<16x16xf32> -> vector<16x16xf32>
    %128 = vector.extract_strided_slice %85 {offsets = [0, 32], sizes = [16, 16], strides = [1, 1]} : vector<16x192xf32> to vector<16x16xf32>
    %129 = vector.extract_strided_slice %85 {offsets = [0, 96], sizes = [16, 16], strides = [1, 1]} : vector<16x192xf32> to vector<16x16xf32>
    %130 = vector.extract_strided_slice %85 {offsets = [0, 160], sizes = [16, 16], strides = [1, 1]} : vector<16x192xf32> to vector<16x16xf32>
    %131 = arith.truncf %128 : vector<16x16xf32> to vector<16x16xbf16>
    %132 = arith.truncf %129 : vector<16x16xf32> to vector<16x16xbf16>
    %cst_63 = arith.constant dense<0.000000e+00> : vector<16x16xf32>
    %133 = tpu.matmul %131, %132, %cst_63 {dimension_numbers = #tpu.dot_dimension_numbers<[1], [1], [0], [0], [0, 0, 1, 0], [], []>} : vector<16x16xbf16>, vector<16x16xbf16>, vector<16x16xf32> -> vector<16x16xf32>
    %cst_64 = arith.constant 2.500000e-01 : f32
    %134 = vector.broadcast %cst_64 : f32 to vector<16x16xf32>
    %135 = arith.mulf %133, %134 : vector<16x16xf32>
    %cst_65 = arith.constant dense<0xFF800000> : vector<16xf32>
    %136 = vector.multi_reduction <maximumf>, %135, %cst_65 [1] : vector<16x16xf32> to vector<16xf32>
    %137 = vector.shape_cast %136 : vector<16xf32> to vector<16x1xf32>
    %138 = vector.broadcast %137 : vector<16x1xf32> to vector<16x16xf32>
    %139 = arith.subf %135, %138 : vector<16x16xf32>
    %140 = math.exp %139 : vector<16x16xf32>
    %cst_66 = arith.constant dense<0.000000e+00> : vector<16xf32>
    %141 = vector.multi_reduction <add>, %140, %cst_66 [1] : vector<16x16xf32> to vector<16xf32>
    %142 = vector.shape_cast %141 : vector<16xf32> to vector<16x1xf32>
    %143 = tpu.reciprocal %142 : vector<16x1xf32> -> vector<16x1xf32>
    %144 = vector.broadcast %143 : vector<16x1xf32> to vector<16x16xf32>
    %145 = arith.mulf %140, %144 : vector<16x16xf32>
    %146 = arith.truncf %145 : vector<16x16xf32> to vector<16x16xbf16>
    %147 = arith.truncf %130 : vector<16x16xf32> to vector<16x16xbf16>
    %cst_67 = arith.constant dense<0.000000e+00> : vector<16x16xf32>
    %148 = tpu.matmul %146, %147, %cst_67 {dimension_numbers = #tpu.dot_dimension_numbers<[1], [0], [0], [1], [0, 0, 1, 1], [], []>} : vector<16x16xbf16>, vector<16x16xbf16>, vector<16x16xf32> -> vector<16x16xf32>
    %149 = vector.extract_strided_slice %85 {offsets = [0, 48], sizes = [16, 16], strides = [1, 1]} : vector<16x192xf32> to vector<16x16xf32>
    %150 = vector.extract_strided_slice %85 {offsets = [0, 112], sizes = [16, 16], strides = [1, 1]} : vector<16x192xf32> to vector<16x16xf32>
    %151 = vector.extract_strided_slice %85 {offsets = [0, 176], sizes = [16, 16], strides = [1, 1]} : vector<16x192xf32> to vector<16x16xf32>
    %152 = arith.truncf %149 : vector<16x16xf32> to vector<16x16xbf16>
    %153 = arith.truncf %150 : vector<16x16xf32> to vector<16x16xbf16>
    %cst_68 = arith.constant dense<0.000000e+00> : vector<16x16xf32>
    %154 = tpu.matmul %152, %153, %cst_68 {dimension_numbers = #tpu.dot_dimension_numbers<[1], [1], [0], [0], [0, 0, 1, 0], [], []>} : vector<16x16xbf16>, vector<16x16xbf16>, vector<16x16xf32> -> vector<16x16xf32>
    %cst_69 = arith.constant 2.500000e-01 : f32
    %155 = vector.broadcast %cst_69 : f32 to vector<16x16xf32>
    %156 = arith.mulf %154, %155 : vector<16x16xf32>
    %cst_70 = arith.constant dense<0xFF800000> : vector<16xf32>
    %157 = vector.multi_reduction <maximumf>, %156, %cst_70 [1] : vector<16x16xf32> to vector<16xf32>
    %158 = vector.shape_cast %157 : vector<16xf32> to vector<16x1xf32>
    %159 = vector.broadcast %158 : vector<16x1xf32> to vector<16x16xf32>
    %160 = arith.subf %156, %159 : vector<16x16xf32>
    %161 = math.exp %160 : vector<16x16xf32>
    %cst_71 = arith.constant dense<0.000000e+00> : vector<16xf32>
    %162 = vector.multi_reduction <add>, %161, %cst_71 [1] : vector<16x16xf32> to vector<16xf32>
    %163 = vector.shape_cast %162 : vector<16xf32> to vector<16x1xf32>
    %164 = tpu.reciprocal %163 : vector<16x1xf32> -> vector<16x1xf32>
    %165 = vector.broadcast %164 : vector<16x1xf32> to vector<16x16xf32>
    %166 = arith.mulf %161, %165 : vector<16x16xf32>
    %167 = arith.truncf %166 : vector<16x16xf32> to vector<16x16xbf16>
    %168 = arith.truncf %151 : vector<16x16xf32> to vector<16x16xbf16>
    %cst_72 = arith.constant dense<0.000000e+00> : vector<16x16xf32>
    %169 = tpu.matmul %167, %168, %cst_72 {dimension_numbers = #tpu.dot_dimension_numbers<[1], [0], [0], [1], [0, 0, 1, 1], [], []>} : vector<16x16xbf16>, vector<16x16xbf16>, vector<16x16xf32> -> vector<16x16xf32>
    %170 = tpu.concatenate %106, %127, %148, %169 in 1 : vector<16x16xf32>, vector<16x16xf32>, vector<16x16xf32>, vector<16x16xf32> -> vector<16x64xf32>
    %171 = arith.truncf %170 : vector<16x64xf32> to vector<16x64xbf16>
    %cst_73 = arith.constant dense<0.000000e+00> : vector<16x48xf32>
    %172 = tpu.matmul %171, %56, %cst_73 {dimension_numbers = #tpu.dot_dimension_numbers<[1], [0], [0], [1], [0, 0, 1, 1], [], []>} : vector<16x64xbf16>, vector<64x48xbf16>, vector<16x48xf32> -> vector<16x48xf32>
    %173 = vector.broadcast %57 : vector<1x48xf32> to vector<16x48xf32>
    %174 = arith.addf %172, %173 : vector<16x48xf32>
    %175 = arith.addf %52, %174 : vector<16x48xf32>
    %cst_74 = arith.constant dense<0.000000e+00> : vector<16xf32>
    %176 = vector.multi_reduction <add>, %175, %cst_74 [1] : vector<16x48xf32> to vector<16xf32>
    %177 = vector.shape_cast %176 : vector<16xf32> to vector<16x1xf32>
    %cst_75 = arith.constant 4.800000e+01 : f32
    %178 = vector.broadcast %cst_75 : f32 to vector<16x1xf32>
    %179 = arith.divf %177, %178 : vector<16x1xf32>
    %180 = vector.broadcast %179 : vector<16x1xf32> to vector<16x48xf32>
    %181 = arith.subf %175, %180 : vector<16x48xf32>
    %182 = arith.mulf %181, %181 : vector<16x48xf32>
    %cst_76 = arith.constant dense<0.000000e+00> : vector<16xf32>
    %183 = vector.multi_reduction <add>, %182, %cst_76 [1] : vector<16x48xf32> to vector<16xf32>
    %184 = vector.shape_cast %183 : vector<16xf32> to vector<16x1xf32>
    %cst_77 = arith.constant 4.800000e+01 : f32
    %185 = vector.broadcast %cst_77 : f32 to vector<16x1xf32>
    %186 = arith.divf %184, %185 : vector<16x1xf32>
    %cst_78 = arith.constant 9.99999974E-6 : f32
    %187 = vector.broadcast %cst_78 : f32 to vector<16x1xf32>
    %188 = arith.addf %186, %187 : vector<16x1xf32>
    %189 = math.rsqrt %188 : vector<16x1xf32>
    %190 = vector.broadcast %189 : vector<16x1xf32> to vector<16x48xf32>
    %191 = arith.mulf %181, %190 : vector<16x48xf32>
    %192 = vector.broadcast %58 : vector<1x48xf32> to vector<16x48xf32>
    %193 = arith.mulf %191, %192 : vector<16x48xf32>
    %194 = vector.broadcast %59 : vector<1x48xf32> to vector<16x48xf32>
    %195 = arith.addf %193, %194 : vector<16x48xf32>
    %196 = arith.truncf %195 : vector<16x48xf32> to vector<16x48xbf16>
    %cst_79 = arith.constant dense<0.000000e+00> : vector<16x192xf32>
    %197 = tpu.matmul %196, %60, %cst_79 {dimension_numbers = #tpu.dot_dimension_numbers<[1], [0], [0], [1], [0, 0, 1, 1], [], []>} : vector<16x48xbf16>, vector<48x192xbf16>, vector<16x192xf32> -> vector<16x192xf32>
    %198 = vector.broadcast %61 : vector<1x192xf32> to vector<16x192xf32>
    %199 = arith.addf %197, %198 : vector<16x192xf32>
    %200 = arith.mulf %199, %199 : vector<16x192xf32>
    %201 = arith.mulf %199, %200 : vector<16x192xf32>
    %cst_80 = arith.constant 4.471500e-02 : f32
    %202 = vector.broadcast %cst_80 : f32 to vector<16x192xf32>
    %203 = arith.mulf %202, %201 : vector<16x192xf32>
    %204 = arith.addf %199, %203 : vector<16x192xf32>
    %cst_81 = arith.constant 0.797884583 : f32
    %205 = vector.broadcast %cst_81 : f32 to vector<16x192xf32>
    %206 = arith.mulf %205, %204 : vector<16x192xf32>
    %207 = math.tanh %206 : vector<16x192xf32>
    %cst_82 = arith.constant 1.000000e+00 : f32
    %208 = vector.broadcast %cst_82 : f32 to vector<16x192xf32>
    %209 = arith.addf %208, %207 : vector<16x192xf32>
    %cst_83 = arith.constant 5.000000e-01 : f32
    %210 = vector.broadcast %cst_83 : f32 to vector<16x192xf32>
    %211 = arith.mulf %210, %209 : vector<16x192xf32>
    %212 = arith.mulf %199, %211 : vector<16x192xf32>
    %213 = arith.truncf %212 : vector<16x192xf32> to vector<16x192xbf16>
    %cst_84 = arith.constant dense<0.000000e+00> : vector<16x48xf32>
    %214 = tpu.matmul %213, %62, %cst_84 {dimension_numbers = #tpu.dot_dimension_numbers<[1], [0], [0], [1], [0, 0, 1, 1], [], []>} : vector<16x192xbf16>, vector<192x48xbf16>, vector<16x48xf32> -> vector<16x48xf32>
    %215 = arith.addf %175, %214 : vector<16x48xf32>
    %216 = vector.broadcast %63 : vector<1x48xf32> to vector<16x48xf32>
    %217 = arith.addf %215, %216 : vector<16x48xf32>
    %c0_85 = arith.constant 0 : index
    %c0_86 = arith.constant 0 : index
    %218 = vector.load %arg21[%c0_85, %c0_86] : memref<1x48xf32, #tpu.memory_space<vmem>>, vector<1x48xf32>
    %c0_87 = arith.constant 0 : index
    %c0_88 = arith.constant 0 : index
    %219 = vector.load %arg22[%c0_87, %c0_88] : memref<1x48xf32, #tpu.memory_space<vmem>>, vector<1x48xf32>
    %cst_89 = arith.constant dense<0.000000e+00> : vector<16xf32>
    %220 = vector.multi_reduction <add>, %217, %cst_89 [1] : vector<16x48xf32> to vector<16xf32>
    %221 = vector.shape_cast %220 : vector<16xf32> to vector<16x1xf32>
    %cst_90 = arith.constant 4.800000e+01 : f32
    %222 = vector.broadcast %cst_90 : f32 to vector<16x1xf32>
    %223 = arith.divf %221, %222 : vector<16x1xf32>
    %224 = vector.broadcast %223 : vector<16x1xf32> to vector<16x48xf32>
    %225 = arith.subf %217, %224 : vector<16x48xf32>
    %226 = arith.mulf %225, %225 : vector<16x48xf32>
    %cst_91 = arith.constant dense<0.000000e+00> : vector<16xf32>
    %227 = vector.multi_reduction <add>, %226, %cst_91 [1] : vector<16x48xf32> to vector<16xf32>
    %228 = vector.shape_cast %227 : vector<16xf32> to vector<16x1xf32>
    %cst_92 = arith.constant 4.800000e+01 : f32
    %229 = vector.broadcast %cst_92 : f32 to vector<16x1xf32>
    %230 = arith.divf %228, %229 : vector<16x1xf32>
    %cst_93 = arith.constant 9.99999974E-6 : f32
    %231 = vector.broadcast %cst_93 : f32 to vector<16x1xf32>
    %232 = arith.addf %230, %231 : vector<16x1xf32>
    %233 = math.rsqrt %232 : vector<16x1xf32>
    %234 = vector.broadcast %233 : vector<16x1xf32> to vector<16x48xf32>
    %235 = arith.mulf %225, %234 : vector<16x48xf32>
    %236 = vector.broadcast %218 : vector<1x48xf32> to vector<16x48xf32>
    %237 = arith.mulf %235, %236 : vector<16x48xf32>
    %238 = vector.broadcast %219 : vector<1x48xf32> to vector<16x48xf32>
    %239 = arith.addf %237, %238 : vector<16x48xf32>
    %c0_94 = arith.constant 0 : index
    %c0_95 = arith.constant 0 : index
    %240 = vector.load %arg23[%c0_94, %c0_95] : memref<48x32xbf16, #tpu.memory_space<vmem>>, vector<48x32xbf16>
    %241 = arith.truncf %239 : vector<16x48xf32> to vector<16x48xbf16>
    %cst_96 = arith.constant dense<0.000000e+00> : vector<16x32xf32>
    %242 = tpu.matmul %241, %240, %cst_96 {dimension_numbers = #tpu.dot_dimension_numbers<[1], [0], [0], [1], [0, 0, 1, 1], [], []>} : vector<16x48xbf16>, vector<48x32xbf16>, vector<16x32xf32> -> vector<16x32xf32>
    %c0_97 = arith.constant 0 : index
    %c0_98 = arith.constant 0 : index
    %243 = vector.load %arg24[%c0_97, %c0_98] : memref<1x32xf32, #tpu.memory_space<vmem>>, vector<1x32xf32>
    %244 = vector.broadcast %243 : vector<1x32xf32> to vector<16x32xf32>
    %245 = arith.addf %242, %244 : vector<16x32xf32>
    %c0_99 = arith.constant 0 : index
    %c0_100 = arith.constant 0 : index
    %246 = vector.load %arg25[%c0_99, %c0_100] : memref<1x32xf32, #tpu.memory_space<vmem>>, vector<1x32xf32>
    %c0_101 = arith.constant 0 : index
    %c0_102 = arith.constant 0 : index
    %247 = vector.load %arg26[%c0_101, %c0_102] : memref<1x32xf32, #tpu.memory_space<vmem>>, vector<1x32xf32>
    %c0_103 = arith.constant 0 : index
    %c0_104 = arith.constant 0 : index
    %248 = vector.load %arg27[%c0_103, %c0_104] : memref<32x1536xbf16, #tpu.memory_space<vmem>>, vector<32x1536xbf16>
    %c0_105 = arith.constant 0 : index
    %c0_106 = arith.constant 0 : index
    %249 = vector.load %arg28[%c0_105, %c0_106] : memref<512x32xbf16, #tpu.memory_space<vmem>>, vector<512x32xbf16>
    %c0_107 = arith.constant 0 : index
    %c0_108 = arith.constant 0 : index
    %250 = vector.load %arg29[%c0_107, %c0_108] : memref<1x32xf32, #tpu.memory_space<vmem>>, vector<1x32xf32>
    %c0_109 = arith.constant 0 : index
    %c0_110 = arith.constant 0 : index
    %251 = vector.load %arg30[%c0_109, %c0_110] : memref<1x32xf32, #tpu.memory_space<vmem>>, vector<1x32xf32>
    %c0_111 = arith.constant 0 : index
    %c0_112 = arith.constant 0 : index
    %252 = vector.load %arg31[%c0_111, %c0_112] : memref<1x32xf32, #tpu.memory_space<vmem>>, vector<1x32xf32>
    %c0_113 = arith.constant 0 : index
    %c0_114 = arith.constant 0 : index
    %253 = vector.load %arg32[%c0_113, %c0_114] : memref<32x128xbf16, #tpu.memory_space<vmem>>, vector<32x128xbf16>
    %c0_115 = arith.constant 0 : index
    %c0_116 = arith.constant 0 : index
    %254 = vector.load %arg33[%c0_115, %c0_116] : memref<1x128xf32, #tpu.memory_space<vmem>>, vector<1x128xf32>
    %c0_117 = arith.constant 0 : index
    %c0_118 = arith.constant 0 : index
    %255 = vector.load %arg34[%c0_117, %c0_118] : memref<128x32xbf16, #tpu.memory_space<vmem>>, vector<128x32xbf16>
    %c0_119 = arith.constant 0 : index
    %c0_120 = arith.constant 0 : index
    %256 = vector.load %arg35[%c0_119, %c0_120] : memref<1x32xf32, #tpu.memory_space<vmem>>, vector<1x32xf32>
    %cst_121 = arith.constant dense<0.000000e+00> : vector<16xf32>
    %257 = vector.multi_reduction <add>, %245, %cst_121 [1] : vector<16x32xf32> to vector<16xf32>
    %258 = vector.shape_cast %257 : vector<16xf32> to vector<16x1xf32>
    %cst_122 = arith.constant 3.200000e+01 : f32
    %259 = vector.broadcast %cst_122 : f32 to vector<16x1xf32>
    %260 = arith.divf %258, %259 : vector<16x1xf32>
    %261 = vector.broadcast %260 : vector<16x1xf32> to vector<16x32xf32>
    %262 = arith.subf %245, %261 : vector<16x32xf32>
    %263 = arith.mulf %262, %262 : vector<16x32xf32>
    %cst_123 = arith.constant dense<0.000000e+00> : vector<16xf32>
    %264 = vector.multi_reduction <add>, %263, %cst_123 [1] : vector<16x32xf32> to vector<16xf32>
    %265 = vector.shape_cast %264 : vector<16xf32> to vector<16x1xf32>
    %cst_124 = arith.constant 3.200000e+01 : f32
    %266 = vector.broadcast %cst_124 : f32 to vector<16x1xf32>
    %267 = arith.divf %265, %266 : vector<16x1xf32>
    %cst_125 = arith.constant 9.99999974E-6 : f32
    %268 = vector.broadcast %cst_125 : f32 to vector<16x1xf32>
    %269 = arith.addf %267, %268 : vector<16x1xf32>
    %270 = math.rsqrt %269 : vector<16x1xf32>
    %271 = vector.broadcast %270 : vector<16x1xf32> to vector<16x32xf32>
    %272 = arith.mulf %262, %271 : vector<16x32xf32>
    %273 = vector.broadcast %246 : vector<1x32xf32> to vector<16x32xf32>
    %274 = arith.mulf %272, %273 : vector<16x32xf32>
    %275 = vector.broadcast %247 : vector<1x32xf32> to vector<16x32xf32>
    %276 = arith.addf %274, %275 : vector<16x32xf32>
    %277 = arith.truncf %276 : vector<16x32xf32> to vector<16x32xbf16>
    %cst_126 = arith.constant dense<0.000000e+00> : vector<16x1536xf32>
    %278 = tpu.matmul %277, %248, %cst_126 {dimension_numbers = #tpu.dot_dimension_numbers<[1], [0], [0], [1], [0, 0, 1, 1], [], []>} : vector<16x32xbf16>, vector<32x1536xbf16>, vector<16x1536xf32> -> vector<16x1536xf32>
    %279 = vector.extract_strided_slice %278 {offsets = [0, 0], sizes = [16, 64], strides = [1, 1]} : vector<16x1536xf32> to vector<16x64xf32>
    %280 = vector.extract_strided_slice %278 {offsets = [0, 512], sizes = [16, 64], strides = [1, 1]} : vector<16x1536xf32> to vector<16x64xf32>
    %281 = vector.extract_strided_slice %278 {offsets = [0, 1024], sizes = [16, 64], strides = [1, 1]} : vector<16x1536xf32> to vector<16x64xf32>
    %282 = arith.truncf %279 : vector<16x64xf32> to vector<16x64xbf16>
    %283 = arith.truncf %280 : vector<16x64xf32> to vector<16x64xbf16>
    %cst_127 = arith.constant dense<0.000000e+00> : vector<16x16xf32>
    %284 = tpu.matmul %282, %283, %cst_127 {dimension_numbers = #tpu.dot_dimension_numbers<[1], [1], [0], [0], [0, 0, 1, 0], [], []>} : vector<16x64xbf16>, vector<16x64xbf16>, vector<16x16xf32> -> vector<16x16xf32>
    %cst_128 = arith.constant 1.250000e-01 : f32
    %285 = vector.broadcast %cst_128 : f32 to vector<16x16xf32>
    %286 = arith.mulf %284, %285 : vector<16x16xf32>
    %cst_129 = arith.constant dense<0xFF800000> : vector<16xf32>
    %287 = vector.multi_reduction <maximumf>, %286, %cst_129 [1] : vector<16x16xf32> to vector<16xf32>
    %288 = vector.shape_cast %287 : vector<16xf32> to vector<16x1xf32>
    %289 = vector.broadcast %288 : vector<16x1xf32> to vector<16x16xf32>
    %290 = arith.subf %286, %289 : vector<16x16xf32>
    %291 = math.exp %290 : vector<16x16xf32>
    %cst_130 = arith.constant dense<0.000000e+00> : vector<16xf32>
    %292 = vector.multi_reduction <add>, %291, %cst_130 [1] : vector<16x16xf32> to vector<16xf32>
    %293 = vector.shape_cast %292 : vector<16xf32> to vector<16x1xf32>
    %294 = tpu.reciprocal %293 : vector<16x1xf32> -> vector<16x1xf32>
    %295 = vector.broadcast %294 : vector<16x1xf32> to vector<16x16xf32>
    %296 = arith.mulf %291, %295 : vector<16x16xf32>
    %297 = arith.truncf %296 : vector<16x16xf32> to vector<16x16xbf16>
    %298 = arith.truncf %281 : vector<16x64xf32> to vector<16x64xbf16>
    %cst_131 = arith.constant dense<0.000000e+00> : vector<16x64xf32>
    %299 = tpu.matmul %297, %298, %cst_131 {dimension_numbers = #tpu.dot_dimension_numbers<[1], [0], [0], [1], [0, 0, 1, 1], [], []>} : vector<16x16xbf16>, vector<16x64xbf16>, vector<16x64xf32> -> vector<16x64xf32>
    %300 = vector.extract_strided_slice %278 {offsets = [0, 64], sizes = [16, 64], strides = [1, 1]} : vector<16x1536xf32> to vector<16x64xf32>
    %301 = vector.extract_strided_slice %278 {offsets = [0, 576], sizes = [16, 64], strides = [1, 1]} : vector<16x1536xf32> to vector<16x64xf32>
    %302 = vector.extract_strided_slice %278 {offsets = [0, 1088], sizes = [16, 64], strides = [1, 1]} : vector<16x1536xf32> to vector<16x64xf32>
    %303 = arith.truncf %300 : vector<16x64xf32> to vector<16x64xbf16>
    %304 = arith.truncf %301 : vector<16x64xf32> to vector<16x64xbf16>
    %cst_132 = arith.constant dense<0.000000e+00> : vector<16x16xf32>
    %305 = tpu.matmul %303, %304, %cst_132 {dimension_numbers = #tpu.dot_dimension_numbers<[1], [1], [0], [0], [0, 0, 1, 0], [], []>} : vector<16x64xbf16>, vector<16x64xbf16>, vector<16x16xf32> -> vector<16x16xf32>
    %cst_133 = arith.constant 1.250000e-01 : f32
    %306 = vector.broadcast %cst_133 : f32 to vector<16x16xf32>
    %307 = arith.mulf %305, %306 : vector<16x16xf32>
    %cst_134 = arith.constant dense<0xFF800000> : vector<16xf32>
    %308 = vector.multi_reduction <maximumf>, %307, %cst_134 [1] : vector<16x16xf32> to vector<16xf32>
    %309 = vector.shape_cast %308 : vector<16xf32> to vector<16x1xf32>
    %310 = vector.broadcast %309 : vector<16x1xf32> to vector<16x16xf32>
    %311 = arith.subf %307, %310 : vector<16x16xf32>
    %312 = math.exp %311 : vector<16x16xf32>
    %cst_135 = arith.constant dense<0.000000e+00> : vector<16xf32>
    %313 = vector.multi_reduction <add>, %312, %cst_135 [1] : vector<16x16xf32> to vector<16xf32>
    %314 = vector.shape_cast %313 : vector<16xf32> to vector<16x1xf32>
    %315 = tpu.reciprocal %314 : vector<16x1xf32> -> vector<16x1xf32>
    %316 = vector.broadcast %315 : vector<16x1xf32> to vector<16x16xf32>
    %317 = arith.mulf %312, %316 : vector<16x16xf32>
    %318 = arith.truncf %317 : vector<16x16xf32> to vector<16x16xbf16>
    %319 = arith.truncf %302 : vector<16x64xf32> to vector<16x64xbf16>
    %cst_136 = arith.constant dense<0.000000e+00> : vector<16x64xf32>
    %320 = tpu.matmul %318, %319, %cst_136 {dimension_numbers = #tpu.dot_dimension_numbers<[1], [0], [0], [1], [0, 0, 1, 1], [], []>} : vector<16x16xbf16>, vector<16x64xbf16>, vector<16x64xf32> -> vector<16x64xf32>
    %321 = vector.extract_strided_slice %278 {offsets = [0, 128], sizes = [16, 64], strides = [1, 1]} : vector<16x1536xf32> to vector<16x64xf32>
    %322 = vector.extract_strided_slice %278 {offsets = [0, 640], sizes = [16, 64], strides = [1, 1]} : vector<16x1536xf32> to vector<16x64xf32>
    %323 = vector.extract_strided_slice %278 {offsets = [0, 1152], sizes = [16, 64], strides = [1, 1]} : vector<16x1536xf32> to vector<16x64xf32>
    %324 = arith.truncf %321 : vector<16x64xf32> to vector<16x64xbf16>
    %325 = arith.truncf %322 : vector<16x64xf32> to vector<16x64xbf16>
    %cst_137 = arith.constant dense<0.000000e+00> : vector<16x16xf32>
    %326 = tpu.matmul %324, %325, %cst_137 {dimension_numbers = #tpu.dot_dimension_numbers<[1], [1], [0], [0], [0, 0, 1, 0], [], []>} : vector<16x64xbf16>, vector<16x64xbf16>, vector<16x16xf32> -> vector<16x16xf32>
    %cst_138 = arith.constant 1.250000e-01 : f32
    %327 = vector.broadcast %cst_138 : f32 to vector<16x16xf32>
    %328 = arith.mulf %326, %327 : vector<16x16xf32>
    %cst_139 = arith.constant dense<0xFF800000> : vector<16xf32>
    %329 = vector.multi_reduction <maximumf>, %328, %cst_139 [1] : vector<16x16xf32> to vector<16xf32>
    %330 = vector.shape_cast %329 : vector<16xf32> to vector<16x1xf32>
    %331 = vector.broadcast %330 : vector<16x1xf32> to vector<16x16xf32>
    %332 = arith.subf %328, %331 : vector<16x16xf32>
    %333 = math.exp %332 : vector<16x16xf32>
    %cst_140 = arith.constant dense<0.000000e+00> : vector<16xf32>
    %334 = vector.multi_reduction <add>, %333, %cst_140 [1] : vector<16x16xf32> to vector<16xf32>
    %335 = vector.shape_cast %334 : vector<16xf32> to vector<16x1xf32>
    %336 = tpu.reciprocal %335 : vector<16x1xf32> -> vector<16x1xf32>
    %337 = vector.broadcast %336 : vector<16x1xf32> to vector<16x16xf32>
    %338 = arith.mulf %333, %337 : vector<16x16xf32>
    %339 = arith.truncf %338 : vector<16x16xf32> to vector<16x16xbf16>
    %340 = arith.truncf %323 : vector<16x64xf32> to vector<16x64xbf16>
    %cst_141 = arith.constant dense<0.000000e+00> : vector<16x64xf32>
    %341 = tpu.matmul %339, %340, %cst_141 {dimension_numbers = #tpu.dot_dimension_numbers<[1], [0], [0], [1], [0, 0, 1, 1], [], []>} : vector<16x16xbf16>, vector<16x64xbf16>, vector<16x64xf32> -> vector<16x64xf32>
    %342 = vector.extract_strided_slice %278 {offsets = [0, 192], sizes = [16, 64], strides = [1, 1]} : vector<16x1536xf32> to vector<16x64xf32>
    %343 = vector.extract_strided_slice %278 {offsets = [0, 704], sizes = [16, 64], strides = [1, 1]} : vector<16x1536xf32> to vector<16x64xf32>
    %344 = vector.extract_strided_slice %278 {offsets = [0, 1216], sizes = [16, 64], strides = [1, 1]} : vector<16x1536xf32> to vector<16x64xf32>
    %345 = arith.truncf %342 : vector<16x64xf32> to vector<16x64xbf16>
    %346 = arith.truncf %343 : vector<16x64xf32> to vector<16x64xbf16>
    %cst_142 = arith.constant dense<0.000000e+00> : vector<16x16xf32>
    %347 = tpu.matmul %345, %346, %cst_142 {dimension_numbers = #tpu.dot_dimension_numbers<[1], [1], [0], [0], [0, 0, 1, 0], [], []>} : vector<16x64xbf16>, vector<16x64xbf16>, vector<16x16xf32> -> vector<16x16xf32>
    %cst_143 = arith.constant 1.250000e-01 : f32
    %348 = vector.broadcast %cst_143 : f32 to vector<16x16xf32>
    %349 = arith.mulf %347, %348 : vector<16x16xf32>
    %cst_144 = arith.constant dense<0xFF800000> : vector<16xf32>
    %350 = vector.multi_reduction <maximumf>, %349, %cst_144 [1] : vector<16x16xf32> to vector<16xf32>
    %351 = vector.shape_cast %350 : vector<16xf32> to vector<16x1xf32>
    %352 = vector.broadcast %351 : vector<16x1xf32> to vector<16x16xf32>
    %353 = arith.subf %349, %352 : vector<16x16xf32>
    %354 = math.exp %353 : vector<16x16xf32>
    %cst_145 = arith.constant dense<0.000000e+00> : vector<16xf32>
    %355 = vector.multi_reduction <add>, %354, %cst_145 [1] : vector<16x16xf32> to vector<16xf32>
    %356 = vector.shape_cast %355 : vector<16xf32> to vector<16x1xf32>
    %357 = tpu.reciprocal %356 : vector<16x1xf32> -> vector<16x1xf32>
    %358 = vector.broadcast %357 : vector<16x1xf32> to vector<16x16xf32>
    %359 = arith.mulf %354, %358 : vector<16x16xf32>
    %360 = arith.truncf %359 : vector<16x16xf32> to vector<16x16xbf16>
    %361 = arith.truncf %344 : vector<16x64xf32> to vector<16x64xbf16>
    %cst_146 = arith.constant dense<0.000000e+00> : vector<16x64xf32>
    %362 = tpu.matmul %360, %361, %cst_146 {dimension_numbers = #tpu.dot_dimension_numbers<[1], [0], [0], [1], [0, 0, 1, 1], [], []>} : vector<16x16xbf16>, vector<16x64xbf16>, vector<16x64xf32> -> vector<16x64xf32>
    %363 = vector.extract_strided_slice %278 {offsets = [0, 256], sizes = [16, 64], strides = [1, 1]} : vector<16x1536xf32> to vector<16x64xf32>
    %364 = vector.extract_strided_slice %278 {offsets = [0, 768], sizes = [16, 64], strides = [1, 1]} : vector<16x1536xf32> to vector<16x64xf32>
    %365 = vector.extract_strided_slice %278 {offsets = [0, 1280], sizes = [16, 64], strides = [1, 1]} : vector<16x1536xf32> to vector<16x64xf32>
    %366 = arith.truncf %363 : vector<16x64xf32> to vector<16x64xbf16>
    %367 = arith.truncf %364 : vector<16x64xf32> to vector<16x64xbf16>
    %cst_147 = arith.constant dense<0.000000e+00> : vector<16x16xf32>
    %368 = tpu.matmul %366, %367, %cst_147 {dimension_numbers = #tpu.dot_dimension_numbers<[1], [1], [0], [0], [0, 0, 1, 0], [], []>} : vector<16x64xbf16>, vector<16x64xbf16>, vector<16x16xf32> -> vector<16x16xf32>
    %cst_148 = arith.constant 1.250000e-01 : f32
    %369 = vector.broadcast %cst_148 : f32 to vector<16x16xf32>
    %370 = arith.mulf %368, %369 : vector<16x16xf32>
    %cst_149 = arith.constant dense<0xFF800000> : vector<16xf32>
    %371 = vector.multi_reduction <maximumf>, %370, %cst_149 [1] : vector<16x16xf32> to vector<16xf32>
    %372 = vector.shape_cast %371 : vector<16xf32> to vector<16x1xf32>
    %373 = vector.broadcast %372 : vector<16x1xf32> to vector<16x16xf32>
    %374 = arith.subf %370, %373 : vector<16x16xf32>
    %375 = math.exp %374 : vector<16x16xf32>
    %cst_150 = arith.constant dense<0.000000e+00> : vector<16xf32>
    %376 = vector.multi_reduction <add>, %375, %cst_150 [1] : vector<16x16xf32> to vector<16xf32>
    %377 = vector.shape_cast %376 : vector<16xf32> to vector<16x1xf32>
    %378 = tpu.reciprocal %377 : vector<16x1xf32> -> vector<16x1xf32>
    %379 = vector.broadcast %378 : vector<16x1xf32> to vector<16x16xf32>
    %380 = arith.mulf %375, %379 : vector<16x16xf32>
    %381 = arith.truncf %380 : vector<16x16xf32> to vector<16x16xbf16>
    %382 = arith.truncf %365 : vector<16x64xf32> to vector<16x64xbf16>
    %cst_151 = arith.constant dense<0.000000e+00> : vector<16x64xf32>
    %383 = tpu.matmul %381, %382, %cst_151 {dimension_numbers = #tpu.dot_dimension_numbers<[1], [0], [0], [1], [0, 0, 1, 1], [], []>} : vector<16x16xbf16>, vector<16x64xbf16>, vector<16x64xf32> -> vector<16x64xf32>
    %384 = vector.extract_strided_slice %278 {offsets = [0, 320], sizes = [16, 64], strides = [1, 1]} : vector<16x1536xf32> to vector<16x64xf32>
    %385 = vector.extract_strided_slice %278 {offsets = [0, 832], sizes = [16, 64], strides = [1, 1]} : vector<16x1536xf32> to vector<16x64xf32>
    %386 = vector.extract_strided_slice %278 {offsets = [0, 1344], sizes = [16, 64], strides = [1, 1]} : vector<16x1536xf32> to vector<16x64xf32>
    %387 = arith.truncf %384 : vector<16x64xf32> to vector<16x64xbf16>
    %388 = arith.truncf %385 : vector<16x64xf32> to vector<16x64xbf16>
    %cst_152 = arith.constant dense<0.000000e+00> : vector<16x16xf32>
    %389 = tpu.matmul %387, %388, %cst_152 {dimension_numbers = #tpu.dot_dimension_numbers<[1], [1], [0], [0], [0, 0, 1, 0], [], []>} : vector<16x64xbf16>, vector<16x64xbf16>, vector<16x16xf32> -> vector<16x16xf32>
    %cst_153 = arith.constant 1.250000e-01 : f32
    %390 = vector.broadcast %cst_153 : f32 to vector<16x16xf32>
    %391 = arith.mulf %389, %390 : vector<16x16xf32>
    %cst_154 = arith.constant dense<0xFF800000> : vector<16xf32>
    %392 = vector.multi_reduction <maximumf>, %391, %cst_154 [1] : vector<16x16xf32> to vector<16xf32>
    %393 = vector.shape_cast %392 : vector<16xf32> to vector<16x1xf32>
    %394 = vector.broadcast %393 : vector<16x1xf32> to vector<16x16xf32>
    %395 = arith.subf %391, %394 : vector<16x16xf32>
    %396 = math.exp %395 : vector<16x16xf32>
    %cst_155 = arith.constant dense<0.000000e+00> : vector<16xf32>
    %397 = vector.multi_reduction <add>, %396, %cst_155 [1] : vector<16x16xf32> to vector<16xf32>
    %398 = vector.shape_cast %397 : vector<16xf32> to vector<16x1xf32>
    %399 = tpu.reciprocal %398 : vector<16x1xf32> -> vector<16x1xf32>
    %400 = vector.broadcast %399 : vector<16x1xf32> to vector<16x16xf32>
    %401 = arith.mulf %396, %400 : vector<16x16xf32>
    %402 = arith.truncf %401 : vector<16x16xf32> to vector<16x16xbf16>
    %403 = arith.truncf %386 : vector<16x64xf32> to vector<16x64xbf16>
    %cst_156 = arith.constant dense<0.000000e+00> : vector<16x64xf32>
    %404 = tpu.matmul %402, %403, %cst_156 {dimension_numbers = #tpu.dot_dimension_numbers<[1], [0], [0], [1], [0, 0, 1, 1], [], []>} : vector<16x16xbf16>, vector<16x64xbf16>, vector<16x64xf32> -> vector<16x64xf32>
    %405 = vector.extract_strided_slice %278 {offsets = [0, 384], sizes = [16, 64], strides = [1, 1]} : vector<16x1536xf32> to vector<16x64xf32>
    %406 = vector.extract_strided_slice %278 {offsets = [0, 896], sizes = [16, 64], strides = [1, 1]} : vector<16x1536xf32> to vector<16x64xf32>
    %407 = vector.extract_strided_slice %278 {offsets = [0, 1408], sizes = [16, 64], strides = [1, 1]} : vector<16x1536xf32> to vector<16x64xf32>
    %408 = arith.truncf %405 : vector<16x64xf32> to vector<16x64xbf16>
    %409 = arith.truncf %406 : vector<16x64xf32> to vector<16x64xbf16>
    %cst_157 = arith.constant dense<0.000000e+00> : vector<16x16xf32>
    %410 = tpu.matmul %408, %409, %cst_157 {dimension_numbers = #tpu.dot_dimension_numbers<[1], [1], [0], [0], [0, 0, 1, 0], [], []>} : vector<16x64xbf16>, vector<16x64xbf16>, vector<16x16xf32> -> vector<16x16xf32>
    %cst_158 = arith.constant 1.250000e-01 : f32
    %411 = vector.broadcast %cst_158 : f32 to vector<16x16xf32>
    %412 = arith.mulf %410, %411 : vector<16x16xf32>
    %cst_159 = arith.constant dense<0xFF800000> : vector<16xf32>
    %413 = vector.multi_reduction <maximumf>, %412, %cst_159 [1] : vector<16x16xf32> to vector<16xf32>
    %414 = vector.shape_cast %413 : vector<16xf32> to vector<16x1xf32>
    %415 = vector.broadcast %414 : vector<16x1xf32> to vector<16x16xf32>
    %416 = arith.subf %412, %415 : vector<16x16xf32>
    %417 = math.exp %416 : vector<16x16xf32>
    %cst_160 = arith.constant dense<0.000000e+00> : vector<16xf32>
    %418 = vector.multi_reduction <add>, %417, %cst_160 [1] : vector<16x16xf32> to vector<16xf32>
    %419 = vector.shape_cast %418 : vector<16xf32> to vector<16x1xf32>
    %420 = tpu.reciprocal %419 : vector<16x1xf32> -> vector<16x1xf32>
    %421 = vector.broadcast %420 : vector<16x1xf32> to vector<16x16xf32>
    %422 = arith.mulf %417, %421 : vector<16x16xf32>
    %423 = arith.truncf %422 : vector<16x16xf32> to vector<16x16xbf16>
    %424 = arith.truncf %407 : vector<16x64xf32> to vector<16x64xbf16>
    %cst_161 = arith.constant dense<0.000000e+00> : vector<16x64xf32>
    %425 = tpu.matmul %423, %424, %cst_161 {dimension_numbers = #tpu.dot_dimension_numbers<[1], [0], [0], [1], [0, 0, 1, 1], [], []>} : vector<16x16xbf16>, vector<16x64xbf16>, vector<16x64xf32> -> vector<16x64xf32>
    %426 = vector.extract_strided_slice %278 {offsets = [0, 448], sizes = [16, 64], strides = [1, 1]} : vector<16x1536xf32> to vector<16x64xf32>
    %427 = vector.extract_strided_slice %278 {offsets = [0, 960], sizes = [16, 64], strides = [1, 1]} : vector<16x1536xf32> to vector<16x64xf32>
    %428 = vector.extract_strided_slice %278 {offsets = [0, 1472], sizes = [16, 64], strides = [1, 1]} : vector<16x1536xf32> to vector<16x64xf32>
    %429 = arith.truncf %426 : vector<16x64xf32> to vector<16x64xbf16>
    %430 = arith.truncf %427 : vector<16x64xf32> to vector<16x64xbf16>
    %cst_162 = arith.constant dense<0.000000e+00> : vector<16x16xf32>
    %431 = tpu.matmul %429, %430, %cst_162 {dimension_numbers = #tpu.dot_dimension_numbers<[1], [1], [0], [0], [0, 0, 1, 0], [], []>} : vector<16x64xbf16>, vector<16x64xbf16>, vector<16x16xf32> -> vector<16x16xf32>
    %cst_163 = arith.constant 1.250000e-01 : f32
    %432 = vector.broadcast %cst_163 : f32 to vector<16x16xf32>
    %433 = arith.mulf %431, %432 : vector<16x16xf32>
    %cst_164 = arith.constant dense<0xFF800000> : vector<16xf32>
    %434 = vector.multi_reduction <maximumf>, %433, %cst_164 [1] : vector<16x16xf32> to vector<16xf32>
    %435 = vector.shape_cast %434 : vector<16xf32> to vector<16x1xf32>
    %436 = vector.broadcast %435 : vector<16x1xf32> to vector<16x16xf32>
    %437 = arith.subf %433, %436 : vector<16x16xf32>
    %438 = math.exp %437 : vector<16x16xf32>
    %cst_165 = arith.constant dense<0.000000e+00> : vector<16xf32>
    %439 = vector.multi_reduction <add>, %438, %cst_165 [1] : vector<16x16xf32> to vector<16xf32>
    %440 = vector.shape_cast %439 : vector<16xf32> to vector<16x1xf32>
    %441 = tpu.reciprocal %440 : vector<16x1xf32> -> vector<16x1xf32>
    %442 = vector.broadcast %441 : vector<16x1xf32> to vector<16x16xf32>
    %443 = arith.mulf %438, %442 : vector<16x16xf32>
    %444 = arith.truncf %443 : vector<16x16xf32> to vector<16x16xbf16>
    %445 = arith.truncf %428 : vector<16x64xf32> to vector<16x64xbf16>
    %cst_166 = arith.constant dense<0.000000e+00> : vector<16x64xf32>
    %446 = tpu.matmul %444, %445, %cst_166 {dimension_numbers = #tpu.dot_dimension_numbers<[1], [0], [0], [1], [0, 0, 1, 1], [], []>} : vector<16x16xbf16>, vector<16x64xbf16>, vector<16x64xf32> -> vector<16x64xf32>
    %447 = tpu.concatenate %299, %320, %341, %362, %383, %404, %425, %446 in 1 : vector<16x64xf32>, vector<16x64xf32>, vector<16x64xf32>, vector<16x64xf32>, vector<16x64xf32>, vector<16x64xf32>, vector<16x64xf32>, vector<16x64xf32> -> vector<16x512xf32>
    %448 = arith.truncf %447 : vector<16x512xf32> to vector<16x512xbf16>
    %cst_167 = arith.constant dense<0.000000e+00> : vector<16x32xf32>
    %449 = tpu.matmul %448, %249, %cst_167 {dimension_numbers = #tpu.dot_dimension_numbers<[1], [0], [0], [1], [0, 0, 1, 1], [], []>} : vector<16x512xbf16>, vector<512x32xbf16>, vector<16x32xf32> -> vector<16x32xf32>
    %450 = vector.broadcast %250 : vector<1x32xf32> to vector<16x32xf32>
    %451 = arith.addf %449, %450 : vector<16x32xf32>
    %452 = arith.addf %245, %451 : vector<16x32xf32>
    %cst_168 = arith.constant dense<0.000000e+00> : vector<16xf32>
    %453 = vector.multi_reduction <add>, %452, %cst_168 [1] : vector<16x32xf32> to vector<16xf32>
    %454 = vector.shape_cast %453 : vector<16xf32> to vector<16x1xf32>
    %cst_169 = arith.constant 3.200000e+01 : f32
    %455 = vector.broadcast %cst_169 : f32 to vector<16x1xf32>
    %456 = arith.divf %454, %455 : vector<16x1xf32>
    %457 = vector.broadcast %456 : vector<16x1xf32> to vector<16x32xf32>
    %458 = arith.subf %452, %457 : vector<16x32xf32>
    %459 = arith.mulf %458, %458 : vector<16x32xf32>
    %cst_170 = arith.constant dense<0.000000e+00> : vector<16xf32>
    %460 = vector.multi_reduction <add>, %459, %cst_170 [1] : vector<16x32xf32> to vector<16xf32>
    %461 = vector.shape_cast %460 : vector<16xf32> to vector<16x1xf32>
    %cst_171 = arith.constant 3.200000e+01 : f32
    %462 = vector.broadcast %cst_171 : f32 to vector<16x1xf32>
    %463 = arith.divf %461, %462 : vector<16x1xf32>
    %cst_172 = arith.constant 9.99999974E-6 : f32
    %464 = vector.broadcast %cst_172 : f32 to vector<16x1xf32>
    %465 = arith.addf %463, %464 : vector<16x1xf32>
    %466 = math.rsqrt %465 : vector<16x1xf32>
    %467 = vector.broadcast %466 : vector<16x1xf32> to vector<16x32xf32>
    %468 = arith.mulf %458, %467 : vector<16x32xf32>
    %469 = vector.broadcast %251 : vector<1x32xf32> to vector<16x32xf32>
    %470 = arith.mulf %468, %469 : vector<16x32xf32>
    %471 = vector.broadcast %252 : vector<1x32xf32> to vector<16x32xf32>
    %472 = arith.addf %470, %471 : vector<16x32xf32>
    %473 = arith.truncf %472 : vector<16x32xf32> to vector<16x32xbf16>
    %cst_173 = arith.constant dense<0.000000e+00> : vector<16x128xf32>
    %474 = tpu.matmul %473, %253, %cst_173 {dimension_numbers = #tpu.dot_dimension_numbers<[1], [0], [0], [1], [0, 0, 1, 1], [], []>} : vector<16x32xbf16>, vector<32x128xbf16>, vector<16x128xf32> -> vector<16x128xf32>
    %475 = vector.broadcast %254 : vector<1x128xf32> to vector<16x128xf32>
    %476 = arith.addf %474, %475 : vector<16x128xf32>
    %477 = arith.mulf %476, %476 : vector<16x128xf32>
    %478 = arith.mulf %476, %477 : vector<16x128xf32>
    %cst_174 = arith.constant 4.471500e-02 : f32
    %479 = vector.broadcast %cst_174 : f32 to vector<16x128xf32>
    %480 = arith.mulf %479, %478 : vector<16x128xf32>
    %481 = arith.addf %476, %480 : vector<16x128xf32>
    %cst_175 = arith.constant 0.797884583 : f32
    %482 = vector.broadcast %cst_175 : f32 to vector<16x128xf32>
    %483 = arith.mulf %482, %481 : vector<16x128xf32>
    %484 = math.tanh %483 : vector<16x128xf32>
    %cst_176 = arith.constant 1.000000e+00 : f32
    %485 = vector.broadcast %cst_176 : f32 to vector<16x128xf32>
    %486 = arith.addf %485, %484 : vector<16x128xf32>
    %cst_177 = arith.constant 5.000000e-01 : f32
    %487 = vector.broadcast %cst_177 : f32 to vector<16x128xf32>
    %488 = arith.mulf %487, %486 : vector<16x128xf32>
    %489 = arith.mulf %476, %488 : vector<16x128xf32>
    %490 = arith.truncf %489 : vector<16x128xf32> to vector<16x128xbf16>
    %cst_178 = arith.constant dense<0.000000e+00> : vector<16x32xf32>
    %491 = tpu.matmul %490, %255, %cst_178 {dimension_numbers = #tpu.dot_dimension_numbers<[1], [0], [0], [1], [0, 0, 1, 1], [], []>} : vector<16x128xbf16>, vector<128x32xbf16>, vector<16x32xf32> -> vector<16x32xf32>
    %492 = arith.addf %452, %491 : vector<16x32xf32>
    %493 = vector.broadcast %256 : vector<1x32xf32> to vector<16x32xf32>
    %494 = arith.addf %492, %493 : vector<16x32xf32>
    %c0_179 = arith.constant 0 : index
    %c0_180 = arith.constant 0 : index
    %495 = vector.load %arg36[%c0_179, %c0_180] : memref<1x32xf32, #tpu.memory_space<vmem>>, vector<1x32xf32>
    %c0_181 = arith.constant 0 : index
    %c0_182 = arith.constant 0 : index
    %496 = vector.load %arg37[%c0_181, %c0_182] : memref<1x32xf32, #tpu.memory_space<vmem>>, vector<1x32xf32>
    %cst_183 = arith.constant dense<0.000000e+00> : vector<16xf32>
    %497 = vector.multi_reduction <add>, %494, %cst_183 [1] : vector<16x32xf32> to vector<16xf32>
    %498 = vector.shape_cast %497 : vector<16xf32> to vector<16x1xf32>
    %cst_184 = arith.constant 3.200000e+01 : f32
    %499 = vector.broadcast %cst_184 : f32 to vector<16x1xf32>
    %500 = arith.divf %498, %499 : vector<16x1xf32>
    %501 = vector.broadcast %500 : vector<16x1xf32> to vector<16x32xf32>
    %502 = arith.subf %494, %501 : vector<16x32xf32>
    %503 = arith.mulf %502, %502 : vector<16x32xf32>
    %cst_185 = arith.constant dense<0.000000e+00> : vector<16xf32>
    %504 = vector.multi_reduction <add>, %503, %cst_185 [1] : vector<16x32xf32> to vector<16xf32>
    %505 = vector.shape_cast %504 : vector<16xf32> to vector<16x1xf32>
    %cst_186 = arith.constant 3.200000e+01 : f32
    %506 = vector.broadcast %cst_186 : f32 to vector<16x1xf32>
    %507 = arith.divf %505, %506 : vector<16x1xf32>
    %cst_187 = arith.constant 9.99999974E-6 : f32
    %508 = vector.broadcast %cst_187 : f32 to vector<16x1xf32>
    %509 = arith.addf %507, %508 : vector<16x1xf32>
    %510 = math.rsqrt %509 : vector<16x1xf32>
    %511 = vector.broadcast %510 : vector<16x1xf32> to vector<16x32xf32>
    %512 = arith.mulf %502, %511 : vector<16x32xf32>
    %513 = vector.broadcast %495 : vector<1x32xf32> to vector<16x32xf32>
    %514 = arith.mulf %512, %513 : vector<16x32xf32>
    %515 = vector.broadcast %496 : vector<1x32xf32> to vector<16x32xf32>
    %516 = arith.addf %514, %515 : vector<16x32xf32>
    %c0_188 = arith.constant 0 : index
    %c0_189 = arith.constant 0 : index
    %517 = vector.load %arg38[%c0_188, %c0_189] : memref<32x256xbf16, #tpu.memory_space<vmem>>, vector<32x256xbf16>
    %518 = arith.truncf %516 : vector<16x32xf32> to vector<16x32xbf16>
    %cst_190 = arith.constant dense<0.000000e+00> : vector<16x256xf32>
    %519 = tpu.matmul %518, %517, %cst_190 {dimension_numbers = #tpu.dot_dimension_numbers<[1], [0], [0], [1], [0, 0, 1, 1], [], []>} : vector<16x32xbf16>, vector<32x256xbf16>, vector<16x256xf32> -> vector<16x256xf32>
    %c0_191 = arith.constant 0 : index
    %c0_192 = arith.constant 0 : index
    %520 = vector.load %arg39[%c0_191, %c0_192] : memref<1x256xf32, #tpu.memory_space<vmem>>, vector<1x256xf32>
    %521 = vector.broadcast %520 : vector<1x256xf32> to vector<16x256xf32>
    %522 = arith.addf %519, %521 : vector<16x256xf32>
    %c0_193 = arith.constant 0 : index
    %c0_194 = arith.constant 0 : index
    %523 = vector.load %arg40[%c0_193, %c0_194] : memref<16x256xf32, #tpu.memory_space<vmem>>, vector<16x256xf32>
    tpu.vector_store %arg40[%c0_193, %c0_194], %522 {strides = array<i32>} : memref<16x256xf32, #tpu.memory_space<vmem>>, vector<16x256xf32>,
    %c0_195 = arith.constant 0 : index
    %c0_196 = arith.constant 0 : index
    %524 = vector.load %arg2[%c0_195, %c0_196] : memref<16x256xf32, #tpu.memory_space<vmem>>, vector<16x256xf32>
    %525 = arith.subf %522, %524 : vector<16x256xf32>
    %526 = arith.mulf %525, %525 : vector<16x256xf32>
    %527 = vector.shape_cast %526 : vector<16x256xf32> to vector<1x16x256xf32>
    %cst_197 = arith.constant dense<0.000000e+00> : vector<1xf32>
    %528 = vector.multi_reduction <add>, %527, %cst_197 [1, 2] : vector<1x16x256xf32> to vector<1xf32>
    %529 = vector.shape_cast %528 : vector<1xf32> to vector<1x1x1xf32>
    %530 = vector.extract %529[0, 0, 0] : f32 from vector<1x1x1xf32>
    %531 = vector.broadcast %530 : f32 to vector<1x8x128xf32>
    %c0_198 = arith.constant 0 : index
    %c0_199 = arith.constant 0 : index
    %c0_200 = arith.constant 0 : index
    %532 = vector.load %arg41[%c0_198, %c0_199, %c0_200] : memref<1x8x128xf32, #tpu.memory_space<vmem>>, vector<1x8x128xf32>
    tpu.vector_store %arg41[%c0_198, %c0_199, %c0_200], %531 {strides = array<i32>} : memref<1x8x128xf32, #tpu.memory_space<vmem>>, vector<1x8x128xf32>,
    return
  }
  func.func @transform_0(%arg0: i32) -> (i32, i32) {
    %c0_i32 = arith.constant 0 : i32
    %c0_i32_0 = arith.constant 0 : i32
    return %arg0, %c0_i32 : i32, i32
  }
  func.func @transform_1(%arg0: i32) -> (i32, i32) {
    %c0_i32 = arith.constant 0 : i32
    %c0_i32_0 = arith.constant 0 : i32
    return %arg0, %c0_i32 : i32, i32
  }
  func.func @transform_2(%arg0: i32) -> (i32, i32) {
    %c0_i32 = arith.constant 0 : i32
    %c0_i32_0 = arith.constant 0 : i32
    %c0_i32_1 = arith.constant 0 : i32
    return %c0_i32, %c0_i32_0 : i32, i32
  }
  func.func @transform_3(%arg0: i32) -> (i32, i32) {
    %c0_i32 = arith.constant 0 : i32
    %c0_i32_0 = arith.constant 0 : i32
    %c0_i32_1 = arith.constant 0 : i32
    return %c0_i32, %c0_i32_0 : i32, i32
  }
  func.func @transform_4(%arg0: i32) -> (i32, i32) {
    %c0_i32 = arith.constant 0 : i32
    %c0_i32_0 = arith.constant 0 : i32
    %c0_i32_1 = arith.constant 0 : i32
    return %c0_i32, %c0_i32_0 : i32, i32
  }
  func.func @transform_5(%arg0: i32) -> (i32, i32) {
    %c0_i32 = arith.constant 0 : i32
    %c0_i32_0 = arith.constant 0 : i32
    %c0_i32_1 = arith.constant 0 : i32
    return %c0_i32, %c0_i32_0 : i32, i32
  }
  func.func @transform_6(%arg0: i32) -> (i32, i32) {
    %c0_i32 = arith.constant 0 : i32
    %c0_i32_0 = arith.constant 0 : i32
    %c0_i32_1 = arith.constant 0 : i32
    return %c0_i32, %c0_i32_0 : i32, i32
  }
  func.func @transform_7(%arg0: i32) -> (i32, i32) {
    %c0_i32 = arith.constant 0 : i32
    %c0_i32_0 = arith.constant 0 : i32
    %c0_i32_1 = arith.constant 0 : i32
    return %c0_i32, %c0_i32_0 : i32, i32
  }
  func.func @transform_8(%arg0: i32) -> (i32, i32) {
    %c0_i32 = arith.constant 0 : i32
    %c0_i32_0 = arith.constant 0 : i32
    %c0_i32_1 = arith.constant 0 : i32
    return %c0_i32, %c0_i32_0 : i32, i32
  }
  func.func @transform_9(%arg0: i32) -> (i32, i32) {
    %c0_i32 = arith.constant 0 : i32
    %c0_i32_0 = arith.constant 0 : i32
    %c0_i32_1 = arith.constant 0 : i32
    return %c0_i32, %c0_i32_0 : i32, i32
  }
  func.func @transform_10(%arg0: i32) -> (i32, i32) {
    %c0_i32 = arith.constant 0 : i32
    %c0_i32_0 = arith.constant 0 : i32
    %c0_i32_1 = arith.constant 0 : i32
    return %c0_i32, %c0_i32_0 : i32, i32
  }
  func.func @transform_11(%arg0: i32) -> (i32, i32) {
    %c0_i32 = arith.constant 0 : i32
    %c0_i32_0 = arith.constant 0 : i32
    %c0_i32_1 = arith.constant 0 : i32
    return %c0_i32, %c0_i32_0 : i32, i32
  }
  func.func @transform_12(%arg0: i32) -> (i32, i32) {
    %c0_i32 = arith.constant 0 : i32
    %c0_i32_0 = arith.constant 0 : i32
    %c0_i32_1 = arith.constant 0 : i32
    return %c0_i32, %c0_i32_0 : i32, i32
  }
  func.func @transform_13(%arg0: i32) -> (i32, i32) {
    %c0_i32 = arith.constant 0 : i32
    %c0_i32_0 = arith.constant 0 : i32
    %c0_i32_1 = arith.constant 0 : i32
    return %c0_i32, %c0_i32_0 : i32, i32
  }
  func.func @transform_14(%arg0: i32) -> (i32, i32) {
    %c0_i32 = arith.constant 0 : i32
    %c0_i32_0 = arith.constant 0 : i32
    %c0_i32_1 = arith.constant 0 : i32
    return %c0_i32, %c0_i32_0 : i32, i32
  }
  func.func @transform_15(%arg0: i32) -> (i32, i32) {
    %c0_i32 = arith.constant 0 : i32
    %c0_i32_0 = arith.constant 0 : i32
    %c0_i32_1 = arith.constant 0 : i32
    return %c0_i32, %c0_i32_0 : i32, i32
  }
  func.func @transform_16(%arg0: i32) -> (i32, i32) {
    %c0_i32 = arith.constant 0 : i32
    %c0_i32_0 = arith.constant 0 : i32
    %c0_i32_1 = arith.constant 0 : i32
    return %c0_i32, %c0_i32_0 : i32, i32
  }
  func.func @transform_17(%arg0: i32) -> (i32, i32) {
    %c0_i32 = arith.constant 0 : i32
    %c0_i32_0 = arith.constant 0 : i32
    %c0_i32_1 = arith.constant 0 : i32
    return %c0_i32, %c0_i32_0 : i32, i32
  }
  func.func @transform_18(%arg0: i32) -> (i32, i32) {
    %c0_i32 = arith.constant 0 : i32
    %c0_i32_0 = arith.constant 0 : i32
    %c0_i32_1 = arith.constant 0 : i32
    return %c0_i32, %c0_i32_0 : i32, i32
  }
  func.func @transform_19(%arg0: i32) -> (i32, i32) {
    %c0_i32 = arith.constant 0 : i32
    %c0_i32_0 = arith.constant 0 : i32
    %c0_i32_1 = arith.constant 0 : i32
    return %c0_i32, %c0_i32_0 : i32, i32
  }
  func.func @transform_20(%arg0: i32) -> (i32, i32) {
    %c0_i32 = arith.constant 0 : i32
    %c0_i32_0 = arith.constant 0 : i32
    %c0_i32_1 = arith.constant 0 : i32
    return %c0_i32, %c0_i32_0 : i32, i32
  }
  func.func @transform_21(%arg0: i32) -> (i32, i32) {
    %c0_i32 = arith.constant 0 : i32
    %c0_i32_0 = arith.constant 0 : i32
    %c0_i32_1 = arith.constant 0 : i32
    return %c0_i32, %c0_i32_0 : i32, i32
  }
  func.func @transform_22(%arg0: i32) -> (i32, i32) {
    %c0_i32 = arith.constant 0 : i32
    %c0_i32_0 = arith.constant 0 : i32
    %c0_i32_1 = arith.constant 0 : i32
    return %c0_i32, %c0_i32_0 : i32, i32
  }
  func.func @transform_23(%arg0: i32) -> (i32, i32) {
    %c0_i32 = arith.constant 0 : i32
    %c0_i32_0 = arith.constant 0 : i32
    %c0_i32_1 = arith.constant 0 : i32
    return %c0_i32, %c0_i32_0 : i32, i32
  }
  func.func @transform_24(%arg0: i32) -> (i32, i32) {
    %c0_i32 = arith.constant 0 : i32
    %c0_i32_0 = arith.constant 0 : i32
    %c0_i32_1 = arith.constant 0 : i32
    return %c0_i32, %c0_i32_0 : i32, i32
  }
  func.func @transform_25(%arg0: i32) -> (i32, i32) {
    %c0_i32 = arith.constant 0 : i32
    %c0_i32_0 = arith.constant 0 : i32
    %c0_i32_1 = arith.constant 0 : i32
    return %c0_i32, %c0_i32_0 : i32, i32
  }
  func.func @transform_26(%arg0: i32) -> (i32, i32) {
    %c0_i32 = arith.constant 0 : i32
    %c0_i32_0 = arith.constant 0 : i32
    %c0_i32_1 = arith.constant 0 : i32
    return %c0_i32, %c0_i32_0 : i32, i32
  }
  func.func @transform_27(%arg0: i32) -> (i32, i32) {
    %c0_i32 = arith.constant 0 : i32
    %c0_i32_0 = arith.constant 0 : i32
    %c0_i32_1 = arith.constant 0 : i32
    return %c0_i32, %c0_i32_0 : i32, i32
  }
  func.func @transform_28(%arg0: i32) -> (i32, i32) {
    %c0_i32 = arith.constant 0 : i32
    %c0_i32_0 = arith.constant 0 : i32
    %c0_i32_1 = arith.constant 0 : i32
    return %c0_i32, %c0_i32_0 : i32, i32
  }
  func.func @transform_29(%arg0: i32) -> (i32, i32) {
    %c0_i32 = arith.constant 0 : i32
    %c0_i32_0 = arith.constant 0 : i32
    %c0_i32_1 = arith.constant 0 : i32
    return %c0_i32, %c0_i32_0 : i32, i32
  }
  func.func @transform_30(%arg0: i32) -> (i32, i32) {
    %c0_i32 = arith.constant 0 : i32
    %c0_i32_0 = arith.constant 0 : i32
    %c0_i32_1 = arith.constant 0 : i32
    return %c0_i32, %c0_i32_0 : i32, i32
  }
  func.func @transform_31(%arg0: i32) -> (i32, i32) {
    %c0_i32 = arith.constant 0 : i32
    %c0_i32_0 = arith.constant 0 : i32
    %c0_i32_1 = arith.constant 0 : i32
    return %c0_i32, %c0_i32_0 : i32, i32
  }
  func.func @transform_32(%arg0: i32) -> (i32, i32) {
    %c0_i32 = arith.constant 0 : i32
    %c0_i32_0 = arith.constant 0 : i32
    %c0_i32_1 = arith.constant 0 : i32
    return %c0_i32, %c0_i32_0 : i32, i32
  }
  func.func @transform_33(%arg0: i32) -> (i32, i32) {
    %c0_i32 = arith.constant 0 : i32
    %c0_i32_0 = arith.constant 0 : i32
    %c0_i32_1 = arith.constant 0 : i32
    return %c0_i32, %c0_i32_0 : i32, i32
  }
  func.func @transform_34(%arg0: i32) -> (i32, i32) {
    %c0_i32 = arith.constant 0 : i32
    %c0_i32_0 = arith.constant 0 : i32
    %c0_i32_1 = arith.constant 0 : i32
    return %c0_i32, %c0_i32_0 : i32, i32
  }
  func.func @transform_35(%arg0: i32) -> (i32, i32) {
    %c0_i32 = arith.constant 0 : i32
    %c0_i32_0 = arith.constant 0 : i32
    %c0_i32_1 = arith.constant 0 : i32
    return %c0_i32, %c0_i32_0 : i32, i32
  }
  func.func @transform_36(%arg0: i32) -> (i32, i32) {
    %c0_i32 = arith.constant 0 : i32
    %c0_i32_0 = arith.constant 0 : i32
    %c0_i32_1 = arith.constant 0 : i32
    return %c0_i32, %c0_i32_0 : i32, i32
  }
  func.func @transform_37(%arg0: i32) -> (i32, i32) {
    %c0_i32 = arith.constant 0 : i32
    %c0_i32_0 = arith.constant 0 : i32
    %c0_i32_1 = arith.constant 0 : i32
    return %c0_i32, %c0_i32_0 : i32, i32
  }
  func.func @transform_38(%arg0: i32) -> (i32, i32) {
    %c0_i32 = arith.constant 0 : i32
    %c0_i32_0 = arith.constant 0 : i32
    %c0_i32_1 = arith.constant 0 : i32
    return %c0_i32, %c0_i32_0 : i32, i32
  }
  func.func @transform_39(%arg0: i32) -> (i32, i32) {
    %c0_i32 = arith.constant 0 : i32
    %c0_i32_0 = arith.constant 0 : i32
    return %arg0, %c0_i32 : i32, i32
  }
  func.func @transform_40(%arg0: i32) -> (i32, i32, i32) {
    %c0_i32 = arith.constant 0 : i32
    %c0_i32_0 = arith.constant 0 : i32
    %c0_i32_1 = arith.constant 0 : i32
    return %arg0, %c0_i32, %c0_i32_0 : i32, i32, i32
  }
}

</mosaic_0001>

<bundles_post_ra>
// kernel: binmodel_forward.1
= control target key start
LH: loop header
LB: loop body
LE: loop exit
PB: predicated region body
PF: predicated region fallthrough
CT: control target
= control target key end

     0   :  { %s6112_s6 = smov 1   ;;  %s6113_s10 = smov 2   ;;  %s7143_s0 = inlined_call_operand.smem [shape: u32[41], index: -1, kind: input, shape index: {}] }
   0x1   :  { %s6172_s5 = sld [smem:[%s7143_s0]]   ;;  %s6114_s14 = smov 3  }
   0x2   :  { %s6177_s9 = sld [smem:[%s7143_s0 + %s6112_s6]]   ;;  %s6115_s18 = smov 4  }
   0x3   :  { %s6182_s13 = sld [smem:[%s7143_s0 + %s6113_s10]]   ;;  %s6116_s22 = smov 5  }
   0x4   :  { %s6187_s17 = sld [smem:[%s7143_s0 + %s6114_s14]]   ;;  %s6117_s26 = smov 6  }
   0x5   :  { %s6192_s21 = sld [smem:[%s7143_s0 + %s6115_s18]]   ;;  %s6118_s30 = smov 7  }
   0x6   :  { %s6197_s25 = sld [smem:[%s7143_s0 + %s6116_s22]]   ;;  %s6119_s4 = smov 8  }
   0x7   :  { %7164 = sst [smem:[#allocation5_spill]] %s6172_s5  ;;  %s6120_s10 = smov 9  }
   0x8   :  { %7165 = sst [smem:[#allocation6_spill]] %s6177_s9  ;;  %s6121_s15 = smov 10  }
   0x9   :  { %7166 = sst [smem:[#allocation7_spill]] %s6182_s13  ;;  %s6122_s20 = smov 11  }
   0xa   :  { %s6202_s29 = sld [smem:[%s7143_s0 + %s6117_s26]]   ;;  %s6123_s26 = smov 12  }
   0xb   :  { %s6207_s3 = sld [smem:[%s7143_s0 + %s6118_s30]]   ;;  %s6124_s1 = smov 13  }
   0xc   :  { %s6212_s8 = sld [smem:[%s7143_s0 + %s6119_s4]]   ;;  %s6125_s7 = smov 14  }
   0xd   :  { %s6217_s14 = sld [smem:[%s7143_s0 + %s6120_s10]]   ;;  %s6127_s22 = smov 16  }
   0xe   :  { %s6222_s19 = sld [smem:[%s7143_s0 + %s6121_s15]]   ;;  %s6126_s15 = smov 15  }
   0xf   :  { %s6227_s24 = sld [smem:[%s7143_s0 + %s6122_s20]]   ;;  %s6128_s28 = smov 17  }
  0x10   :  { %s6232_s30 = sld [smem:[%s7143_s0 + %s6123_s26]]  }
  0x11   :  { %7167 = sst [smem:[#allocation8_spill]] %s6207_s3 }
  0x12   :  { %7168 = sst [smem:[#allocation9_spill]] %s6212_s8 }
  0x13   :  { %s6237_s6 = sld [smem:[%s7143_s0 + %s6124_s1]]  }
  0x14   :  { %s6242_s12 = sld [smem:[%s7143_s0 + %s6125_s7]]   ;;  %s6129_s7 = smov 18  }
  0x15   :  { %s6247_s20 = sld [smem:[%s7143_s0 + %s6126_s15]]   ;;  %s6130_s15 = smov 19  }
  0x16   :  { %s6252_s27 = sld [smem:[%s7143_s0 + %s6127_s22]]   ;;  %s6131_s22 = smov 20  }
  0x17   :  { %s6257_s4 = sld [smem:[%s7143_s0 + %s6128_s28]]   ;;  %s6132_s28 = smov 21  }
  0x18   :  { %s6262_s9 = sld [smem:[%s7143_s0 + %s6129_s7]]   ;;  %s6133_s7 = smov 22  }
  0x19   :  { %7169 = sst [smem:[#allocation10_spill]] %s6237_s6 }
  0x1a   :  { %7170 = sst [smem:[#allocation11_spill]] %s6242_s12 }
  0x1b   :  { %7171 = sst [smem:[#allocation12_spill]] %s6247_s20 }
  0x1c   :  { %s6267_s20 = sld [smem:[%s7143_s0 + %s6130_s15]]   ;;  %s6134_s15 = smov 23  }
  0x1d   :  { %7172 = sst [smem:[#allocation13_spill]] %s6257_s4 }
  0x1e   :  { %7173 = sst [smem:[#allocation14_spill]] %s6262_s9 }
  0x1f   :  { %s6272_s12 = sld [smem:[%s7143_s0 + %s6131_s22]]   ;;  %s6135_s22 = smov 24  }
  0x20   :  { %s6277_s4 = sld [smem:[%s7143_s0 + %s6132_s28]]   ;;  %s6136_s28 = smov 25  }
  0x21   :  { %s6282_s9 = sld [smem:[%s7143_s0 + %s6133_s7]]   ;;  %s6137_s7 = smov 26  }
  0x22   :  { %7174 = sst [smem:[#allocation15_spill]] %s6267_s20 }
  0x23   :  { %s6287_s20 = sld [smem:[%s7143_s0 + %s6134_s15]]   ;;  %s6138_s15 = smov 27  }
  0x25   :  { %7175 = sst [smem:[#allocation16_spill]] %s6272_s12 }
  0x26   :  { %7176 = sst [smem:[#allocation17_spill]] %s6277_s4 }
  0x27   :  { %7177 = sst [smem:[#allocation18_spill]] %s6282_s9 }
  0x28   :  { %s6292_s12 = sld [smem:[%s7143_s0 + %s6135_s22]]   ;;  %s6139_s22 = smov 28  }
  0x29   :  { %7178 = sst [smem:[#allocation19_spill]] %s6287_s20 }
  0x2a   :  { %s6297_s4 = sld [smem:[%s7143_s0 + %s6136_s28]]   ;;  %s6140_s28 = smov 29  }
  0x2b   :  { %s6302_s9 = sld [smem:[%s7143_s0 + %s6137_s7]]   ;;  %s6141_s7 = smov 30  }
  0x2c   :  { %s6307_s20 = sld [smem:[%s7143_s0 + %s6138_s15]]   ;;  %s6142_s15 = smov 31  }
  0x2e   :  { %7179 = sst [smem:[#allocation20_spill]] %s6292_s12 }
  0x2f   :  { %s6312_s12 = sld [smem:[%s7143_s0 + %s6139_s22]]   ;;  %s6143_s22 = smov 32  }
  0x30   :  { %7180 = sst [smem:[#allocation21_spill]] %s6297_s4 }
  0x31   :  { %7181 = sst [smem:[#allocation22_spill]] %s6302_s9 }
  0x32   :  { %7182 = sst [smem:[#allocation23_spill]] %s6307_s20 }
  0x33   :  { %s6317_s4 = sld [smem:[%s7143_s0 + %s6140_s28]]   ;;  %s6144_s28 = smov 33  }
  0x34   :  { %s6322_s9 = sld [smem:[%s7143_s0 + %s6141_s7]]   ;;  %s6145_s7 = smov 34  }
  0x35   :  { %7183 = sst [smem:[#allocation24_spill]] %s6312_s12 }
  0x36   :  { %s6327_s20 = sld [smem:[%s7143_s0 + %s6142_s15]]   ;;  %s6146_s15 = smov 35  }
  0x37   :  { %s6332_s12 = sld [smem:[%s7143_s0 + %s6143_s22]]   ;;  %s6147_s22 = smov 36  }
  0x39   :  { %7184 = sst [smem:[#allocation25_spill]] %s6317_s4 }
  0x3a   :  { %7185 = sst [smem:[#allocation26_spill]] %s6322_s9 }
  0x3b   :  { %s6337_s4 = sld [smem:[%s7143_s0 + %s6144_s28]]   ;;  %s6148_s28 = smov 37  }
  0x3c   :  { %7186 = sst [smem:[#allocation27_spill]] %s6327_s20 }
  0x3d   :  { %7187 = sst [smem:[#allocation28_spill]] %s6332_s12 }
  0x3e   :  { %s6342_s9 = sld [smem:[%s7143_s0 + %s6145_s7]]   ;;  %s6149_s7 = smov 38  }
  0x3f   :  { %s6347_s20 = sld [smem:[%s7143_s0 + %s6146_s15]]   ;;  %s6150_s15 = smov 39  }
  0x40   :  { %s6352_s12 = sld [smem:[%s7143_s0 + %s6147_s22]]   ;;  %s6151_s22 = smov 40  }
  0x41   :  { %7188 = sst [smem:[#allocation29_spill]] %s6337_s4 }
  0x42   :  { %s6357_s4 = sld [smem:[%s7143_s0 + %s6148_s28]]  }
  0x44   :  { %7189 = sst [smem:[#allocation30_spill]] %s6342_s9 }
  0x45   :  { %7190 = sst [smem:[#allocation31_spill]] %s6347_s20 }
  0x46   :  { %7191 = sst [smem:[#allocation32_spill]] %s6352_s12 }
  0x47   :  { %s6362_s9 = sld [smem:[%s7143_s0 + %s6149_s7]]  }
  0x48   :  { %7192 = sst [smem:[#allocation33_spill]] %s6357_s4 }
  0x49   :  { %s6367_s20 = sld [smem:[%s7143_s0 + %s6150_s15]]  }
  0x4a   :  { %s6372_s12 = sld [smem:[%s7143_s0 + %s6151_s22]]  }
  0x4d   :  { %7193 = sst [smem:[#allocation34_spill]] %s6362_s9 }
  0x4e   :  { %87 = vsyncpa [#allocation3], 0 }
  0x4f   :  { %89 = vsyncpa [#allocation3 + $0x1], 0  ;;  %s6374_s28 = smov 0   ;;  %s6376_s1 = smov 0  }
  0x50   :  { %s6378_s2 = smov 0   ;;  %s6380_s7 = smov 0  }
  0x51 LB: > { %s7194_s13 = sld [smem:[#allocation7_spill]]  ;;  %s6395_s0 = sadd.s32 4294967295, %s6110_s7   ;;  %s6102_s1 = sphi %s6376_s1, %s7234_s1   ;;  %s6098_s28 = sphi %s6374_s28, %s7233_s28   ;;  %s6110_s7 = sphi %s6380_s7, %s7236_s7   ;;  %s6106_s2 = sphi %s6378_s2, %s7235_s2  }
  0x52   : > { %s7195_s4 = sld [smem:[#allocation33_spill]]  ;;  %s5120_s10 = sadd.s32 4294967294, %s6110_s7  }
  0x53   : > { %s6399_s11 = sadd.s32 1, %s6110_s7   ;;  %s931_s15 = sadd.s32 1, %s6106_s2 }
  0x54   : > { %s928_s16 = ssub.s32 %s6110_s7, %s6399_s11  ;;  %p941_p0 = scmp.ne.s32.totalorder %s6106_s2, %s6102_s1 }
  0x55   : > { %p929_p1 = scmp.eq.s32.totalorder %s928_s16, 0  ;;  %p942_p2 = scmp.eq.s32.totalorder %s6395_s0, 1 }
  0x56   : > { %p947_p3 = scmp.ne.s32.totalorder %s6102_s1, %s6098_s28  ;;  %p948_p4 = scmp.eq.s32.totalorder %s5120_s10, 1 }
  0x57   : > { %s6410_s18 = scalar_select %p929_p1, %s6106_s2, %s931_s15  }
  0x58   : > { %p6412_p5 = por %p942_p2, %p941_p0  ;;  %p6416_p6 = por %p948_p4, %p947_p3 }
  0x59   : > { %p5123_p7 = scmp.ge.s32.totalorder %s6110_s7, 1  ;;  %p1123_p8 = scmp.lt.s32.totalorder %s6110_s7, 3 }
  0x5b   : > { %p1124_p9 = pnand %p5123_p7, %p1123_p8 }
  0x5c   : > { %s7198_s5 = sld [smem:[#allocation5_spill]] (!%p1124_p9)  ;;  %s5125_s26 = sshll.u32 (!%p1124_p9), %s6395_s0, 1 }
  0x5d   : > { %1127 = sbr.rel (%p1124_p9) target bundleno = 8121 (0x1fb9), region = 176  ;;  %p1233_p10 = scmp.lt.s32.totalorder (!%p1124_p9), %s5125_s26, 3 }
  0x5e   : > { %s7199_s3 = sld [smem:[#allocation8_spill]] (!%p1124_p9)  ;;  %s7151_s16 = smov (!%p1124_p9), 64  }
  0x5f   : > { %s7200_s8 = sld [smem:[#allocation9_spill]] (!%p1124_p9) }
  0x60   : > { %s7205_s6 = sld [smem:[#allocation10_spill]] (!%p1124_p9) }
  0x61   : > { %s7229_s9 = sld [smem:[#allocation34_spill]] (!%p1124_p9) }
  0x62   : > { %s7238_s26 = smov (!%p1233_p10, %s5125_s26), 3  ;;  %v5773_v6 = vld [vmem:[%s6197_s25 + $0x78] sm:$0xff]   ;;  %v5775_v22 = vld [vmem:[%s6197_s25 + $0x70] sm:$0xff]   ;;  %v5777_v24 = vld [vmem:[%s6197_s25 + $0x68] sm:$0xff]   ;;  %v1292_v42 = vlaneseq  ;;  %vm1501_vm0 = vcmask 392192   ;;  %vm6154_vm1 = vmmov 0  }
  0x63   : > { %s7150_s10 = sshll.u32 %s7238_s26, 4  ;;  %5317 = vmatprep.subr.bf16.mxu0 %v5773_v6  ;;  %v5774_v21 = vld [vmem:[%s6197_s25 + $0x38] sm:$0xff]   ;;  %v5776_v23 = vld [vmem:[%s6197_s25 + $0x30] sm:$0xff]   ;;  %v5778_v25 = vld [vmem:[%s6197_s25 + $0x28] sm:$0xff]   ;;  %vm1723_vm2 = vcmask 130048   ;;  %vm2237_vm3 = vcmask 261120  }
  0x64   : > { %s1237_s15 = scalar_lea.vmem %s7198_s5, %s7150_s10  ;;  %5318 = vmatpush3.bf16.msra.mxu0 %v5774_v21  ;;  %v5779_v26 = vld [vmem:[%s6197_s25 + $0x60] sm:$0xff]   ;;  %v5781_v28 = vld [vmem:[%s6197_s25 + $0x58] sm:$0xff]   ;;  %v5783_v30 = vld [vmem:[%s6197_s25 + $0x50] sm:$0xff]   ;;  %v1293_v43 = vshrl.u32 %v1292_v42, 7  ;;  %s7153_s10 = smov 48   ;;  %vm2273_vm4 = vcmask 523264  }
  0x65   : > { %v1252_v0 = vld [vmem:[%s1237_s15] sm:$0xff]  ;;  %v1253_v1 = vld [vmem:[%s1237_s15 + $0x8] sm:$0xff]  ;;  %v1254_v2 = vld [vmem:[%s1237_s15 + $0x10] sm:$0xff]  ;;  %5319 = vmatprep.subr.bf16.mxu0 %v5775_v22  ;;  %s7214_s5 = sld [smem:[#allocation19_spill]] }
  0x66   : > { %v1258_v3 = vadd.f32 %v1253_v1, %v1252_v0  ;;  %v1255_v4 = vld [vmem:[%s1237_s15 + $0x18] sm:$0xff]  ;;  %v5780_v27 = vld [vmem:[%s6197_s25 + $0x20] sm:$0xff]   ;;  %v5784_v31 = vld [vmem:[%s6197_s25 + $0x10] sm:$0xff]   ;;  %v6445_v44 = vsub.s32 0, %v1293_v43  ;;  %v6447_v45 = vsub.s32 1, %v1293_v43  ;;  %s7154_s15 = smov 112  }
  0x67   : > { %v1261_v5 = vadd.f32 %v1255_v4, %v1254_v2  ;;  %v5782_v29 = vld [vmem:[%s6197_s25 + $0x18] sm:$0xff]   ;;  %v5785_v32 = vld [vmem:[%s6197_s25 + $0x48] sm:$0xff]   ;;  %v5787_v34 = vld [vmem:[%s6197_s25 + $0x40] sm:$0xff]  }
  0x68   : > { %1259 = vadd.xlane.f32.xlu0 %v1258_v3  ;;  %5320 = vmatpush3.bf16.msra.mxu0 %v5776_v23  ;;  %v5786_v33 = vld [vmem:[%s6197_s25 + $0x8] sm:$0xff]   ;;  %v5788_v35 = vld [vmem:[%s6197_s25] sm:$0xff]  }
  0x69   : > { %5321 = vmatprep.subr.bf16.mxu0 %v5777_v24  ;;  %v1256_v46 = vld [vmem:[%s6187_s17] sm:$0x3]  ;;  %v1546_v42 = vld [vmem:[%s7194_s13 + $0x8] sm:$0xff] }
  0x6a   : > { %v1257_v48 = vld [vmem:[%s6192_s21] sm:$0x3]  ;;  %v1295_v50 = vrot.slane %v1256_v46, %v6445_v44  ;;  %v1299_v51 = vrot.slane %v1256_v46, %v6447_v45 }
  0x6b   : > { %v1310_v54 = vrot.slane %v1257_v48, %v6445_v44  ;;  %v1314_v55 = vrot.slane %v1257_v48, %v6447_v45  ;;  %v5132_v6 = vld [vmem:[%s6202_s29] ss:$0 sm:$0xff] }
  0x6c   : > { %1262 = vadd.xlane.f32.xlu0 %v1261_v5  ;;  %5322 = vmatpush3.bf16.msra.mxu0 %v5778_v25 }
  0x6d   : > { %5323 = vmatprep.subr.bf16.mxu0 %v5779_v26 }
  0x70   : > { %5324 = vmatpush3.bf16.msra.mxu0 %v5780_v27 }
  0x71   : > { %5325 = vmatprep.subr.bf16.mxu0 %v5781_v28 }
  0x74   : > { %5326 = vmatpush3.bf16.msra.mxu0 %v5782_v29 }
  0x75   : > { %5327 = vmatprep.subr.bf16.mxu0 %v5783_v30 }
  0x78   : > { %5328 = vmatpush3.bf16.msra.mxu0 %v5784_v31 }
  0x79   : > { %5329 = vmatprep.subr.bf16.mxu0 %v5785_v32  ;;  %v5149_v32 = vld [vmem:[%s7199_s3] ss:$0 sm:$0xff]  ;;  %s7213_s3 = sld [smem:[#allocation17_spill]] }
  0x7c   : > { %5330 = vmatpush3.bf16.msra.mxu0 %v5786_v33 }
  0x7d   : > { %5331 = vmatprep.subr.bf16.mxu0 %v5787_v34  ;;  %v5150_v34 = vld [vmem:[%s7200_s8] ss:$0 sm:$0xff]  ;;  %s7224_s8 = sld [smem:[#allocation29_spill]] }
  0x80   : > { %5332 = vmatpush3.bf16.msra.mxu0 %v5788_v35 }
  0xf1   : > { %v1260_v7 = vpop.xlane.xlu0 %1259 }
  0xf2   : > { %v1265_v8 = vmul.f32 0.00390625, %v1260_v7 }
  0xf4   : > { %v1267_v9 = vsub.f32 %v1252_v0, %v1265_v8  ;;  %v1268_v10 = vsub.f32 %v1253_v1, %v1265_v8 }
  0xf5   : > { %v1263_v11 = vpop.xlane.xlu0 %1262 }
  0xf6   : > { %v1266_v12 = vmul.f32 0.00390625, %v1263_v11  ;;  %v1271_v13 = vmul.f32 %v1267_v9, %v1267_v9  ;;  %v1272_v14 = vmul.f32 %v1268_v10, %v1268_v10 }
  0xf8   : > { %v1269_v15 = vsub.f32 %v1254_v2, %v1266_v12  ;;  %v1270_v16 = vsub.f32 %v1255_v4, %v1266_v12  ;;  %v1275_v17 = vadd.f32 %v1272_v14, %v1271_v13 }
  0xfa   : > { %1276 = vadd.xlane.f32.xlu1 %v1275_v17  ;;  %v1273_v18 = vmul.f32 %v1269_v15, %v1269_v15  ;;  %v1274_v19 = vmul.f32 %v1270_v16, %v1270_v16 }
  0xfc   : > { %v1278_v20 = vadd.f32 %v1274_v19, %v1273_v18 }
  0xfe   : > { %1279 = vadd.xlane.f32.xlu1 %v1278_v20 }
 0x183   : > { %v1277_v36 = vpop.xlane.xlu1 %1276 }
 0x184   : > { %v1281_v37 = vmul.f32 0.00390625, %v1277_v36 }
 0x186   : > { %v1283_v38 = vadd.f32 1e-05, %v1281_v37  ;;  %v1545_v37 = vld [vmem:[%s7194_s13] sm:$0xff] }
 0x187   : > { %v1280_v39 = vpop.xlane.xlu1 %1279 }
 0x188   : > { %5910 = vrsqrt.f32 %v1283_v38  ;;  %v1282_v40 = vmul.f32 0.00390625, %v1280_v39 }
 0x18a   : > { %v1284_v41 = vadd.f32 1e-05, %v1282_v40 }
 0x18c   : > { %5912 = vrsqrt.f32 %v1284_v41 }
 0x195   : > { %v5911_v47 = vpop.eup %5910 }
 0x196   : > { %v1288_v49 = vmul.f32 %v5911_v47, %v1268_v10  ;;  %v1287_v52 = vmul.f32 %v5911_v47, %v1267_v9 }
 0x198   : > { %v1303_v57 = vmul.f32 %v1299_v51, %v1288_v49  ;;  %v1302_v59 = vmul.f32 %v1295_v50, %v1287_v52 }
 0x199   : > { %v5913_v53 = vpop.eup %5912 }
 0x19a   : > { %v1290_v56 = vmul.f32 %v5913_v53, %v1270_v16  ;;  %v1289_v58 = vmul.f32 %v5913_v53, %v1269_v15  ;;  %v1318_v62 = vadd.f32 %v1314_v55, %v1303_v57  ;;  %v1317_v0 = vadd.f32 %v1310_v54, %v1302_v59  ;;  %v5789_v59 = vld [vmem:[%s6227_s24 + $0x24] ss:$8 sps:$4 sm:$0xff]  }
 0x19b   : > { %1686 = vmatprep.subr.bf16.mxu1 %v5789_v59 }
 0x19c   : > { %v1305_v60 = vmul.f32 %v1299_v51, %v1290_v56  ;;  %v1304_v61 = vmul.f32 %v1295_v50, %v1289_v58 }
 0x19e   : > { %v1320_v63 = vadd.f32 %v1314_v55, %v1305_v60  ;;  %v1319_v1 = vadd.f32 %v1310_v54, %v1304_v61  ;;  %v5791_v60 = vld [vmem:[%s6227_s24 + $0x20] ss:$8 sps:$4 sm:$0xff]   ;;  %v5792_v61 = vld [vmem:[%s6227_s24 + $0x14] ss:$8 sps:$4 sm:$0xff]  }
 0x19f   : > { %1687 = vmatpush1.bf16.msra.mxu1 %v5791_v60 }
 0x1a0   : > { %v1354_v2 = vpack.c.bf16 %v1320_v63, %v1318_v62  ;;  %v1353_v3 = vpack.c.bf16 %v1319_v1, %v1317_v0  ;;  %v5794_v62 = vld [vmem:[%s6227_s24 + $0x10] ss:$8 sps:$4 sm:$0xff]   ;;  %v6152_v63 = vmov 0   ;;  %1688 = vmatprep.subr.bf16.mxu1 %v5792_v61  ;;  %v5795_v0 = vld [vmem:[%s6227_s24 + $0x4] ss:$8 sps:$4 sm:$0xff]  }
 0x1a1   : > { %1708 = vmatprep.mubr.bf16.mxu1 %v6152_v63  ;;  %v5797_v1 = vld [vmem:[%s6227_s24] ss:$8 sps:$4 sm:$0xff]  }
 0x1a2   : > { %1490 = vmatprep.mubr.bf16.mxu0 %v1354_v2 }
 0x1a3   : > { %1491 = vmatmul.mubr.bf16.vlgmr.msra.gmra.mxu0 %v1353_v3  ;;  %1689 = vmatpush1.bf16.msra.mxu1 %v5794_v62 }
 0x1a4   : > { %1690 = vmatprep.subr.bf16.mxu1 %v5795_v0 }
 0x1a7   : > { %1691 = vmatpush1.bf16.msra.mxu1 %v5797_v1 }
 0x263   : > { %v5333_v4 = vpop.f32.mrf.mxu0 }
 0x265   : > { %v5334_v5 = vpop.f32.mrf.mxu0 }
 0x266   : > { %v5335_v7 = vadd.f32 %v5334_v5, %v5333_v4 }
 0x267   : > { %v5336_v8 = vpop.f32.mrf.mxu0 }
 0x268   : > { %v1493_v9 = vadd.f32 %v5335_v7, %v5132_v6 }
 0x269   : > { %v5337_v10 = vpop.f32.mrf.mxu0 }
 0x26a   : > { %v5338_v11 = vadd.f32 %v5337_v10, %v5336_v8  ;;  %v1502_v12 = vsel %vm1501_vm0, %v1493_v9, 0.0  ;;  %v5151_v10 = vld [vmem:[%s6217_s14] ss:$0 sm:$0xff] }
 0x26b   : > { %1503 = vadd.xlane.f32.xlu0 %v1502_v12 }
 0x26c   : > { %v1496_v13 = vadd.f32 %v5338_v11, %v5132_v6 }
 0x26e   : > { %v1505_v14 = vsel %vm1501_vm0, %v1496_v13, 0.0 }
 0x26f   : > { %1506 = vadd.xlane.f32.xlu1 %v1505_v14  ;;  %v5152_v14 = vld [vmem:[%s6222_s19] ss:$0 sm:$0xff] }
 0x2f4   : > { %v1504_v15 = vpop.xlane.xlu0 %1503 }
 0x2f5   : > { %v1509_v16 = vmul.f32 0.020833334, %v1504_v15 }
 0x2f7   : > { %v1511_v17 = vsub.f32 %v1493_v9, %v1509_v16 }
 0x2f8   : > { %v1507_v18 = vpop.xlane.xlu1 %1506 }
 0x2f9   : > { %v1510_v19 = vmul.f32 0.020833334, %v1507_v18  ;;  %v1513_v20 = vmul.f32 %v1511_v17, %v1511_v17 }
 0x2fb   : > { %v1512_v21 = vsub.f32 %v1496_v13, %v1510_v19  ;;  %v1515_v22 = vsel %vm1501_vm0, %v1513_v20, 0.0  ;;  %v6153_v19 = vmov 0.0  }
 0x2fc   : > { %1516 = vadd.xlane.f32.xlu0 %v1515_v22  ;;  %5452 = vmatprep.subr.bf16.mxu1 %v6153_v19 }
 0x2fd   : > { %v1514_v23 = vmul.f32 %v1512_v21, %v1512_v21  ;;  %5482 = vmatprep.subr.bf16.mxu0 %v6153_v19  ;;  %5484 = vmatprep.mubr.msk.bf16.mxu0 %vm6154_vm1, %v6153_v19 }
 0x2ff   : > { %v1518_v24 = vsel %vm1501_vm0, %v1514_v23, 0.0 }
 0x300   : > { %1519 = vadd.xlane.f32.xlu1 %v1518_v24 }
 0x385   : > { %v1517_v25 = vpop.xlane.xlu0 %1516 }
 0x386   : > { %v1521_v26 = vmul.f32 0.020833334, %v1517_v25 }
 0x388   : > { %v1523_v27 = vadd.f32 1e-05, %v1521_v26 }
 0x389   : > { %v1520_v28 = vpop.xlane.xlu1 %1519 }
 0x38a   : > { %5914 = vrsqrt.f32 %v1523_v27  ;;  %v1522_v29 = vmul.f32 0.020833334, %v1520_v28 }
 0x38c   : > { %v1524_v30 = vadd.f32 1e-05, %v1522_v29 }
 0x38e   : > { %5916 = vrsqrt.f32 %v1524_v30 }
 0x397   : > { %v5915_v31 = vpop.eup %5914 }
 0x398   : > { %v1527_v33 = vmul.f32 %v5915_v31, %v1511_v17 }
 0x39a   : > { %v1535_v35 = vmul.f32 %v5149_v32, %v1527_v33 }
 0x39b   : > { %v5917_v36 = vpop.eup %5916 }
 0x39c   : > { %v1543_v38 = vadd.f32 %v5150_v34, %v1535_v35  ;;  %v1528_v39 = vmul.f32 %v5917_v36, %v1512_v21 }
 0x39e   : > { %v6463_v40 = vadd.f32 %v1545_v37, %v1543_v38  ;;  %v1536_v41 = vmul.f32 %v5149_v32, %v1528_v39 }
 0x3a0   : > { %v1600_v43 = vsel %vm1501_vm0, %v6463_v40, 0.0  ;;  %v1544_v46 = vadd.f32 %v5150_v34, %v1536_v41 }
 0x3a1   : > { %1601 = vadd.xlane.f32.xlu0 %v1600_v43 }
 0x3a2   : > { %v6468_v47 = vadd.f32 %v1546_v42, %v1544_v46 }
 0x3a4   : > { %v1603_v48 = vsel %vm1501_vm0, %v6468_v47, 0.0 }
 0x3a5   : > { %1604 = vadd.xlane.f32.xlu1 %v1603_v48 }
 0x42a   : > { %v1602_v49 = vpop.xlane.xlu0 %1601 }
 0x42b   : > { %v1606_v50 = vmul.f32 0.020833334, %v1602_v49 }
 0x42d   : > { %v1608_v51 = vsub.f32 %v6463_v40, %v1606_v50 }
 0x42e   : > { %v1605_v52 = vpop.xlane.xlu1 %1604 }
 0x42f   : > { %v1607_v53 = vmul.f32 0.020833334, %v1605_v52  ;;  %v1610_v54 = vmul.f32 %v1608_v51, %v1608_v51 }
 0x431   : > { %v1609_v55 = vsub.f32 %v6468_v47, %v1607_v53  ;;  %v1612_v56 = vsel %vm1501_vm0, %v1610_v54, 0.0 }
 0x432   : > { %1613 = vadd.xlane.f32.xlu0 %v1612_v56 }
 0x433   : > { %v1611_v57 = vmul.f32 %v1609_v55, %v1609_v55 }
 0x435   : > { %v1615_v58 = vsel %vm1501_vm0, %v1611_v57, 0.0 }
 0x436   : > { %1616 = vadd.xlane.f32.xlu1 %v1615_v58 }
 0x4bb   : > { %v1614_v2 = vpop.xlane.xlu0 %1613 }
 0x4bc   : > { %v1618_v3 = vmul.f32 0.020833334, %v1614_v2 }
 0x4be   : > { %v1620_v4 = vadd.f32 1e-05, %v1618_v3 }
 0x4bf   : > { %v1617_v5 = vpop.xlane.xlu1 %1616 }
 0x4c0   : > { %5918 = vrsqrt.f32 %v1620_v4  ;;  %v1619_v6 = vmul.f32 0.020833334, %v1617_v5 }
 0x4c2   : > { %v1621_v7 = vadd.f32 1e-05, %v1619_v6 }
 0x4c4   : > { %5920 = vrsqrt.f32 %v1621_v7 }
 0x4cd   : > { %v5919_v8 = vpop.eup %5918 }
 0x4ce   : > { %v1624_v9 = vmul.f32 %v5919_v8, %v1608_v51 }
 0x4d0   : > { %v1632_v13 = vmul.f32 %v5151_v10, %v1624_v9 }
 0x4d1   : > { %v5921_v11 = vpop.eup %5920 }
 0x4d2   : > { %v1625_v12 = vmul.f32 %v5921_v11, %v1609_v55  ;;  %v1640_v16 = vadd.f32 %v5152_v14, %v1632_v13 }
 0x4d4   : > { %v1633_v15 = vmul.f32 %v5151_v10, %v1625_v12 }
 0x4d6   : > { %v1641_v17 = vadd.f32 %v5152_v14, %v1633_v15 }
 0x4d8   : > { %v1642_v18 = vpack.c.bf16 %v1641_v17, %v1640_v16 }
 0x4da   : > { %5159 = vmatmul.mubr.msk.bf16.vlgmr.msra.gmra.mxu1 %vm1501_vm0, %v1642_v18 }
 0x4db   : > { %5454 = vmatprep.mubr.msk.bf16.mxu1 %vm6154_vm1, %v6153_v19 }
 0x59a   : > { %v1710_v20 = vpop.f32.mrf.mxu1 }
 0x59c   : > { %v1712_v21 = vpop.f32.mrf.mxu1 }
 0x59e   : > { %v1714_v22 = vpop.f32.mrf.mxu1 }
 0x59f   : > { %v6492_v23 = vpack.c.bf16 %v1714_v22, %v1710_v20 }
 0x5a0   : > { %v1716_v26 = vpop.f32.mrf.mxu1 }
 0x5a1   : > { %1721 = vrot.lane.b32.xlu0 %v6492_v23, %s7151_s16  ;;  %v6500_v27 = vpack.c.bf16 %v1716_v26, %v1712_v21  ;;  %s7155_s16 = smov 32  }
 0x5a5   : > { %1841 = vrot.lane.b32.xlu0 %v6492_v23, %s7154_s15  ;;  %s6160_s15 = smov 80  }
 0x613   : > { %v1722_v24 = vpop.permute.xlu0 %1721 }
 0x614   : > { %v1728_v25 = vsel %vm1723_vm2, %v1722_v24, 0 }
 0x615   : > { %5453 = vmatpush3.bf16.xpose.msra.mxu1 %v1728_v25 }
 0x616   : > { %5458 = vmatprep.subr.bf16.mxu1 %v6153_v19 }
 0x617   : > { %v1842_v59 = vpop.permute.xlu0 %1841 }
 0x61c   : > { %5455 = vmatmul.mubr.msk.bf16.vlgmr.msra.gmra.mxu1 %vm1723_vm2, %v6492_v23 }
 0x61d   : > { %5459 = vmatpush3.bf16.msra.mxu1 %v6500_v27  ;;  %5460 = vmatprep.mubr.msk.bf16.mxu1 %vm6154_vm1, %v6153_v19 }
 0x61e   : > { %5464 = vmatprep.subr.bf16.mxu1 %v6153_v19 }
 0x6dc   : > { %v1764_v28 = vpop.f32.mrf.mxu1 }
 0x6dd   : > { %v1771_v29 = vmul.f32 0.25, %v1764_v28 }
 0x6de   : > { %v5456_v30 = vpop.f32.mrf.mxu1 }
 0x6df   : > { %v1773_v31 = vsel %vm1723_vm2, %v1771_v29, -inf }
 0x6e0   : > { %1774 = vmax.xlane.f32.xlu1 %v1773_v31  ;;  %v1767_v32 = vpop.f32.mrf.mxu1 }
 0x6e1   : > { %v1772_v33 = vmul.f32 0.25, %v1767_v32 }
 0x6e2   : > { %v5457_v34 = vpop.f32.mrf.mxu1 }
 0x6e3   : > { %v1776_v35 = vsel %vm1723_vm2, %v1772_v33, -inf }
 0x6e4   : > { %1777 = vmax.xlane.f32.xlu1 %v1776_v35 }
 0x769   : > { %v1775_v36 = vpop.xlane.xlu1 %1774 }
 0x76a   : > { %v1779_v37 = vsub.f32 %v1771_v29, %v1775_v36 }
 0x76c   : > { %v1781_v38 = vmul.f32 1.442695, %v1779_v37 }
 0x76d   : > { %v1778_v39 = vpop.xlane.xlu1 %1777 }
 0x76e   : > { %5922 = vpow2.f32 %v1781_v38  ;;  %v1780_v41 = vsub.f32 %v1772_v33, %v1778_v39 }
 0x770   : > { %v1783_v42 = vmul.f32 1.442695, %v1780_v41 }
 0x772   : > { %5924 = vpow2.f32 %v1783_v42 }
 0x77b   : > { %v5923_v43 = vpop.eup %5922 }
 0x77c   : > { %v1785_v46 = vsel %vm1723_vm2, %v5923_v43, 0.0 }
 0x77d   : > { %1786 = vadd.xlane.f32.xlu1 %v1785_v46 }
 0x77f   : > { %v5925_v48 = vpop.eup %5924 }
 0x780   : > { %v1788_v49 = vsel %vm1723_vm2, %v5925_v48, 0.0 }
 0x781   : > { %1789 = vadd.xlane.f32.xlu1 %v1788_v49 }
 0x792   : > { %1843 = vrot.lane.b32.xlu1 %v6492_v23, %s7153_s10  ;;  %s7156_s10 = smov 96  }
 0x806   : > { %v1787_v50 = vpop.xlane.xlu1 %1786 }
 0x807   : > { %5926 = vrcp.f32 %v1787_v50 }
 0x80a   : > { %v1790_v51 = vpop.xlane.xlu1 %1789 }
 0x80b   : > { %5928 = vrcp.f32 %v1790_v51 }
 0x80e   : > { %v1844_v56 = vpop.permute.xlu1 %1843 }
 0x80f   : > { %v1849_v58 = vsel %vm1723_vm2, %v1844_v56, 0 }
 0x814   : > { %v5927_v52 = vpop.eup %5926 }
 0x815   : > { %v1793_v54 = vmul.f32 %v5927_v52, %v5923_v43 }
 0x818   : > { %v5929_v53 = vpop.eup %5928 }
 0x819   : > { %v1794_v55 = vmul.f32 %v5929_v53, %v5925_v48 }
 0x81b   : > { %v1795_v57 = vpack.c.bf16 %v1794_v55, %v1793_v54 }
 0x81d   : > { %5461 = vmatmul.mubr.msk.bf16.vlgmr.msra.gmra.mxu1 %vm1723_vm2, %v1795_v57 }
 0x81e   : > { %5465 = vmatpush3.bf16.xpose.msra.mxu1 %v1849_v58  ;;  %5466 = vmatprep.mubr.msk.bf16.mxu1 %vm6154_vm1, %v6153_v19 }
 0x81f   : > { %5470 = vmatprep.subr.bf16.mxu1 %v6153_v19 }
 0x825   : > { %5467 = vmatmul.mubr.msk.bf16.vlgmr.msra.gmra.mxu1 %vm1723_vm2, %v1842_v59 }
 0x826   : > { %5472 = vmatprep.mubr.msk.bf16.mxu1 %vm6154_vm1, %v6153_v19 }
 0x8dd   : > { %v6522_v60 = vpop.f32.mrf.mxu1 }
 0x8df   : > { %v5462_v61 = vpop.f32.mrf.mxu1 }
 0x8e1   : > { %v6524_v62 = vpop.f32.mrf.mxu1 }
 0x8e3   : > { %v5463_v0 = vpop.f32.mrf.mxu1 }
 0x8e5   : > { %v1885_v1 = vpop.f32.mrf.mxu1 }
 0x8e6   : > { %v1892_v2 = vmul.f32 0.25, %v1885_v1 }
 0x8e7   : > { %v5468_v3 = vpop.f32.mrf.mxu1 }
 0x8e8   : > { %v1894_v4 = vsel %vm1723_vm2, %v1892_v2, -inf }
 0x8e9   : > { %1895 = vmax.xlane.f32.xlu0 %v1894_v4  ;;  %v1888_v5 = vpop.f32.mrf.mxu1 }
 0x8ea   : > { %v1893_v6 = vmul.f32 0.25, %v1888_v5 }
 0x8eb   : > { %v5469_v7 = vpop.f32.mrf.mxu1 }
 0x8ec   : > { %v1897_v8 = vsel %vm1723_vm2, %v1893_v6, -inf }
 0x8ed   : > { %1898 = vmax.xlane.f32.xlu1 %v1897_v8 }
 0x8fe   : > { %1967 = vrot.lane.b32.xlu1 %v6492_v23, %s7155_s16  ;;  %s7201_s16 = smov 112  }
 0x902   : > { %1965 = vrot.lane.b32.xlu1 %v6492_v23, %s7156_s10  ;;  %s7157_s10 = smov 16  }
 0x906   : > { %2088 = vrot.lane.b32.xlu1 %v6492_v23, %s6160_s15 }
 0x972   : > { %v1896_v9 = vpop.xlane.xlu0 %1895 }
 0x973   : > { %v1900_v10 = vsub.f32 %v1892_v2, %v1896_v9 }
 0x975   : > { %v1902_v11 = vmul.f32 1.442695, %v1900_v10 }
 0x976   : > { %v1899_v12 = vpop.xlane.xlu1 %1898 }
 0x977   : > { %5930 = vpow2.f32 %v1902_v11  ;;  %v1901_v13 = vsub.f32 %v1893_v6, %v1899_v12 }
 0x979   : > { %v1904_v14 = vmul.f32 1.442695, %v1901_v13 }
 0x97a   : > { %v1968_v29 = vpop.permute.xlu1 %1967 }
 0x97b   : > { %5932 = vpow2.f32 %v1904_v14  ;;  %v1973_v31 = vsel %vm1723_vm2, %v1968_v29, 0 }
 0x97e   : > { %v1966_v32 = vpop.permute.xlu1 %1965 }
 0x982   : > { %v2089_v34 = vpop.permute.xlu1 %2088 }
 0x984   : > { %v5931_v15 = vpop.eup %5930 }
 0x985   : > { %v1906_v16 = vsel %vm1723_vm2, %v5931_v15, 0.0 }
 0x986   : > { %1907 = vadd.xlane.f32.xlu0 %v1906_v16 }
 0x988   : > { %v5933_v17 = vpop.eup %5932 }
 0x989   : > { %v1909_v18 = vsel %vm1723_vm2, %v5933_v17, 0.0 }
 0x98a   : > { %1910 = vadd.xlane.f32.xlu0 %v1909_v18 }
 0x9a0   : > { %1918 = vrot.lane.b32.xlu0 %v6500_v27, %s7201_s16  ;;  %s7202_s16 = smov 96  }
 0x9a4   : > { %2090 = vrot.lane.b32.xlu0 %v6492_v23, %s7157_s10 }
 0xa0f   : > { %v1908_v20 = vpop.xlane.xlu0 %1907 }
 0xa10   : > { %5934 = vrcp.f32 %v1908_v20 }
 0xa13   : > { %v1911_v21 = vpop.xlane.xlu0 %1910 }
 0xa14   : > { %5936 = vrcp.f32 %v1911_v21 }
 0xa17   : > { %v1919_v22 = vpop.permute.xlu0 %1918 }
 0xa18   : > { %5471 = vmatpush3.bf16.msra.mxu1 %v1919_v22 }
 0xa19   : > { %5476 = vmatprep.subr.bf16.mxu1 %v6153_v19 }
 0xa1b   : > { %v2091_v23 = vpop.permute.xlu0 %2090 }
 0xa1c   : > { %v2096_v33 = vsel %vm1723_vm2, %v2091_v23, 0 }
 0xa1d   : > { %v5935_v24 = vpop.eup %5934 }
 0xa1e   : > { %v1914_v26 = vmul.f32 %v5935_v24, %v5931_v15 }
 0xa21   : > { %v5937_v25 = vpop.eup %5936 }
 0xa22   : > { %v1915_v28 = vmul.f32 %v5937_v25, %v5933_v17 }
 0xa24   : > { %v1916_v30 = vpack.c.bf16 %v1915_v28, %v1914_v26 }
 0xa26   : > { %5473 = vmatmul.mubr.msk.bf16.vlgmr.msra.gmra.mxu1 %vm1723_vm2, %v1916_v30 }
 0xa27   : > { %5477 = vmatpush3.bf16.xpose.msra.mxu1 %v1973_v31  ;;  %5478 = vmatprep.mubr.msk.bf16.mxu1 %vm6154_vm1, %v6153_v19 }
 0xa28   : > { %5488 = vmatprep.subr.bf16.mxu1 %v6153_v19 }
 0xa2e   : > { %5479 = vmatmul.mubr.msk.bf16.vlgmr.msra.gmra.mxu1 %vm1723_vm2, %v1966_v32 }
 0xa2f   : > { %5489 = vmatpush3.bf16.xpose.msra.mxu1 %v2096_v33  ;;  %5490 = vmatprep.mubr.msk.bf16.mxu1 %vm6154_vm1, %v6153_v19 }
 0xa30   : > { %5500 = vmatprep.subr.bf16.mxu1 %v6153_v19 }
 0xa36   : > { %5491 = vmatmul.mubr.msk.bf16.vlgmr.msra.gmra.mxu1 %vm1723_vm2, %v2089_v34 }
 0xa37   : > { %5508 = vmatprep.mubr.msk.bf16.mxu1 %vm6154_vm1, %v6153_v19 }
 0xae6   : > { %v1958_v35 = vpop.f32.mrf.mxu1 }
 0xae8   : > { %v5474_v36 = vpop.f32.mrf.mxu1 }
 0xae9   : > { %v5798_v36 = vld [vmem:[%s6232_s30 + $0x18] sm:$0xff]  }
 0xaea   : > { %v1961_v37 = vpop.f32.mrf.mxu1  ;;  %5501 = vmatpush3.bf16.msra.mxu1 %v5798_v36 }
 0xaeb   : > { %v5738_v38 = vpack.i.bf16 %v1961_v37, %v1958_v35  ;;  %5502 = vmatprep.subr.bf16.mxu1 %v6153_v19  ;;  %v5799_v37 = vld [vmem:[%s6232_s30 + $0x10] sm:$0xff]  }
 0xaec   : > { %v5475_v39 = vpop.f32.mrf.mxu1 }
 0xaee   : > { %v2009_v41 = vpop.f32.mrf.mxu1  ;;  %5503 = vmatpush3.bf16.msra.mxu1 %v5799_v37 }
 0xaef   : > { %v2016_v42 = vmul.f32 0.25, %v2009_v41  ;;  %5504 = vmatprep.subr.bf16.mxu1 %v6153_v19 }
 0xaf0   : > { %v5480_v43 = vpop.f32.mrf.mxu1 }
 0xaf1   : > { %v2018_v46 = vsel %vm1723_vm2, %v2016_v42, -inf }
 0xaf2   : > { %2019 = vmax.xlane.f32.xlu0 %v2018_v46  ;;  %v2012_v48 = vpop.f32.mrf.mxu1 }
 0xaf3   : > { %v2017_v49 = vmul.f32 0.25, %v2012_v48 }
 0xaf4   : > { %v5481_v50 = vpop.f32.mrf.mxu1 }
 0xaf5   : > { %v2021_v51 = vsel %vm1723_vm2, %v2017_v49, -inf }
 0xaf6   : > { %2022 = vmax.xlane.f32.xlu1 %v2021_v51  ;;  %v2132_v52 = vpop.f32.mrf.mxu1 }
 0xaf7   : > { %v2139_v53 = vmul.f32 0.25, %v2132_v52 }
 0xaf8   : > { %v5492_v54 = vpop.f32.mrf.mxu1 }
 0xaf9   : > { %v2141_v55 = vsel %vm1723_vm2, %v2139_v53, -inf }
 0xafa   : > { %2142 = vmax.xlane.f32.xlu0 %v2141_v55  ;;  %v2135_v56 = vpop.f32.mrf.mxu1 }
 0xafb   : > { %v2140_v57 = vmul.f32 0.25, %v2135_v56 }
 0xafc   : > { %v5493_v58 = vpop.f32.mrf.mxu1 }
 0xafd   : > { %v2144_v59 = vsel %vm1723_vm2, %v2140_v57, -inf }
 0xafe   : > { %2145 = vmax.xlane.f32.xlu0 %v2144_v59 }
 0xb7b   : > { %v2020_v61 = vpop.xlane.xlu0 %2019 }
 0xb7c   : > { %v2024_v0 = vsub.f32 %v2016_v42, %v2020_v61  ;;  %v5801_v42 = vld [vmem:[%s6232_s30] sm:$0xff]  }
 0xb7e   : > { %v2026_v1 = vmul.f32 1.442695, %v2024_v0 }
 0xb7f   : > { %v2023_v2 = vpop.xlane.xlu1 %2022 }
 0xb80   : > { %5938 = vpow2.f32 %v2026_v1  ;;  %v2025_v3 = vsub.f32 %v2017_v49, %v2023_v2 }
 0xb82   : > { %v2028_v4 = vmul.f32 1.442695, %v2025_v3 }
 0xb83   : > { %v2143_v5 = vpop.xlane.xlu0 %2142 }
 0xb84   : > { %5940 = vpow2.f32 %v2028_v4  ;;  %v2147_v6 = vsub.f32 %v2139_v53, %v2143_v5 }
 0xb86   : > { %v2149_v7 = vmul.f32 1.442695, %v2147_v6 }
 0xb87   : > { %v2146_v8 = vpop.xlane.xlu0 %2145 }
 0xb88   : > { %5942 = vpow2.f32 %v2149_v7  ;;  %v2148_v9 = vsub.f32 %v2140_v57, %v2146_v8 }
 0xb8a   : > { %v2151_v10 = vmul.f32 1.442695, %v2148_v9 }
 0xb8c   : > { %5944 = vpow2.f32 %v2151_v10 }
 0xb8d   : > { %v5939_v11 = vpop.eup %5938 }
 0xb8e   : > { %v2030_v12 = vsel %vm1723_vm2, %v5939_v11, 0.0 }
 0xb8f   : > { %2031 = vadd.xlane.f32.xlu0 %v2030_v12 }
 0xb91   : > { %v5941_v13 = vpop.eup %5940 }
 0xb92   : > { %v2033_v14 = vsel %vm1723_vm2, %v5941_v13, 0.0 }
 0xb93   : > { %2034 = vadd.xlane.f32.xlu1 %v2033_v14 }
 0xb95   : > { %v5943_v15 = vpop.eup %5942 }
 0xb96   : > { %v2153_v16 = vsel %vm1723_vm2, %v5943_v15, 0.0 }
 0xb97   : > { %2154 = vadd.xlane.f32.xlu0 %v2153_v16 }
 0xb99   : > { %v5945_v17 = vpop.eup %5944 }
 0xb9a   : > { %v2156_v18 = vsel %vm1723_vm2, %v5945_v17, 0.0 }
 0xb9b   : > { %2157 = vadd.xlane.f32.xlu1 %v2156_v18 }
 0xbac   : > { %2164 = vrot.lane.b32.xlu1 %v6500_v27, %s6160_s15  ;;  %s7203_s15 = smov 32  }
 0xbad   : > { %2041 = vrot.lane.b32.xlu0 %v6500_v27, %s7202_s16  ;;  %s7204_s16 = smov 48  }
 0xbb0   : > { %5739 = vrot.lane.b32.xlu1 %v5738_v38, %s7157_s10  ;;  %v5800_v38 = vld [vmem:[%s6232_s30 + $0x8] sm:$0xff]   ;;  %s7208_s10 = sld [smem:[#allocation14_spill]] }
 0xbb1   : > { %5505 = vmatpush3.bf16.msra.mxu1 %v5800_v38 }
 0xbb2   : > { %5506 = vmatprep.subr.bf16.mxu1 %v6153_v19 }
 0xbb5   : > { %5507 = vmatpush3.bf16.msra.mxu1 %v5801_v42 }
 0xbb6   : > { %5512 = vmatprep.subr.bf16.mxu1 %v6153_v19 }
 0xc18   : > { %v2032_v20 = vpop.xlane.xlu0 %2031 }
 0xc19   : > { %5946 = vrcp.f32 %v2032_v20 }
 0xc1c   : > { %v2035_v21 = vpop.xlane.xlu1 %2034 }
 0xc1d   : > { %5948 = vrcp.f32 %v2035_v21 }
 0xc20   : > { %v2155_v22 = vpop.xlane.xlu0 %2154 }
 0xc21   : > { %5950 = vrcp.f32 %v2155_v22 }
 0xc24   : > { %v2158_v24 = vpop.xlane.xlu1 %2157  ;;  %v2042_v25 = vpop.permute.xlu0 %2041 }
 0xc25   : > { %5952 = vrcp.f32 %v2158_v24  ;;  %5483 = vmatpush3.bf16.msra.mxu0 %v2042_v25 }
 0xc26   : > { %5494 = vmatprep.subr.bf16.mxu0 %v6153_v19  ;;  %v5947_v26 = vpop.eup %5946 }
 0xc27   : > { %v2038_v29 = vmul.f32 %v5947_v26, %v5939_v11 }
 0xc28   : > { %v2165_v31 = vpop.permute.xlu1 %2164 }
 0xc2a   : > { %v5949_v28 = vpop.eup %5948 }
 0xc2b   : > { %v2039_v30 = vmul.f32 %v5949_v28, %v5941_v13 }
 0xc2c   : > { %v5740_v54 = vpop.permute.xlu1 %5739 }
 0xc2d   : > { %v2040_v27 = vpack.c.bf16 %v2039_v30, %v2038_v29  ;;  %v5742_v56 = vunpack.i.h.bf16 %v5740_v54  ;;  %v5741_v57 = vunpack.i.l.bf16 %v5740_v54  ;;  %v5804_v29 = vld [vmem:[%s6252_s27 + $0x24] ss:$8 sps:$4 sm:$0xff]   ;;  %v5802_v30 = vld [vmem:[%s6252_s27 + $0x20] ss:$8 sps:$4 sm:$0xff]  }
 0xc2e   : > { %v5951_v23 = vpop.eup %5950 }
 0xc2f   : > { %5485 = vmatmul.mubr.msk.bf16.vlgmr.msra.gmra.mxu0 %vm1723_vm2, %v2040_v27  ;;  %v2161_v33 = vmul.f32 %v5951_v23, %v5943_v15  ;;  %v2236_v0 = vsel %vm1723_vm2, %v6524_v62, %v5742_v56  ;;  %v2235_v1 = vsel %vm1723_vm2, %v6522_v60, %v5741_v57  ;;  %v5168_v62 = vld [vmem:[%s7205_s6] ss:$0 sm:$0xff]  ;;  %v5807_v27 = vld [vmem:[%s6252_s27 + $0x14] ss:$8 sps:$4 sm:$0xff]   ;;  %v5810_v23 = vld [vmem:[%s6252_s27 + $0x4] ss:$8 sps:$4 sm:$0xff]  }
 0xc30   : > { %5495 = vmatpush3.bf16.msra.mxu0 %v2165_v31  ;;  %5496 = vmatprep.mubr.msk.bf16.mxu0 %vm6154_vm1, %v6153_v19  ;;  %v5805_v31 = vld [vmem:[%s6252_s27 + $0x10] ss:$8 sps:$4 sm:$0xff]   ;;  %v5813_v56 = vld [vmem:[%s7208_s10 + $0x28] sm:$0xff]   ;;  %v5814_v57 = vld [vmem:[%s7208_s10 + $0x20] sm:$0xff]   ;;  %s7223_s6 = sld [smem:[#allocation26_spill]] }
 0xc31   : > { %2417 = vmatprep.subr.bf16.mxu0 %v5804_v29 }
 0xc32   : > { %v5953_v32 = vpop.eup %5952 }
 0xc33   : > { %v2162_v34 = vmul.f32 %v5953_v32, %v5945_v17  ;;  %v5808_v32 = vld [vmem:[%s6252_s27] ss:$8 sps:$4 sm:$0xff]  }
 0xc35   : > { %v2163_v35 = vpack.c.bf16 %v2162_v34, %v2161_v33 }
 0xc37   : > { %5497 = vmatmul.mubr.msk.bf16.vlgmr.msra.gmra.mxu0 %vm1723_vm2, %v2163_v35 }
 0xc38   : > { %2439 = vmatprep.mubr.bf16.mxu0 %v6152_v63  ;;  %2418 = vmatpush1.bf16.msra.mxu0 %v5802_v30 }
 0xc39   : > { %2419 = vmatprep.subr.bf16.mxu0 %v5807_v27 }
 0xc3c   : > { %2420 = vmatpush1.bf16.msra.mxu0 %v5805_v31 }
 0xc3d   : > { %2421 = vmatprep.subr.bf16.mxu0 %v5810_v23 }
 0xc40   : > { %2422 = vmatpush1.bf16.msra.mxu0 %v5808_v32 }
 0xc41   : > { %2563 = vmatprep.subr.bf16.mxu0 %v6152_v63 }
 0xcef   : > { %v2081_v39 = vpop.f32.mrf.mxu0 }
 0xcf1   : > { %v5486_v41 = vpop.f32.mrf.mxu0 }
 0xcf3   : > { %v2084_v43 = vpop.f32.mrf.mxu0 }
 0xcf4   : > { %v5743_v46 = vpack.i.bf16 %v2084_v43, %v2081_v39 }
 0xcf5   : > { %v5487_v48 = vpop.f32.mrf.mxu0 }
 0xcf6   : > { %5744 = vrot.lane.b32.xlu1 %v5743_v46, %s7203_s15  ;;  %s7206_s15 = sld [smem:[#allocation11_spill]] }
 0xcf7   : > { %v2204_v49 = vpop.f32.mrf.mxu0 }
 0xcf9   : > { %v5498_v50 = vpop.f32.mrf.mxu0 }
 0xcfb   : > { %v2207_v51 = vpop.f32.mrf.mxu0 }
 0xcfc   : > { %v5748_v52 = vpack.i.bf16 %v2207_v51, %v2204_v49  ;;  %v5174_v42 = vld [vmem:[%s7206_s15] ss:$0 sm:$0xff]  ;;  %s7209_s15 = sld [smem:[#allocation13_spill]] }
 0xcfd   : > { %v5499_v53 = vpop.f32.mrf.mxu0 }
 0xcfe   : > { %5749 = vrot.lane.b32.xlu0 %v5748_v52, %s7204_s16  ;;  %s7207_s16 = sld [smem:[#allocation12_spill]]  ;;  %v5811_v53 = vld [vmem:[%s7208_s10 + $0x38] sm:$0xff]  }
 0xd04   : > { %v5175_v49 = vld [vmem:[%s7207_s16] ss:$0 sm:$0xff]  ;;  %s7210_s16 = sld [smem:[#allocation15_spill]] }
 0xd68   : > { %v5745_v55 = vpop.permute.xlu1 %5744 }
 0xd69   : > { %v5747_v58 = vunpack.i.h.bf16 %v5745_v55  ;;  %v5746_v59 = vunpack.i.l.bf16 %v5745_v55  ;;  %v5812_v55 = vld [vmem:[%s7208_s10 + $0x30] sm:$0xff]  }
 0xd6b   : > { %v2239_v4 = vsel %vm2237_vm3, %v2236_v0, %v5747_v58  ;;  %v2238_v5 = vsel %vm2237_vm3, %v2235_v1, %v5746_v59  ;;  %v5815_v58 = vld [vmem:[%s7208_s10 + $0x18] sm:$0xff]   ;;  %v5816_v59 = vld [vmem:[%s7208_s10 + $0x10] sm:$0xff]   ;;  %v5818_v0 = vld [vmem:[%s7208_s10] sm:$0xff]  }
 0xd6c   : > { %v5819_v1 = vld [vmem:[%s7208_s10 + $0x58] sm:$0xff]  }
 0xd70   : > { %v5750_v61 = vpop.permute.xlu0 %5749 }
 0xd71   : > { %v5752_v2 = vunpack.i.h.bf16 %v5750_v61  ;;  %v5751_v3 = vunpack.i.l.bf16 %v5750_v61  ;;  %v5817_v61 = vld [vmem:[%s7208_s10 + $0x8] sm:$0xff]  }
 0xd73   : > { %v2241_v6 = vsel %vm1501_vm0, %v2239_v4, %v5752_v2  ;;  %v2240_v7 = vsel %vm1501_vm0, %v2238_v5, %v5751_v3  ;;  %v5820_v2 = vld [vmem:[%s7208_s10 + $0x50] sm:$0xff]   ;;  %v5821_v3 = vld [vmem:[%s7208_s10 + $0x48] sm:$0xff]   ;;  %v5822_v4 = vld [vmem:[%s7208_s10 + $0x40] sm:$0xff]  }
 0xd74   : > { %v2242_v8 = vpack.c.bf16 %v2241_v6, %v2240_v7  ;;  %v1574_v5 = vld [vmem:[%s7209_s15] sm:$0x3]  ;;  %s7211_s15 = sld [smem:[#allocation18_spill]] }
 0xd75   : > { %v2367_v6 = vrot.slane %v1574_v5, %v6445_v44  ;;  %v2371_v7 = vrot.slane %v1574_v5, %v6447_v45 }
 0xd76   : > { %5509 = vmatmul.mubr.msk.bf16.vlgmr.msra.gmra.mxu1 %vm2273_vm4, %v2242_v8 }
 0xd77   : > { %5518 = vmatprep.mubr.msk.bf16.mxu1 %vm6154_vm1, %v6153_v19 }
 0xe36   : > { %v2311_v9 = vpop.f32.mrf.mxu1 }
 0xe37   : > { %v2312_v60 = vadd.f32 %v5168_v62, %v2311_v9 }
 0xe38   : > { %v5510_v10 = vpop.f32.mrf.mxu1 }
 0xe39   : > { %v6596_v11 = vadd.f32 %v2312_v60, %v6463_v40 }
 0xe3a   : > { %v2314_v12 = vpop.f32.mrf.mxu1 }
 0xe3b   : > { %v2315_v13 = vadd.f32 %v5168_v62, %v2314_v12  ;;  %v2320_v14 = vsel %vm1501_vm0, %v6596_v11, 0.0 }
 0xe3c   : > { %2321 = vadd.xlane.f32.xlu1 %v2320_v14  ;;  %v5511_v15 = vpop.f32.mrf.mxu1 }
 0xe3d   : > { %v6601_v16 = vadd.f32 %v2315_v13, %v6468_v47 }
 0xe3f   : > { %v2323_v17 = vsel %vm1501_vm0, %v6601_v16, 0.0 }
 0xe40   : > { %2324 = vadd.xlane.f32.xlu0 %v2323_v17 }
 0xec5   : > { %v2322_v18 = vpop.xlane.xlu1 %2321 }
 0xec6   : > { %v2326_v40 = vmul.f32 0.020833334, %v2322_v18 }
 0xec8   : > { %v2328_v20 = vsub.f32 %v6596_v11, %v2326_v40 }
 0xec9   : > { %v2325_v21 = vpop.xlane.xlu0 %2324 }
 0xeca   : > { %v2327_v22 = vmul.f32 0.020833334, %v2325_v21  ;;  %v2330_v24 = vmul.f32 %v2328_v20, %v2328_v20 }
 0xecc   : > { %v2329_v25 = vsub.f32 %v6601_v16, %v2327_v22  ;;  %v2332_v47 = vsel %vm1501_vm0, %v2330_v24, 0.0 }
 0xecd   : > { %2333 = vadd.xlane.f32.xlu0 %v2332_v47 }
 0xece   : > { %v2331_v26 = vmul.f32 %v2329_v25, %v2329_v25 }
 0xed0   : > { %v2335_v28 = vsel %vm1501_vm0, %v2331_v26, 0.0 }
 0xed1   : > { %2336 = vadd.xlane.f32.xlu0 %v2335_v28 }
 0xf56   : > { %v2334_v33 = vpop.xlane.xlu0 %2333 }
 0xf57   : > { %v2338_v34 = vmul.f32 0.020833334, %v2334_v33 }
 0xf59   : > { %v2340_v35 = vadd.f32 1e-05, %v2338_v34 }
 0xf5a   : > { %v2337_v36 = vpop.xlane.xlu0 %2336 }
 0xf5b   : > { %5954 = vrsqrt.f32 %v2340_v35  ;;  %v2339_v37 = vmul.f32 0.020833334, %v2337_v36 }
 0xf5d   : > { %v2341_v38 = vadd.f32 1e-05, %v2339_v37 }
 0xf5f   : > { %5956 = vrsqrt.f32 %v2341_v38 }
 0xf68   : > { %v5955_v39 = vpop.eup %5954 }
 0xf69   : > { %v2344_v41 = vmul.f32 %v5955_v39, %v2328_v20 }
 0xf6b   : > { %v2352_v48 = vmul.f32 %v5174_v42, %v2344_v41 }
 0xf6c   : > { %v5957_v43 = vpop.eup %5956 }
 0xf6d   : > { %v2345_v46 = vmul.f32 %v5957_v43, %v2329_v25  ;;  %v2360_v51 = vadd.f32 %v5175_v49, %v2352_v48 }
 0xf6f   : > { %v2353_v50 = vmul.f32 %v5174_v42, %v2345_v46 }
 0xf71   : > { %v2361_v52 = vadd.f32 %v5175_v49, %v2353_v50 }
 0xf73   : > { %v2362_v54 = vpack.c.bf16 %v2361_v52, %v2360_v51 }
 0xf75   : > { %5182 = vmatmul.mubr.msk.bf16.vlgmr.msra.gmra.mxu0 %vm1501_vm0, %v2362_v54 }
 0xf76   : > { %2564 = vmatpush1.bf16.msra.mxu0 %v5811_v53 }
 0xf77   : > { %2565 = vmatprep.subr.bf16.mxu0 %v6152_v63 }
 0xf7a   : > { %2566 = vmatpush1.bf16.msra.mxu0 %v5812_v55 }
 0xf7b   : > { %2567 = vmatprep.subr.bf16.mxu0 %v6152_v63 }
 0xf7e   : > { %2568 = vmatpush1.bf16.msra.mxu0 %v5813_v56 }
 0xf7f   : > { %2569 = vmatprep.subr.bf16.mxu0 %v6152_v63 }
 0xf82   : > { %2570 = vmatpush1.bf16.msra.mxu0 %v5814_v57 }
 0xf83   : > { %2571 = vmatprep.subr.bf16.mxu0 %v6152_v63 }
 0xf86   : > { %2572 = vmatpush1.bf16.msra.mxu0 %v5815_v58  ;;  %v5196_v58 = vld [vmem:[%s7210_s16] ss:$0 sm:$0xff]  ;;  %s7212_s16 = sld [smem:[#allocation16_spill]] }
 0xf87   : > { %2573 = vmatprep.subr.bf16.mxu0 %v6152_v63 }
 0xf8a   : > { %2574 = vmatpush1.bf16.msra.mxu0 %v5816_v59 }
 0xf8b   : > { %2575 = vmatprep.subr.bf16.mxu0 %v6152_v63 }
 0xf8e   : > { %2576 = vmatpush1.bf16.msra.mxu0 %v5817_v61 }
 0xf8f   : > { %2577 = vmatprep.subr.bf16.mxu0 %v6152_v63 }
 0xf92   : > { %2578 = vmatpush1.bf16.msra.mxu0 %v5818_v0 }
 0xf93   : > { %2587 = vmatprep.subr.bf16.mxu0 %v6152_v63 }
 0xf96   : > { %2588 = vmatpush2.bf16.msra.mxu0 %v5819_v1 }
 0xf97   : > { %2589 = vmatprep.subr.bf16.mxu0 %v6152_v63 }
 0xf9a   : > { %2590 = vmatpush2.bf16.msra.mxu0 %v5820_v2 }
 0xf9b   : > { %2591 = vmatprep.subr.bf16.mxu0 %v6152_v63 }
 0xf9e   : > { %2592 = vmatpush2.bf16.msra.mxu0 %v5821_v3 }
 0xf9f   : > { %2593 = vmatprep.subr.bf16.mxu0 %v6152_v63 }
 0xfa2   : > { %2594 = vmatpush2.bf16.msra.mxu0 %v5822_v4 }
0x1035   : > { %v2441_v8 = vpop.f32.mrf.mxu0 }
0x1036   : > { %v2442_v62 = vadd.f32 %v2441_v8, %v2367_v6 }
0x1037   : > { %v2443_v9 = vpop.f32.mrf.mxu0 }
0x1038   : > { %v2450_v60 = vmul.f32 %v2442_v62, %v2442_v62  ;;  %v2444_v10 = vadd.f32 %v2443_v9, %v2371_v7 }
0x1039   : > { %v2445_v12 = vpop.f32.mrf.mxu0 }
0x103a   : > { %v2454_v13 = vmul.f32 %v2450_v60, %v2442_v62  ;;  %v2451_v14 = vmul.f32 %v2444_v10, %v2444_v10  ;;  %v2446_v15 = vadd.f32 %v2445_v12, %v2367_v6 }
0x103b   : > { %v2447_v17 = vpop.f32.mrf.mxu0 }
0x103c   : > { %v2458_v18 = vmul.f32 0.044715, %v2454_v13  ;;  %v2455_v40 = vmul.f32 %v2451_v14, %v2444_v10  ;;  %v2452_v20 = vmul.f32 %v2446_v15, %v2446_v15  ;;  %v2448_v21 = vadd.f32 %v2447_v17, %v2371_v7  ;;  %v5823_v14 = vld [vmem:[%s7211_s15 + $0x10] sm:$0xff]   ;;  %v5825_v17 = vld [vmem:[%s7211_s15] sm:$0xff]  }
0x103d   : > { %5513 = vmatpush3.bf16.msra.mxu1 %v5823_v14 }
0x103e   : > { %v2462_v22 = vadd.f32 %v2458_v18, %v2442_v62  ;;  %v2459_v24 = vmul.f32 0.044715, %v2455_v40  ;;  %v2456_v25 = vmul.f32 %v2452_v20, %v2446_v15  ;;  %v2453_v47 = vmul.f32 %v2448_v21, %v2448_v21  ;;  %5514 = vmatprep.subr.bf16.mxu1 %v6153_v19 }
0x1040   : > { %v2466_v26 = vmul.f32 0.7978846, %v2462_v22  ;;  %v2463_v28 = vadd.f32 %v2459_v24, %v2444_v10  ;;  %v2460_v29 = vmul.f32 0.044715, %v2456_v25  ;;  %v2457_v30 = vmul.f32 %v2453_v47, %v2448_v21 }
0x1042   : > { %v2467_v27 = vmul.f32 0.7978846, %v2463_v28  ;;  %v2464_v31 = vadd.f32 %v2460_v29, %v2446_v15  ;;  %v2461_v23 = vmul.f32 0.044715, %v2457_v30  ;;  %5958 = vtanh.f32 %v2466_v26  ;;  %v5197_v26 = vld [vmem:[%s7212_s16] ss:$0 sm:$0xff] }
0x1043   : > { %s7217_s16 = sld [smem:[#allocation21_spill]] }
0x1044   : > { %5960 = vtanh.f32 %v2467_v27  ;;  %v2468_v32 = vmul.f32 0.7978846, %v2464_v31  ;;  %v2465_v33 = vadd.f32 %v2461_v23, %v2448_v21  ;;  %v5198_v27 = vld [vmem:[%s7213_s3] ss:$0 sm:$0xff]  ;;  %s7215_s3 = sld [smem:[#allocation22_spill]] }
0x1046   : > { %5962 = vtanh.f32 %v2468_v32  ;;  %v2469_v34 = vmul.f32 0.7978846, %v2465_v33 }
0x1048   : > { %5964 = vtanh.f32 %v2469_v34  ;;  %v5199_v34 = vld [vmem:[%s7214_s5] ss:$0 sm:$0xff]  ;;  %s7216_s5 = sld [smem:[#allocation20_spill]] }
0x1049   : > { %v5205_v14 = vld [vmem:[%s7217_s16] ss:$0 sm:$0xff]  ;;  %s7219_s16 = sld [smem:[#allocation23_spill]] }
0x104f   : > { %v5959_v35 = vpop.eup %5958 }
0x1050   : > { %v2474_v39 = vadd.f32 1.0, %v5959_v35 }
0x1051   : > { %v5961_v36 = vpop.eup %5960 }
0x1052   : > { %v2475_v37 = vadd.f32 1.0, %v5961_v36  ;;  %v2478_v49 = vmul.f32 0.5, %v2474_v39 }
0x1053   : > { %v5963_v38 = vpop.eup %5962 }
0x1054   : > { %v2476_v41 = vadd.f32 1.0, %v5963_v38  ;;  %v2479_v43 = vmul.f32 0.5, %v2475_v37  ;;  %v2482_v54 = vmul.f32 %v2478_v49, %v2442_v62 }
0x1055   : > { %v5965_v42 = vpop.eup %5964 }
0x1056   : > { %v2480_v46 = vmul.f32 0.5, %v2476_v41  ;;  %v2477_v48 = vadd.f32 1.0, %v5965_v42  ;;  %v2483_v52 = vmul.f32 %v2479_v43, %v2444_v10 }
0x1058   : > { %v2481_v50 = vmul.f32 0.5, %v2477_v48  ;;  %v2484_v51 = vmul.f32 %v2480_v46, %v2446_v15  ;;  %v5824_v15 = vld [vmem:[%s7211_s15 + $0x8] sm:$0xff]  }
0x1059   : > { %5515 = vmatpush3.bf16.msra.mxu1 %v5824_v15 }
0x105a   : > { %v2485_v53 = vmul.f32 %v2481_v50, %v2448_v21  ;;  %v2486_v56 = vpack.c.bf16 %v2484_v51, %v2482_v54  ;;  %5516 = vmatprep.subr.bf16.mxu1 %v6153_v19 }
0x105c   : > { %v2487_v55 = vpack.c.bf16 %v2485_v53, %v2483_v52 }
0x105d   : > { %5517 = vmatpush3.bf16.msra.mxu1 %v5825_v17 }
0x105e   : > { %5195 = vmatprep.mubr.msk.bf16.mxu0 %vm2273_vm4, %v2487_v55 }
0x105f   : > { %2596 = vmatmul.mubr.bf16.vlgmr.msra.gmra.mxu0 %v2486_v56 }
0x1060   : > { %3263 = vmatprep.mubr.bf16.mxu0 %v6152_v63 }
0x111f   : > { %v2597_v57 = vpop.f32.mrf.mxu0 }
0x1120   : > { %v2604_v59 = vadd.f32 %v2597_v57, %v6596_v11  ;;  %v5828_v57 = vld [vmem:[%s7215_s3 + $0x64] ss:$48 sps:$4 sm:$0xff]  }
0x1121   : > { %v2599_v61 = vpop.f32.mrf.mxu0  ;;  %3028 = vmatprep.subr.bf16.mxu1 %v5828_v57 }
0x1122   : > { %v2612_v0 = vadd.f32 %v5196_v58, %v2604_v59  ;;  %v5826_v59 = vld [vmem:[%s7215_s3 + $0x60] ss:$48 sps:$4 sm:$0xff]   ;;  %v5829_v61 = vld [vmem:[%s7215_s3 + $0x88] ss:$48 sps:$4 sm:$0xff]  }
0x1123   : > { %v2600_v1 = vpop.f32.mrf.mxu0 }
0x1124   : > { %v2605_v2 = vadd.f32 %v2600_v1, %v6601_v16  ;;  %v2616_v3 = vsel %vm1501_vm0, %v2612_v0, 0.0  ;;  %v5834_v1 = vld [vmem:[%s7215_s3 + $0x4] ss:$48 sps:$4 sm:$0xff]  }
0x1125   : > { %2617 = vadd.xlane.f32.xlu1 %v2616_v3  ;;  %v2602_v4 = vpop.f32.mrf.mxu0  ;;  %v5837_v3 = vld [vmem:[%s7215_s3 + $0x2c] ss:$48 sps:$4 sm:$0xff]  }
0x1126   : > { %v2613_v5 = vadd.f32 %v5196_v58, %v2605_v2  ;;  %v5831_v58 = vld [vmem:[%s7215_s3 + $0x8c] ss:$48 sps:$4 sm:$0xff]   ;;  %v5835_v2 = vld [vmem:[%s7215_s3 + $0x28] ss:$48 sps:$4 sm:$0xff]  }
0x1127   : > { %3243 = vmatprep.subr.bf16.mxu0 %v5831_v58  ;;  %v5840_v4 = vld [vmem:[%s7215_s3 + $0x6c] ss:$48 sps:$4 sm:$0xff]  }
0x1128   : > { %v2619_v6 = vsel %vm1501_vm0, %v2613_v5, 0.0  ;;  %3244 = vmatpush1.bf16.msra.mxu0 %v5829_v61 }
0x1129   : > { %2620 = vadd.xlane.f32.xlu0 %v2619_v6  ;;  %3245 = vmatprep.subr.bf16.mxu0 %v5837_v3 }
0x112c   : > { %3246 = vmatpush1.bf16.msra.mxu0 %v5835_v2 }
0x112d   : > { %5528 = vmatprep.subr.bf16.mxu0 %v6153_v19 }
0x11ae   : > { %v2618_v7 = vpop.xlane.xlu1 %2617 }
0x11af   : > { %v2622_v8 = vmul.f32 0.020833334, %v2618_v7 }
0x11b1   : > { %v2624_v62 = vsub.f32 %v2612_v0, %v2622_v8  ;;  %v5832_v0 = vld [vmem:[%s7215_s3] ss:$48 sps:$4 sm:$0xff]  }
0x11b2   : > { %v2621_v11 = vpop.xlane.xlu0 %2620 }
0x11b3   : > { %v2623_v9 = vmul.f32 0.020833334, %v2621_v11  ;;  %v2626_v60 = vmul.f32 %v2624_v62, %v2624_v62 }
0x11b5   : > { %v2625_v10 = vsub.f32 %v2613_v5, %v2623_v9  ;;  %v2628_v16 = vsel %vm1501_vm0, %v2626_v60, 0.0 }
0x11b6   : > { %2629 = vadd.xlane.f32.xlu1 %v2628_v16 }
0x11b7   : > { %v2627_v12 = vmul.f32 %v2625_v10, %v2625_v10 }
0x11b9   : > { %v2631_v13 = vsel %vm1501_vm0, %v2627_v12, 0.0 }
0x11ba   : > { %2632 = vadd.xlane.f32.xlu0 %v2631_v13 }
0x123f   : > { %v2630_v18 = vpop.xlane.xlu1 %2629 }
0x1240   : > { %v2634_v40 = vmul.f32 0.020833334, %v2630_v18 }
0x1242   : > { %v2636_v20 = vadd.f32 1e-05, %v2634_v40  ;;  %v5838_v40 = vld [vmem:[%s7215_s3 + $0x68] ss:$48 sps:$4 sm:$0xff]  }
0x1243   : > { %v2633_v21 = vpop.xlane.xlu0 %2632 }
0x1244   : > { %5966 = vrsqrt.f32 %v2636_v20  ;;  %v2635_v22 = vmul.f32 0.020833334, %v2633_v21  ;;  %v5843_v21 = vld [vmem:[%s7215_s3 + $0xc] ss:$48 sps:$4 sm:$0xff]  }
0x1246   : > { %v2637_v24 = vadd.f32 1e-05, %v2635_v22  ;;  %v5841_v22 = vld [vmem:[%s7215_s3 + $0x8] ss:$48 sps:$4 sm:$0xff]  }
0x1248   : > { %5968 = vrsqrt.f32 %v2637_v24  ;;  %v5846_v24 = vld [vmem:[%s7215_s3 + $0x74] ss:$48 sps:$4 sm:$0xff]  }
0x1251   : > { %v5967_v25 = vpop.eup %5966 }
0x1252   : > { %v2640_v47 = vmul.f32 %v5967_v25, %v2624_v62  ;;  %v5844_v25 = vld [vmem:[%s7215_s3 + $0x70] ss:$48 sps:$4 sm:$0xff]  }
0x1254   : > { %v2648_v30 = vmul.f32 %v5197_v26, %v2640_v47  ;;  %v5849_v47 = vld [vmem:[%s7215_s3 + $0x14] ss:$48 sps:$4 sm:$0xff]  }
0x1255   : > { %v5969_v28 = vpop.eup %5968 }
0x1256   : > { %v2641_v29 = vmul.f32 %v5969_v28, %v2625_v10  ;;  %v2656_v23 = vadd.f32 %v5198_v27, %v2648_v30  ;;  %v5204_v10 = vld [vmem:[%s7216_s5] ss:$0 sm:$0xff]  ;;  %v5852_v28 = vld [vmem:[%s7215_s3 + $0x7c] ss:$48 sps:$4 sm:$0xff]   ;;  %s7218_s5 = smov 64  }
0x1257   : > { %v5855_v30 = vld [vmem:[%s7215_s3 + $0x1c] ss:$48 sps:$4 sm:$0xff]  }
0x1258   : > { %v2649_v31 = vmul.f32 %v5197_v26, %v2641_v29  ;;  %v5847_v26 = vld [vmem:[%s7215_s3 + $0x10] ss:$48 sps:$4 sm:$0xff]   ;;  %v5850_v29 = vld [vmem:[%s7215_s3 + $0x78] ss:$48 sps:$4 sm:$0xff]  }
0x125a   : > { %v2657_v32 = vadd.f32 %v5198_v27, %v2649_v31  ;;  %v5853_v27 = vld [vmem:[%s7215_s3 + $0x18] ss:$48 sps:$4 sm:$0xff]   ;;  %v5858_v31 = vld [vmem:[%s7215_s3 + $0x84] ss:$48 sps:$4 sm:$0xff]  }
0x125c   : > { %v2664_v33 = vpack.c.bf16 %v2657_v32, %v2656_v23  ;;  %v5856_v23 = vld [vmem:[%s7215_s3 + $0x80] ss:$48 sps:$4 sm:$0xff]   ;;  %v5861_v32 = vld [vmem:[%s7215_s3 + $0x24] ss:$48 sps:$4 sm:$0xff]  }
0x125e   : > { %5519 = vmatmul.mubr.msk.bf16.vlgmr.msra.gmra.mxu1 %vm1501_vm0, %v2664_v33  ;;  %v5859_v33 = vld [vmem:[%s7215_s3 + $0x20] ss:$48 sps:$4 sm:$0xff]   ;;  %s7222_s3 = sld [smem:[#allocation25_spill]] }
0x125f   : > { %3048 = vmatprep.mubr.bf16.mxu1 %v6152_v63  ;;  %3029 = vmatpush1.bf16.msra.mxu1 %v5826_v59 }
0x1260   : > { %3030 = vmatprep.subr.bf16.mxu1 %v5834_v1 }
0x1263   : > { %3031 = vmatpush1.bf16.msra.mxu1 %v5832_v0 }
0x1264   : > { %3071 = vmatprep.subr.bf16.mxu1 %v5840_v4 }
0x131e   : > { %v2727_v35 = vpop.f32.mrf.mxu1 }
0x131f   : > { %v6664_v36 = vadd.f32 %v5199_v34, %v2727_v35 }
0x1320   : > { %v5520_v37 = vpop.f32.mrf.mxu1 }
0x1321   : > { %v2849_v38 = vsel %vm2237_vm3, %v6664_v36, 0.0 }
0x1322   : > { %2850 = vadd.xlane.f32.xlu1 %v2849_v38  ;;  %v2730_v39 = vpop.f32.mrf.mxu1 }
0x1323   : > { %v6668_v41 = vadd.f32 %v5199_v34, %v2730_v39 }
0x1324   : > { %v5521_v42 = vpop.f32.mrf.mxu1 }
0x1325   : > { %v2852_v43 = vsel %vm2237_vm3, %v6668_v41, 0.0 }
0x1326   : > { %2853 = vadd.xlane.f32.xlu0 %v2852_v43 }
0x13ab   : > { %v2851_v46 = vpop.xlane.xlu1 %2850 }
0x13ac   : > { %v2856_v48 = vmul.f32 0.03125, %v2851_v46 }
0x13ae   : > { %v2858_v49 = vsub.f32 %v6664_v36, %v2856_v48 }
0x13af   : > { %v2854_v50 = vpop.xlane.xlu0 %2853 }
0x13b0   : > { %v2857_v51 = vmul.f32 0.03125, %v2854_v50  ;;  %v2860_v52 = vmul.f32 %v2858_v49, %v2858_v49 }
0x13b2   : > { %v2859_v53 = vsub.f32 %v6668_v41, %v2857_v51  ;;  %v2862_v54 = vsel %vm2237_vm3, %v2860_v52, 0.0 }
0x13b3   : > { %2863 = vadd.xlane.f32.xlu1 %v2862_v54 }
0x13b4   : > { %v2861_v55 = vmul.f32 %v2859_v53, %v2859_v53 }
0x13b6   : > { %v2865_v56 = vsel %vm2237_vm3, %v2861_v55, 0.0 }
0x13b7   : > { %2866 = vadd.xlane.f32.xlu0 %v2865_v56 }
0x143c   : > { %v2864_v5 = vpop.xlane.xlu1 %2863 }
0x143d   : > { %v2868_v6 = vmul.f32 0.03125, %v2864_v5 }
0x143f   : > { %v2870_v7 = vadd.f32 1e-05, %v2868_v6 }
0x1440   : > { %v2867_v8 = vpop.xlane.xlu0 %2866 }
0x1441   : > { %5970 = vrsqrt.f32 %v2870_v7  ;;  %v2869_v62 = vmul.f32 0.03125, %v2867_v8 }
0x1443   : > { %v2871_v11 = vadd.f32 1e-05, %v2869_v62 }
0x1445   : > { %5972 = vrsqrt.f32 %v2871_v11 }
0x144e   : > { %v5971_v9 = vpop.eup %5970 }
0x144f   : > { %v2874_v60 = vmul.f32 %v5971_v9, %v2858_v49 }
0x1451   : > { %v2882_v12 = vmul.f32 %v5204_v10, %v2874_v60 }
0x1452   : > { %v5973_v16 = vpop.eup %5972 }
0x1453   : > { %v2875_v13 = vmul.f32 %v5973_v16, %v2859_v53  ;;  %v2890_v17 = vadd.f32 %v5205_v14, %v2882_v12 }
0x1455   : > { %v2883_v15 = vmul.f32 %v5204_v10, %v2875_v13 }
0x1457   : > { %v2891_v18 = vadd.f32 %v5205_v14, %v2883_v15 }
0x1459   : > { %v2892_v20 = vpack.c.bf16 %v2891_v18, %v2890_v17 }
0x145b   : > { %5230 = vmatmul.mubr.msk.bf16.vlgmr.msra.gmra.mxu1 %vm2237_vm3, %v2892_v20  ;;  %5235 = vmatmul.mubr.msk.bf16.vlgmr.msra.gmra.mxu0 %vm2237_vm3, %v2892_v20 }
0x145c   : > { %3072 = vmatpush1.bf16.msra.mxu1 %v5838_v40  ;;  %3091 = vmatprep.mubr.bf16.mxu1 %v6152_v63 }
0x145d   : > { %3073 = vmatprep.subr.bf16.mxu1 %v5843_v21  ;;  %5530 = vmatprep.mubr.msk.bf16.mxu0 %vm6154_vm1, %v6153_v19 }
0x1460   : > { %3074 = vmatpush1.bf16.msra.mxu1 %v5841_v22 }
0x1461   : > { %3114 = vmatprep.subr.bf16.mxu1 %v5846_v24 }
0x1463   : > { %5231 = vmatmul.mubr.msk.bf16.vlgmr.msra.gmra.mxu1 %vm2237_vm3, %v2892_v20 }
0x1464   : > { %3115 = vmatpush1.bf16.msra.mxu1 %v5844_v25  ;;  %3134 = vmatprep.mubr.bf16.mxu1 %v6152_v63 }
0x1465   : > { %3116 = vmatprep.subr.bf16.mxu1 %v5849_v47 }
0x1468   : > { %3117 = vmatpush1.bf16.msra.mxu1 %v5847_v26 }
0x1469   : > { %3157 = vmatprep.subr.bf16.mxu1 %v5852_v28 }
0x146b   : > { %5232 = vmatmul.mubr.msk.bf16.vlgmr.msra.gmra.mxu1 %vm2237_vm3, %v2892_v20 }
0x146c   : > { %3158 = vmatpush1.bf16.msra.mxu1 %v5850_v29  ;;  %3177 = vmatprep.mubr.bf16.mxu1 %v6152_v63 }
0x146d   : > { %3159 = vmatprep.subr.bf16.mxu1 %v5855_v30 }
0x1470   : > { %3160 = vmatpush1.bf16.msra.mxu1 %v5853_v27 }
0x1471   : > { %3200 = vmatprep.subr.bf16.mxu1 %v5858_v31 }
0x1473   : > { %5233 = vmatmul.mubr.msk.bf16.vlgmr.msra.gmra.mxu1 %vm2237_vm3, %v2892_v20 }
0x1474   : > { %3201 = vmatpush1.bf16.msra.mxu1 %v5856_v23  ;;  %3220 = vmatprep.mubr.bf16.mxu1 %v6152_v63 }
0x1475   : > { %3202 = vmatprep.subr.bf16.mxu1 %v5861_v32 }
0x1478   : > { %3203 = vmatpush1.bf16.msra.mxu1 %v5859_v33 }
0x1479   : > { %5522 = vmatprep.subr.bf16.mxu1 %v6153_v19 }
0x147b   : > { %5234 = vmatmul.mubr.msk.bf16.vlgmr.msra.gmra.mxu1 %vm2237_vm3, %v2892_v20 }
0x147c   : > { %5524 = vmatprep.mubr.msk.bf16.mxu1 %vm6154_vm1, %v6153_v19 }
0x151b   : > { %v3050_v34 = vpop.f32.mrf.mxu1 }
0x151d   : > { %v3052_v35 = vpop.f32.mrf.mxu1 }
0x151f   : > { %v3054_v37 = vpop.f32.mrf.mxu1 }
0x1520   : > { %v3274_v38 = vpack.c.bf16 %v3054_v37, %v3050_v34 }
0x1521   : > { %v3056_v39 = vpop.f32.mrf.mxu1 }
0x1522   : > { %3394 = vrot.lane.b32.xlu0 %v3274_v38, %s7218_s5  ;;  %v3519_v0 = vpack.c.bf16 %v3056_v39, %v3052_v35 }
0x1523   : > { %v3093_v42 = vpop.f32.mrf.mxu1 }
0x1525   : > { %v3095_v43 = vpop.f32.mrf.mxu1 }
0x1527   : > { %v3097_v46 = vpop.f32.mrf.mxu1 }
0x1528   : > { %v3764_v48 = vpack.c.bf16 %v3097_v46, %v3093_v42 }
0x1529   : > { %v3099_v49 = vpop.f32.mrf.mxu1 }
0x152a   : > { %3884 = vrot.lane.b32.xlu0 %v3764_v48, %s7218_s5  ;;  %v6720_v51 = vpack.c.bf16 %v3099_v49, %v3095_v43 }
0x152b   : > { %v3136_v50 = vpop.f32.mrf.mxu1 }
0x152d   : > { %v3138_v52 = vpop.f32.mrf.mxu1 }
0x152e   : > { %4129 = vrot.lane.b32.xlu0 %v6720_v51, %s7218_s5 }
0x152f   : > { %v3140_v53 = vpop.f32.mrf.mxu1 }
0x1530   : > { %v3275_v54 = vpack.c.bf16 %v3140_v53, %v3136_v50 }
0x1531   : > { %v3142_v55 = vpop.f32.mrf.mxu1 }
0x1532   : > { %v3280_v56 = vsel %vm2273_vm4, %v3275_v54, 0  ;;  %3397 = vrot.lane.b32.xlu1 %v3275_v54, %s7218_s5  ;;  %v3520_v58 = vpack.c.bf16 %v3142_v55, %v3138_v52 }
0x1533   : > { %v3179_v57 = vpop.f32.mrf.mxu1  ;;  %5523 = vmatpush3.bf16.xpose.msra.mxu1 %v3280_v56 }
0x1534   : > { %5534 = vmatprep.subr.bf16.mxu1 %v6153_v19  ;;  %v3525_v9 = vsel %vm2273_vm4, %v3520_v58, 0 }
0x1535   : > { %v3181_v59 = vpop.f32.mrf.mxu1 }
0x1536   : > { %3642 = vrot.lane.b32.xlu1 %v3520_v58, %s7218_s5 }
0x1537   : > { %v3183_v61 = vpop.f32.mrf.mxu1 }
0x1538   : > { %v3765_v3 = vpack.c.bf16 %v3183_v61, %v3179_v57 }
0x1539   : > { %v3185_v1 = vpop.f32.mrf.mxu1 }
0x153a   : > { %5525 = vmatmul.mubr.msk.bf16.vlgmr.msra.gmra.mxu1 %vm2273_vm4, %v3274_v38  ;;  %3639 = vrot.lane.b32.xlu1 %v3519_v0, %s7218_s5  ;;  %v4010_v6 = vpack.c.bf16 %v3185_v1, %v3181_v59  ;;  %v3770_v12 = vsel %vm2273_vm4, %v3765_v3, 0 }
0x153b   : > { %v3222_v2 = vpop.f32.mrf.mxu1  ;;  %5536 = vmatprep.mubr.msk.bf16.mxu1 %vm6154_vm1, %v6153_v19 }
0x153c   : > { %v4015_v17 = vsel %vm2273_vm4, %v4010_v6, 0 }
0x153d   : > { %v6732_v4 = vpop.f32.mrf.mxu1 }
0x153e   : > { %3887 = vrot.lane.b32.xlu1 %v3765_v3, %s7218_s5 }
0x153f   : > { %v3226_v5 = vpop.f32.mrf.mxu1 }
0x1540   : > { %v6735_v7 = vpack.c.bf16 %v3226_v5, %v3222_v2 }
0x1541   : > { %v6773_v21 = vpop.f32.mrf.mxu1 }
0x1542   : > { %4132 = vrot.lane.b32.xlu1 %v4010_v6, %s7218_s5  ;;  %5529 = vmatpush3.bf16.msra.mxu0 %v6735_v7 }
0x1543   : > { %5540 = vmatprep.subr.bf16.mxu0 %v6153_v19 }
0x1594   : > { %v3395_v11 = vpop.permute.xlu0 %3394 }
0x159c   : > { %v3885_v15 = vpop.permute.xlu0 %3884 }
0x15a0   : > { %v4130_v20 = vpop.permute.xlu0 %4129 }
0x15a4   : > { %v3398_v8 = vpop.permute.xlu1 %3397 }
0x15a5   : > { %v3403_v62 = vsel %vm2273_vm4, %v3398_v8, 0 }
0x15a6   : > { %5535 = vmatpush3.bf16.xpose.msra.mxu1 %v3403_v62 }
0x15a7   : > { %5546 = vmatprep.subr.bf16.mxu1 %v6153_v19 }
0x15a8   : > { %v3643_v60 = vpop.permute.xlu1 %3642 }
0x15a9   : > { %v3648_v10 = vsel %vm2273_vm4, %v3643_v60, 0 }
0x15ac   : > { %v3640_v16 = vpop.permute.xlu1 %3639 }
0x15ad   : > { %5537 = vmatmul.mubr.msk.bf16.vlgmr.msra.gmra.mxu1 %vm2273_vm4, %v3395_v11 }
0x15ae   : > { %5547 = vmatpush3.bf16.xpose.msra.mxu1 %v3525_v9  ;;  %5548 = vmatprep.mubr.msk.bf16.mxu1 %vm6154_vm1, %v6153_v19 }
0x15af   : > { %5558 = vmatprep.subr.bf16.mxu1 %v6153_v19 }
0x15b0   : > { %v3888_v13 = vpop.permute.xlu1 %3887 }
0x15b1   : > { %v3893_v14 = vsel %vm2273_vm4, %v3888_v13, 0 }
0x15b4   : > { %v4133_v18 = vpop.permute.xlu1 %4132 }
0x15b5   : > { %5549 = vmatmul.mubr.msk.bf16.vlgmr.msra.gmra.mxu1 %vm2273_vm4, %v3519_v0  ;;  %v4138_v40 = vsel %vm2273_vm4, %v4133_v18, 0 }
0x15b6   : > { %5559 = vmatpush3.bf16.xpose.msra.mxu1 %v3648_v10  ;;  %5560 = vmatprep.mubr.msk.bf16.mxu1 %vm6154_vm1, %v6153_v19 }
0x15b7   : > { %5570 = vmatprep.subr.bf16.mxu1 %v6153_v19 }
0x15bd   : > { %5561 = vmatmul.mubr.msk.bf16.vlgmr.msra.gmra.mxu1 %vm2273_vm4, %v3640_v16 }
0x15be   : > { %5571 = vmatpush3.bf16.xpose.msra.mxu1 %v3770_v12  ;;  %5572 = vmatprep.mubr.msk.bf16.mxu1 %vm6154_vm1, %v6153_v19 }
0x15bf   : > { %5582 = vmatprep.subr.bf16.mxu1 %v6153_v19 }
0x15c5   : > { %5573 = vmatmul.mubr.msk.bf16.vlgmr.msra.gmra.mxu1 %vm2273_vm4, %v3764_v48 }
0x15c6   : > { %5583 = vmatpush3.bf16.xpose.msra.mxu1 %v3893_v14  ;;  %5584 = vmatprep.mubr.msk.bf16.mxu1 %vm6154_vm1, %v6153_v19 }
0x15c7   : > { %5594 = vmatprep.subr.bf16.mxu1 %v6153_v19 }
0x15cd   : > { %5585 = vmatmul.mubr.msk.bf16.vlgmr.msra.gmra.mxu1 %vm2273_vm4, %v3885_v15 }
0x15ce   : > { %5595 = vmatpush3.bf16.xpose.msra.mxu1 %v4015_v17  ;;  %5596 = vmatprep.mubr.msk.bf16.mxu1 %vm6154_vm1, %v6153_v19 }
0x15cf   : > { %5606 = vmatprep.subr.bf16.mxu1 %v6153_v19 }
0x15d5   : > { %5597 = vmatmul.mubr.msk.bf16.vlgmr.msra.gmra.mxu1 %vm2273_vm4, %v6720_v51 }
0x15d6   : > { %5607 = vmatpush3.bf16.xpose.msra.mxu1 %v4138_v40  ;;  %5608 = vmatprep.mubr.msk.bf16.mxu1 %vm6154_vm1, %v6153_v19 }
0x15dd   : > { %5609 = vmatmul.mubr.msk.bf16.vlgmr.msra.gmra.mxu1 %vm2273_vm4, %v4130_v20 }
0x15fa   : > { %v3316_v22 = vpop.f32.mrf.mxu1 }
0x15fb   : > { %v3323_v24 = vmul.f32 0.125, %v3316_v22 }
0x15fc   : > { %v5526_v25 = vpop.f32.mrf.mxu1 }
0x15fd   : > { %v3325_v47 = vsel %vm1723_vm2, %v3323_v24, -inf }
0x15fe   : > { %3326 = vmax.xlane.f32.xlu1 %v3325_v47  ;;  %v3319_v26 = vpop.f32.mrf.mxu1 }
0x15ff   : > { %v3324_v28 = vmul.f32 0.125, %v3319_v26 }
0x1600   : > { %v5527_v29 = vpop.f32.mrf.mxu1 }
0x1601   : > { %v3328_v30 = vsel %vm1723_vm2, %v3324_v28, -inf }
0x1602   : > { %3329 = vmax.xlane.f32.xlu0 %v3328_v30 }
0x166d   : > { %v3439_v27 = vpop.f32.mrf.mxu1 }
0x166e   : > { %v6777_v31 = vmul.f32 0.125, %v3439_v27 }
0x166f   : > { %v5538_v23 = vpop.f32.mrf.mxu1 }
0x1670   : > { %v3448_v32 = vsel %vm1723_vm2, %v6777_v31, -inf }
0x1671   : > { %3449 = vmax.xlane.f32.xlu0 %v3448_v32  ;;  %v3442_v33 = vpop.f32.mrf.mxu1 }
0x1672   : > { %v6781_v34 = vmul.f32 0.125, %v3442_v33 }
0x1673   : > { %v5539_v35 = vpop.f32.mrf.mxu1 }
0x1674   : > { %v3451_v37 = vsel %vm1723_vm2, %v6781_v34, -inf }
0x1675   : > { %3452 = vmax.xlane.f32.xlu0 %v3451_v37  ;;  %v3561_v38 = vpop.f32.mrf.mxu1 }
0x1676   : > { %v6785_v39 = vmul.f32 0.125, %v3561_v38 }
0x1677   : > { %v5550_v42 = vpop.f32.mrf.mxu1 }
0x1678   : > { %v3570_v43 = vsel %vm1723_vm2, %v6785_v39, -inf }
0x1679   : > { %3571 = vmax.xlane.f32.xlu1 %v3570_v43  ;;  %v3564_v46 = vpop.f32.mrf.mxu1 }
0x167a   : > { %v6789_v48 = vmul.f32 0.125, %v3564_v46 }
0x167b   : > { %v5551_v49 = vpop.f32.mrf.mxu1 }
0x167c   : > { %v3573_v50 = vsel %vm1723_vm2, %v6789_v48, -inf }
0x167d   : > { %3574 = vmax.xlane.f32.xlu0 %v3573_v50  ;;  %v3684_v51 = vpop.f32.mrf.mxu1 }
0x167e   : > { %v6793_v52 = vmul.f32 0.125, %v3684_v51 }
0x167f   : > { %v5562_v53 = vpop.f32.mrf.mxu1 }
0x1680   : > { %v3693_v54 = vsel %vm1723_vm2, %v6793_v52, -inf }
0x1681   : > { %3694 = vmax.xlane.f32.xlu1 %v3693_v54  ;;  %v3687_v55 = vpop.f32.mrf.mxu1 }
0x1682   : > { %v6797_v56 = vmul.f32 0.125, %v3687_v55 }
0x1683   : > { %v5563_v57 = vpop.f32.mrf.mxu1 }
0x1684   : > { %v3696_v58 = vsel %vm1723_vm2, %v6797_v56, -inf }
0x1685   : > { %3697 = vmax.xlane.f32.xlu0 %v3696_v58  ;;  %v3806_v59 = vpop.f32.mrf.mxu1 }
0x1686   : > { %v6801_v61 = vmul.f32 0.125, %v3806_v59 }
0x1687   : > { %v5574_v0 = vpop.f32.mrf.mxu1  ;;  %v3327_v2 = vpop.xlane.xlu1 %3326 }
0x1688   : > { %v3815_v1 = vsel %vm1723_vm2, %v6801_v61, -inf  ;;  %v3331_v8 = vsub.f32 %v3323_v24, %v3327_v2 }
0x1689   : > { %3816 = vmax.xlane.f32.xlu1 %v3815_v1  ;;  %v3809_v3 = vpop.f32.mrf.mxu1 }
0x168a   : > { %v6805_v5 = vmul.f32 0.125, %v3809_v3  ;;  %v3333_v16 = vmul.f32 1.442695, %v3331_v8 }
0x168b   : > { %v5575_v6 = vpop.f32.mrf.mxu1  ;;  %v3330_v11 = vpop.xlane.xlu0 %3329 }
0x168c   : > { %v3818_v62 = vsel %vm1723_vm2, %v6805_v5, -inf  ;;  %v3332_v12 = vsub.f32 %v3324_v28, %v3330_v11  ;;  %5974 = vpow2.f32 %v3333_v16 }
0x168d   : > { %3819 = vmax.xlane.f32.xlu0 %v3818_v62  ;;  %v3929_v9 = vpop.f32.mrf.mxu1 }
0x168e   : > { %v6809_v60 = vmul.f32 0.125, %v3929_v9  ;;  %v3335_v18 = vmul.f32 1.442695, %v3332_v12 }
0x168f   : > { %v5586_v10 = vpop.f32.mrf.mxu1 }
0x1690   : > { %v3938_v13 = vsel %vm1723_vm2, %v6809_v60, -inf  ;;  %5976 = vpow2.f32 %v3335_v18 }
0x1691   : > { %3939 = vmax.xlane.f32.xlu1 %v3938_v13  ;;  %v3932_v14 = vpop.f32.mrf.mxu1 }
0x1692   : > { %v6813_v15 = vmul.f32 0.125, %v3932_v14 }
0x1693   : > { %v5587_v17 = vpop.f32.mrf.mxu1 }
0x1694   : > { %v3941_v40 = vsel %vm1723_vm2, %v6813_v15, -inf }
0x1695   : > { %3942 = vmax.xlane.f32.xlu0 %v3941_v40  ;;  %v4051_v20 = vpop.f32.mrf.mxu1 }
0x1696   : > { %v6817_v22 = vmul.f32 0.125, %v4051_v20 }
0x1697   : > { %v5598_v24 = vpop.f32.mrf.mxu1 }
0x1698   : > { %v4060_v25 = vsel %vm1723_vm2, %v6817_v22, -inf }
0x1699   : > { %4061 = vmax.xlane.f32.xlu1 %v4060_v25  ;;  %v4054_v47 = vpop.f32.mrf.mxu1  ;;  %v6829_v33 = vpop.eup %5974 }
0x169a   : > { %v6821_v26 = vmul.f32 0.125, %v4054_v47  ;;  %v3337_v42 = vsel %vm1723_vm2, %v6829_v33, 0.0 }
0x169b   : > { %v5599_v28 = vpop.f32.mrf.mxu1 }
0x169c   : > { %v4063_v29 = vsel %vm1723_vm2, %v6821_v26, -inf }
0x169d   : > { %4064 = vmax.xlane.f32.xlu0 %v4063_v29  ;;  %v4174_v30 = vpop.f32.mrf.mxu1  ;;  %v6837_v46 = vpop.eup %5976 }
0x169e   : > { %v6825_v27 = vmul.f32 0.125, %v4174_v30  ;;  %v3340_v49 = vsel %vm1723_vm2, %v6837_v46, 0.0 }
0x169f   : > { %v5610_v23 = vpop.f32.mrf.mxu1 }
0x16a0   : > { %v4183_v32 = vsel %vm1723_vm2, %v6825_v27, -inf }
0x16a1   : > { %4184 = vmax.xlane.f32.xlu1 %v4183_v32  ;;  %v4177_v35 = vpop.f32.mrf.mxu1 }
0x16a2   : > { %v6831_v37 = vmul.f32 0.125, %v4177_v35 }
0x16a3   : > { %v5611_v38 = vpop.f32.mrf.mxu1 }
0x16a4   : > { %v4186_v43 = vsel %vm1723_vm2, %v6831_v37, -inf }
0x16a5   : > { %3338 = vadd.xlane.f32.xlu1 %v3337_v42  ;;  %4187 = vmax.xlane.f32.xlu0 %v4186_v43 }
0x16a9   : > { %3341 = vadd.xlane.f32.xlu0 %v3340_v49 }
0x16b6   : > { %3472 = vrot.lane.b32.xlu1 %v6735_v7, %s7218_s5 }
0x16fa   : > { %v3450_v50 = vpop.xlane.xlu0 %3449 }
0x16fb   : > { %v3454_v51 = vsub.f32 %v6777_v31, %v3450_v50 }
0x16fd   : > { %v3456_v53 = vmul.f32 1.442695, %v3454_v51 }
0x16fe   : > { %v3453_v54 = vpop.xlane.xlu0 %3452 }
0x16ff   : > { %5978 = vpow2.f32 %v3456_v53  ;;  %v3455_v55 = vsub.f32 %v6781_v34, %v3453_v54 }
0x1701   : > { %v3458_v57 = vmul.f32 1.442695, %v3455_v55 }
0x1702   : > { %v3572_v58 = vpop.xlane.xlu1 %3571 }
0x1703   : > { %5980 = vpow2.f32 %v3458_v57  ;;  %v3576_v59 = vsub.f32 %v6785_v39, %v3572_v58 }
0x1705   : > { %v3578_v0 = vmul.f32 1.442695, %v3576_v59 }
0x1706   : > { %v3575_v1 = vpop.xlane.xlu0 %3574 }
0x1707   : > { %5982 = vpow2.f32 %v3578_v0  ;;  %v3577_v2 = vsub.f32 %v6789_v48, %v3575_v1 }
0x1709   : > { %v3580_v3 = vmul.f32 1.442695, %v3577_v2 }
0x170a   : > { %v3695_v7 = vpop.xlane.xlu1 %3694 }
0x170b   : > { %5984 = vpow2.f32 %v3580_v3  ;;  %v3699_v31 = vsub.f32 %v6793_v52, %v3695_v7 }
0x170c   : > { %v6848_v6 = vpop.eup %5978 }
0x170d   : > { %v3701_v8 = vmul.f32 1.442695, %v3699_v31  ;;  %v3460_v34 = vsel %vm1723_vm2, %v6848_v6, 0.0 }
0x170e   : > { %v3698_v62 = vpop.xlane.xlu0 %3697  ;;  %3461 = vadd.xlane.f32.xlu1 %v3460_v34 }
0x170f   : > { %5986 = vpow2.f32 %v3701_v8  ;;  %v3700_v39 = vsub.f32 %v6797_v56, %v3698_v62 }
0x1710   : > { %v6853_v11 = vpop.eup %5980 }
0x1711   : > { %v3703_v9 = vmul.f32 1.442695, %v3700_v39  ;;  %v3463_v48 = vsel %vm1723_vm2, %v6853_v11, 0.0 }
0x1712   : > { %v3817_v10 = vpop.xlane.xlu1 %3816  ;;  %3464 = vadd.xlane.f32.xlu0 %v3463_v48 }
0x1713   : > { %5988 = vpow2.f32 %v3703_v9  ;;  %v3821_v52 = vsub.f32 %v6801_v61, %v3817_v10 }
0x1714   : > { %v6858_v16 = vpop.eup %5982 }
0x1715   : > { %v3823_v12 = vmul.f32 1.442695, %v3821_v52  ;;  %v3582_v13 = vsel %vm1723_vm2, %v6858_v16, 0.0 }
0x1716   : > { %v3820_v14 = vpop.xlane.xlu0 %3819  ;;  %3583 = vadd.xlane.f32.xlu1 %v3582_v13 }
0x1717   : > { %5990 = vpow2.f32 %v3823_v12  ;;  %v3822_v56 = vsub.f32 %v6805_v5, %v3820_v14  ;;  %v3265_v12 = vpop.f32.mrf.mxu0 }
0x1718   : > { %v6863_v17 = vpop.eup %5984 }
0x1719   : > { %v3825_v18 = vmul.f32 1.442695, %v3822_v56  ;;  %v3585_v40 = vsel %vm1723_vm2, %v6863_v17, 0.0  ;;  %v3267_v13 = vpop.f32.mrf.mxu0 }
0x171a   : > { %v3940_v20 = vpop.xlane.xlu1 %3939  ;;  %3586 = vadd.xlane.f32.xlu0 %v3585_v40 }
0x171b   : > { %5992 = vpow2.f32 %v3825_v18  ;;  %v3944_v61 = vsub.f32 %v6809_v60, %v3940_v20  ;;  %v3269_v14 = vpop.f32.mrf.mxu0 }
0x171c   : > { %v6868_v24 = vpop.eup %5986 }
0x171d   : > { %v3946_v25 = vmul.f32 1.442695, %v3944_v61  ;;  %v3705_v47 = vsel %vm1723_vm2, %v6868_v24, 0.0  ;;  %v3271_v56 = vpop.f32.mrf.mxu0 }
0x171e   : > { %v3943_v28 = vpop.xlane.xlu0 %3942  ;;  %3706 = vadd.xlane.f32.xlu1 %v3705_v47 }
0x171f   : > { %5994 = vpow2.f32 %v3946_v25  ;;  %v3945_v5 = vsub.f32 %v6813_v15, %v3943_v28 }
0x1720   : > { %v6873_v29 = vpop.eup %5988 }
0x1721   : > { %v3948_v30 = vmul.f32 1.442695, %v3945_v5  ;;  %v3708_v23 = vsel %vm1723_vm2, %v6873_v29, 0.0 }
0x1722   : > { %v4062_v32 = vpop.xlane.xlu1 %4061  ;;  %3709 = vadd.xlane.f32.xlu0 %v3708_v23 }
0x1723   : > { %5996 = vpow2.f32 %v3948_v30  ;;  %v4066_v60 = vsub.f32 %v6817_v22, %v4062_v32 }
0x1724   : > { %v6878_v35 = vpop.eup %5990 }
0x1725   : > { %v4068_v38 = vmul.f32 1.442695, %v4066_v60  ;;  %v3827_v42 = vsel %vm1723_vm2, %v6878_v35, 0.0 }
0x1726   : > { %v4065_v43 = vpop.xlane.xlu0 %4064  ;;  %3828 = vadd.xlane.f32.xlu1 %v3827_v42 }
0x1727   : > { %5998 = vpow2.f32 %v4068_v38  ;;  %v4067_v15 = vsub.f32 %v6821_v26, %v4065_v43 }
0x1728   : > { %v6883_v49 = vpop.eup %5992 }
0x1729   : > { %v4070_v50 = vmul.f32 1.442695, %v4067_v15  ;;  %v3830_v51 = vsel %vm1723_vm2, %v6883_v49, 0.0 }
0x172a   : > { %v4185_v53 = vpop.xlane.xlu1 %4184  ;;  %3831 = vadd.xlane.f32.xlu0 %v3830_v51 }
0x172b   : > { %6000 = vpow2.f32 %v4070_v50  ;;  %v4189_v22 = vsub.f32 %v6825_v27, %v4185_v53  ;;  %v3593_v27 = vpack.c.bf16 %v6773_v21, %v6732_v4 }
0x172c   : > { %v6888_v54 = vpop.eup %5994 }
0x172d   : > { %v4191_v55 = vmul.f32 1.442695, %v4189_v22  ;;  %v3950_v57 = vsel %vm1723_vm2, %v6888_v54, 0.0 }
0x172e   : > { %3951 = vadd.xlane.f32.xlu0 %v3950_v57  ;;  %v4188_v58 = vpop.xlane.xlu0 %4187  ;;  %v3339_v26 = vpop.xlane.xlu1 %3338 }
0x172f   : > { %6002 = vpow2.f32 %v4191_v55  ;;  %v4190_v21 = vsub.f32 %v6831_v37, %v4188_v58  ;;  %v3838_v37 = vpack.c.bf16 %v3269_v14, %v3265_v12 }
0x1730   : > { %v6892_v59 = vpop.eup %5996  ;;  %6004 = vrcp.f32 %v3339_v26 }
0x1731   : > { %v3953_v0 = vsel %vm1723_vm2, %v6892_v59, 0.0  ;;  %v4193_v10 = vmul.f32 1.442695, %v4190_v21 }
0x1732   : > { %3954 = vadd.xlane.f32.xlu0 %v3953_v0  ;;  %v3342_v1 = vpop.xlane.xlu0 %3341  ;;  %v3473_v52 = vpop.permute.xlu1 %3472 }
0x1733   : > { %6006 = vrcp.f32 %v3342_v1 }
0x1734   : > { %v6896_v2 = vpop.eup %5998  ;;  %6008 = vpow2.f32 %v4193_v10 }
0x1735   : > { %v4072_v3 = vsel %vm1723_vm2, %v6896_v2, 0.0 }
0x1736   : > { %4073 = vadd.xlane.f32.xlu0 %v4072_v3 }
0x1737   : > { %3717 = vrot.lane.b32.xlu1 %v3593_v27, %s7218_s5 }
0x1738   : > { %v6903_v7 = vpop.eup %6000 }
0x1739   : > { %v4075_v31 = vsel %vm1723_vm2, %v6903_v7, 0.0 }
0x173a   : > { %4076 = vadd.xlane.f32.xlu0 %v4075_v31 }
0x173c   : > { %v6907_v8 = vpop.eup %6002 }
0x173d   : > { %v4195_v34 = vsel %vm1723_vm2, %v6907_v8, 0.0  ;;  %v6005_v62 = vpop.eup %6004 }
0x173e   : > { %4196 = vadd.xlane.f32.xlu0 %v4195_v34  ;;  %v3345_v39 = vmul.f32 %v6005_v62, %v6829_v33  ;;  %v6919_v33 = vpack.c.bf16 %v3271_v56, %v3267_v13 }
0x1740   : > { %v6007_v4 = vpop.eup %6006 }
0x1741   : > { %v3346_v9 = vmul.f32 %v6007_v4, %v6837_v46  ;;  %v6921_v46 = vpop.eup %6008 }
0x1742   : > { %v4198_v18 = vsel %vm1723_vm2, %v6921_v46, 0.0 }
0x1743   : > { %v3347_v48 = vpack.c.bf16 %v3346_v9, %v3345_v39 }
0x1745   : > { %5531 = vmatmul.mubr.msk.bf16.vlgmr.msra.gmra.mxu0 %vm1723_vm2, %v3347_v48 }
0x1746   : > { %5541 = vmatpush3.bf16.msra.mxu0 %v3473_v52  ;;  %5542 = vmatprep.mubr.msk.bf16.mxu0 %vm6154_vm1, %v6153_v19 }
0x1747   : > { %5552 = vmatprep.subr.bf16.mxu0 %v6153_v19 }
0x1754   : > { %3962 = vrot.lane.b32.xlu0 %v3838_v37, %s7218_s5 }
0x1758   : > { %4207 = vrot.lane.b32.xlu0 %v6919_v33, %s7218_s5 }
0x175b   : > { %4199 = vadd.xlane.f32.xlu1 %v4198_v18 }
0x1797   : > { %v3462_v40 = vpop.xlane.xlu1 %3461 }
0x1798   : > { %6010 = vrcp.f32 %v3462_v40  ;;  %v5862_v40 = vld [vmem:[%s7219_s16 + $0x78] sm:$0xff]  }
0x1799   : > { %5396 = vmatprep.subr.bf16.mxu1 %v5862_v40  ;;  %v5891_v40 = vld [vmem:[%s7219_s16 + $0x88] sm:$0xff]  }
0x179b   : > { %v3465_v20 = vpop.xlane.xlu0 %3464 }
0x179c   : > { %6012 = vrcp.f32 %v3465_v20  ;;  %v5863_v20 = vld [vmem:[%s7219_s16 + $0x38] sm:$0xff]  }
0x179d   : > { %5397 = vmatpush3.bf16.msra.mxu1 %v5863_v20  ;;  %v5892_v20 = vld [vmem:[%s7219_s16 + $0xc0] sm:$0xff]  }
0x179f   : > { %v3584_v61 = vpop.xlane.xlu1 %3583 }
0x17a0   : > { %6014 = vrcp.f32 %v3584_v61  ;;  %v5864_v61 = vld [vmem:[%s7219_s16 + $0x70] sm:$0xff]  }
0x17a1   : > { %5398 = vmatprep.subr.bf16.mxu1 %v5864_v61  ;;  %v5893_v61 = vld [vmem:[%s7219_s16 + $0x80] sm:$0xff]  }
0x17a3   : > { %v3587_v25 = vpop.xlane.xlu0 %3586 }
0x17a4   : > { %6016 = vrcp.f32 %v3587_v25  ;;  %v5867_v25 = vld [vmem:[%s7219_s16 + $0x28] sm:$0xff]  }
0x17a5   : > { %v6011_v47 = vpop.eup %6010 }
0x17a6   : > { %v3468_v30 = vmul.f32 %v6011_v47, %v6848_v6  ;;  %v5868_v47 = vld [vmem:[%s7219_s16 + $0x60] sm:$0xff]  }
0x17a7   : > { %v3707_v28 = vpop.xlane.xlu1 %3706 }
0x17a8   : > { %6018 = vrcp.f32 %v3707_v28  ;;  %v5869_v28 = vld [vmem:[%s7219_s16 + $0x20] sm:$0xff]  }
0x17a9   : > { %v6013_v5 = vpop.eup %6012 }
0x17aa   : > { %v3469_v23 = vmul.f32 %v6013_v5, %v6853_v11  ;;  %v5870_v5 = vld [vmem:[%s7219_s16 + $0x58] sm:$0xff]  }
0x17ab   : > { %v3710_v32 = vpop.xlane.xlu0 %3709 }
0x17ac   : > { %6020 = vrcp.f32 %v3710_v32  ;;  %v3470_v60 = vpack.c.bf16 %v3469_v23, %v3468_v30  ;;  %v5871_v30 = vld [vmem:[%s7219_s16 + $0x18] sm:$0xff]   ;;  %v5872_v32 = vld [vmem:[%s7219_s16 + $0x50] sm:$0xff]  }
0x17ad   : > { %v6015_v38 = vpop.eup %6014 }
0x17ae   : > { %5543 = vmatmul.mubr.msk.bf16.vlgmr.msra.gmra.mxu0 %vm1723_vm2, %v3470_v60  ;;  %v3590_v15 = vmul.f32 %v6015_v38, %v6858_v16  ;;  %v5873_v38 = vld [vmem:[%s7219_s16 + $0x10] sm:$0xff]  }
0x17af   : > { %5553 = vmatpush3.bf16.msra.mxu0 %v3593_v27  ;;  %v3829_v42 = vpop.xlane.xlu1 %3828  ;;  %5554 = vmatprep.mubr.msk.bf16.mxu0 %vm6154_vm1, %v6153_v19 }
0x17b0   : > { %5564 = vmatprep.subr.bf16.mxu0 %v6153_v19  ;;  %6022 = vrcp.f32 %v3829_v42 }
0x17b1   : > { %v6017_v43 = vpop.eup %6016 }
0x17b2   : > { %v3591_v6 = vmul.f32 %v6017_v43, %v6863_v17  ;;  %v5874_v43 = vld [vmem:[%s7219_s16 + $0x48] sm:$0xff]  }
0x17b3   : > { %v3832_v11 = vpop.xlane.xlu0 %3831  ;;  %v3718_v51 = vpop.permute.xlu1 %3717 }
0x17b4   : > { %6024 = vrcp.f32 %v3832_v11  ;;  %v3592_v50 = vpack.c.bf16 %v3591_v6, %v3590_v15  ;;  %v5875_v11 = vld [vmem:[%s7219_s16 + $0x8] sm:$0xff]  }
0x17b5   : > { %v6019_v53 = vpop.eup %6018 }
0x17b6   : > { %5555 = vmatmul.mubr.msk.bf16.vlgmr.msra.gmra.mxu0 %vm1723_vm2, %v3592_v50  ;;  %v3713_v16 = vmul.f32 %v6019_v53, %v6868_v24  ;;  %v5876_v53 = vld [vmem:[%s7219_s16 + $0x40] sm:$0xff]  }
0x17b7   : > { %5565 = vmatpush3.bf16.msra.mxu0 %v3718_v51  ;;  %v3952_v22 = vpop.xlane.xlu0 %3951  ;;  %5566 = vmatprep.mubr.msk.bf16.mxu0 %vm6154_vm1, %v6153_v19 }
0x17b8   : > { %5576 = vmatprep.subr.bf16.mxu0 %v6153_v19  ;;  %6026 = vrcp.f32 %v3952_v22  ;;  %v5877_v22 = vld [vmem:[%s7219_s16] sm:$0xff]  }
0x17b9   : > { %v6021_v55 = vpop.eup %6020 }
0x17ba   : > { %v3714_v17 = vmul.f32 %v6021_v55, %v6873_v29 }
0x17bb   : > { %v3955_v57 = vpop.xlane.xlu0 %3954 }
0x17bc   : > { %6028 = vrcp.f32 %v3955_v57  ;;  %v3715_v58 = vpack.c.bf16 %v3714_v17, %v3713_v16 }
0x17bd   : > { %v6023_v26 = vpop.eup %6022 }
0x17be   : > { %5567 = vmatmul.mubr.msk.bf16.vlgmr.msra.gmra.mxu0 %vm1723_vm2, %v3715_v58  ;;  %v3835_v27 = vmul.f32 %v6023_v26, %v6878_v35 }
0x17bf   : > { %5577 = vmatpush3.bf16.msra.mxu0 %v3838_v37  ;;  %v4074_v0 = vpop.xlane.xlu0 %4073  ;;  %5578 = vmatprep.mubr.msk.bf16.mxu0 %vm6154_vm1, %v6153_v19 }
0x17c0   : > { %5588 = vmatprep.subr.bf16.mxu0 %v6153_v19  ;;  %6030 = vrcp.f32 %v4074_v0 }
0x17c1   : > { %v6025_v1 = vpop.eup %6024 }
0x17c2   : > { %v3836_v24 = vmul.f32 %v6025_v1, %v6883_v49 }
0x17c3   : > { %v4077_v29 = vpop.xlane.xlu0 %4076 }
0x17c4   : > { %6032 = vrcp.f32 %v4077_v29  ;;  %v3837_v3 = vpack.c.bf16 %v3836_v24, %v3835_v27 }
0x17c5   : > { %v6027_v31 = vpop.eup %6026 }
0x17c6   : > { %5579 = vmatmul.mubr.msk.bf16.vlgmr.msra.gmra.mxu0 %vm1723_vm2, %v3837_v3  ;;  %v3958_v4 = vmul.f32 %v6027_v31, %v6888_v54  ;;  %v5878_v3 = vld [vmem:[%s7219_s16 + $0xf8] sm:$0xff]  }
0x17c7   : > { %v4197_v34 = vpop.xlane.xlu0 %4196  ;;  %5590 = vmatprep.mubr.msk.bf16.mxu0 %vm6154_vm1, %v6153_v19  ;;  %v5879_v31 = vld [vmem:[%s7219_s16 + $0xb8] sm:$0xff]  }
0x17c8   : > { %6034 = vrcp.f32 %v4197_v34  ;;  %v5880_v34 = vld [vmem:[%s7219_s16 + $0xf0] sm:$0xff]  }
0x17c9   : > { %v6029_v62 = vpop.eup %6028 }
0x17ca   : > { %v3959_v21 = vmul.f32 %v6029_v62, %v6892_v59 }
0x17cb   : > { %v3963_v39 = vpop.permute.xlu0 %3962 }
0x17cc   : > { %5589 = vmatpush3.bf16.msra.mxu0 %v3963_v39  ;;  %v3960_v35 = vpack.c.bf16 %v3959_v21, %v3958_v4  ;;  %v5881_v4 = vld [vmem:[%s7219_s16 + $0xb0] sm:$0xff]   ;;  %v5882_v21 = vld [vmem:[%s7219_s16 + $0xe8] sm:$0xff]  }
0x17cd   : > { %5600 = vmatprep.subr.bf16.mxu0 %v6153_v19  ;;  %v6031_v49 = vpop.eup %6030 }
0x17ce   : > { %v4080_v54 = vmul.f32 %v6031_v49, %v6896_v2  ;;  %v5883_v49 = vld [vmem:[%s7219_s16 + $0xa8] sm:$0xff]  }
0x17cf   : > { %5591 = vmatmul.mubr.msk.bf16.vlgmr.msra.gmra.mxu0 %vm1723_vm2, %v3960_v35  ;;  %v4208_v10 = vpop.permute.xlu0 %4207 }
0x17d0   : > { %5601 = vmatpush3.bf16.msra.mxu0 %v6919_v33  ;;  %5602 = vmatprep.mubr.msk.bf16.mxu0 %vm6154_vm1, %v6153_v19 }
0x17d1   : > { %v6033_v9 = vpop.eup %6032  ;;  %5612 = vmatprep.subr.bf16.mxu0 %v6153_v19 }
0x17d2   : > { %v4081_v59 = vmul.f32 %v6033_v9, %v6903_v7 }
0x17d4   : > { %v4082_v48 = vpack.c.bf16 %v4081_v59, %v4080_v54  ;;  %v5884_v54 = vld [vmem:[%s7219_s16 + $0xe0] sm:$0xff]  }
0x17d5   : > { %v6035_v12 = vpop.eup %6034 }
0x17d6   : > { %v4203_v2 = vmul.f32 %v6035_v12, %v6907_v8  ;;  %v5865_v8 = vld [vmem:[%s7219_s16 + $0x30] sm:$0xff]  }
0x17d7   : > { %5603 = vmatmul.mubr.msk.bf16.vlgmr.msra.gmra.mxu0 %vm1723_vm2, %v4082_v48  ;;  %5399 = vmatpush3.bf16.msra.mxu1 %v5865_v8 }
0x17d8   : > { %5613 = vmatpush3.bf16.msra.mxu0 %v4208_v10  ;;  %5614 = vmatprep.mubr.msk.bf16.mxu0 %vm6154_vm1, %v6153_v19  ;;  %v5885_v10 = vld [vmem:[%s7219_s16 + $0xa0] sm:$0xff]  }
0x17d9   : > { %5418 = vmatprep.subr.bf16.mxu0 %v5878_v3 }
0x17e4   : > { %v4200_v52 = vpop.xlane.xlu1 %4199 }
0x17e5   : > { %6036 = vrcp.f32 %v4200_v52  ;;  %v5886_v52 = vld [vmem:[%s7219_s16 + $0xd8] sm:$0xff]  }
0x17f2   : > { %v6037_v13 = vpop.eup %6036 }
0x17f3   : > { %v4204_v7 = vmul.f32 %v6037_v13, %v6921_v46  ;;  %v5866_v46 = vld [vmem:[%s7219_s16 + $0x68] sm:$0xff]  }
0x17f4   : > { %5400 = vmatprep.subr.bf16.mxu1 %v5866_v46 }
0x17f5   : > { %v4205_v14 = vpack.c.bf16 %v4204_v7, %v4203_v2  ;;  %5401 = vmatpush3.bf16.msra.mxu1 %v5867_v25  ;;  %v5887_v2 = vld [vmem:[%s7219_s16 + $0x98] sm:$0xff]   ;;  %v5888_v7 = vld [vmem:[%s7219_s16 + $0xd0] sm:$0xff]  }
0x17f6   : > { %5402 = vmatprep.subr.bf16.mxu1 %v5868_v47 }
0x17f7   : > { %5615 = vmatmul.mubr.msk.bf16.vlgmr.msra.gmra.mxu0 %vm1723_vm2, %v4205_v14 }
0x17f8   : > { %5419 = vmatpush3.bf16.msra.mxu0 %v5879_v31 }
0x17f9   : > { %5403 = vmatpush3.bf16.msra.mxu1 %v5869_v28  ;;  %5420 = vmatprep.subr.bf16.mxu0 %v5880_v34 }
0x17fa   : > { %5404 = vmatprep.subr.bf16.mxu1 %v5870_v5 }
0x17fc   : > { %5421 = vmatpush3.bf16.msra.mxu0 %v5881_v4 }
0x17fd   : > { %5405 = vmatpush3.bf16.msra.mxu1 %v5871_v30  ;;  %5422 = vmatprep.subr.bf16.mxu0 %v5882_v21 }
0x17fe   : > { %5406 = vmatprep.subr.bf16.mxu1 %v5872_v32 }
0x1800   : > { %5423 = vmatpush3.bf16.msra.mxu0 %v5883_v49 }
0x1801   : > { %5407 = vmatpush3.bf16.msra.mxu1 %v5873_v38  ;;  %5424 = vmatprep.subr.bf16.mxu0 %v5884_v54 }
0x1802   : > { %5408 = vmatprep.subr.bf16.mxu1 %v5874_v43 }
0x1804   : > { %5425 = vmatpush3.bf16.msra.mxu0 %v5885_v10 }
0x1805   : > { %v6966_v37 = vpop.f32.mrf.mxu0  ;;  %5409 = vmatpush3.bf16.msra.mxu1 %v5875_v11  ;;  %5426 = vmatprep.subr.bf16.mxu0 %v5886_v52 }
0x1806   : > { %5410 = vmatprep.subr.bf16.mxu1 %v5876_v53 }
0x1807   : > { %v5532_v56 = vpop.f32.mrf.mxu0 }
0x1808   : > { %5427 = vmatpush3.bf16.msra.mxu0 %v5887_v2  ;;  %v5889_v56 = vld [vmem:[%s7219_s16 + $0x90] sm:$0xff]  }
0x1809   : > { %v6968_v33 = vpop.f32.mrf.mxu0  ;;  %5411 = vmatpush3.bf16.msra.mxu1 %v5877_v22  ;;  %5428 = vmatprep.subr.bf16.mxu0 %v5888_v7 }
0x180a   : > { %5618 = vmatprep.subr.bf16.mxu1 %v6153_v19 }
0x180b   : > { %v5533_v18 = vpop.f32.mrf.mxu0 }
0x180c   : > { %v5890_v18 = vld [vmem:[%s7219_s16 + $0xc8] sm:$0xff]   ;;  %5429 = vmatpush3.bf16.msra.mxu0 %v5889_v56 }
0x180d   : > { %5430 = vmatprep.subr.bf16.mxu0 %v5890_v18 }
0x1810   : > { %5431 = vmatpush3.bf16.msra.mxu0 %v5891_v40 }
0x1811   : > { %5432 = vmatprep.subr.bf16.mxu0 %v5892_v20 }
0x1814   : > { %5433 = vmatpush3.bf16.msra.mxu0 %v5893_v61 }
0x1815   : > { %5626 = vmatprep.subr.bf16.mxu0 %v6153_v19 }
0x186e   : > { %v3512_v23 = vpop.f32.mrf.mxu0 }
0x1870   : > { %v5544_v60 = vpop.f32.mrf.mxu0 }
0x1872   : > { %v3515_v42 = vpop.f32.mrf.mxu0 }
0x1873   : > { %v5753_v15 = vpack.i.bf16 %v3515_v42, %v3512_v23 }
0x1874   : > { %v5545_v6 = vpop.f32.mrf.mxu0 }
0x1875   : > { %5754 = vrot.lane.b32.xlu0 %v5753_v15, %s7218_s5 }
0x1876   : > { %v6985_v50 = vpop.f32.mrf.mxu0 }
0x1878   : > { %v5556_v51 = vpop.f32.mrf.mxu0 }
0x187a   : > { %v6989_v55 = vpop.f32.mrf.mxu0 }
0x187c   : > { %v5557_v16 = vpop.f32.mrf.mxu0 }
0x187e   : > { %v3757_v17 = vpop.f32.mrf.mxu0 }
0x1880   : > { %v5568_v57 = vpop.f32.mrf.mxu0 }
0x1882   : > { %v3760_v58 = vpop.f32.mrf.mxu0 }
0x1883   : > { %v5758_v26 = vpack.i.bf16 %v3760_v58, %v3757_v17 }
0x1884   : > { %v5569_v0 = vpop.f32.mrf.mxu0 }
0x1885   : > { %5759 = vrot.lane.b32.xlu0 %v5758_v26, %s7218_s5 }
0x1886   : > { %v6993_v1 = vpop.f32.mrf.mxu0 }
0x1888   : > { %v5580_v27 = vpop.f32.mrf.mxu0 }
0x188a   : > { %v6995_v24 = vpop.f32.mrf.mxu0 }
0x188c   : > { %v5581_v29 = vpop.f32.mrf.mxu0 }
0x188f   : > { %v4002_v62 = vpop.f32.mrf.mxu0 }
0x1891   : > { %v5592_v39 = vpop.f32.mrf.mxu0 }
0x1893   : > { %v4005_v35 = vpop.f32.mrf.mxu0 }
0x1894   : > { %v5768_v9 = vpack.i.bf16 %v4005_v35, %v4002_v62 }
0x1895   : > { %v5593_v59 = vpop.f32.mrf.mxu0 }
0x1896   : > { %5769 = vrot.lane.b32.xlu0 %v5768_v9, %s7218_s5 }
0x1897   : > { %v4121_v48 = vpop.f32.mrf.mxu0 }
0x1899   : > { %v5604_v12 = vpop.f32.mrf.mxu0 }
0x189b   : > { %v4124_v13 = vpop.f32.mrf.mxu0 }
0x189d   : > { %v5605_v14 = vpop.f32.mrf.mxu0 }
0x18b7   : > { %v4247_v8 = vpop.f32.mrf.mxu0 }
0x18b9   : > { %v5616_v46 = vpop.f32.mrf.mxu0 }
0x18bb   : > { %v4250_v25 = vpop.f32.mrf.mxu0 }
0x18bc   : > { %v5763_v47 = vpack.i.bf16 %v4250_v25, %v4247_v8 }
0x18bd   : > { %v5617_v28 = vpop.f32.mrf.mxu0 }
0x18be   : > { %5764 = vrot.lane.b32.xlu1 %v5763_v47, %s7218_s5  ;;  %s7220_s5 = sld [smem:[#allocation24_spill]] }
0x18c4   : > { %v5252_v34 = vld [vmem:[%s7220_s5] ss:$0 sm:$0xff]  ;;  %s7221_s5 = sld [smem:[#allocation27_spill]] }
0x18ca   : > { %v5894_v8 = vld [vmem:[%s7221_s5 + $0x8] sm:$0xff]   ;;  %v5895_v46 = vld [vmem:[%s7221_s5] sm:$0xff]   ;;  %s7230_s5 = sld [smem:[#allocation6_spill]] }
0x18e7   : > { %v5755_v5 = vpop.permute.xlu0 %5754 }
0x18e8   : > { %v5757_v30 = vunpack.i.h.bf16 %v5755_v5  ;;  %v5756_v23 = vunpack.i.l.bf16 %v5755_v5 }
0x18ea   : > { %v4287_v42 = vsel %vm2273_vm4, %v6968_v33, %v5757_v30  ;;  %v4286_v43 = vsel %vm2273_vm4, %v6966_v37, %v5756_v23 }
0x18eb   : > { %v4294_v51 = vpack.c.bf16 %v4287_v42, %v4286_v43 }
0x18f7   : > { %v5760_v32 = vpop.permute.xlu0 %5759 }
0x18f8   : > { %v5762_v60 = vunpack.i.h.bf16 %v5760_v32  ;;  %v5761_v38 = vunpack.i.l.bf16 %v5760_v32 }
0x18fa   : > { %v4288_v15 = vsel %vm2273_vm4, %v6985_v50, %v5761_v38  ;;  %v4289_v6 = vsel %vm2273_vm4, %v6989_v55, %v5762_v60  ;;  %v5285_v38 = vld [vmem:[%s7222_s3] ss:$0 sm:$0xff]  ;;  %s7226_s3 = sld [smem:[#allocation30_spill]] }
0x18fb   : > { %v4295_v11 = vpack.c.bf16 %v4289_v6, %v4288_v15  ;;  %v5286_v6 = vld [vmem:[%s7223_s6] ss:$0 sm:$0xff]  ;;  %s7225_s6 = sld [smem:[#allocation28_spill]] }
0x18fd   : > { %4528 = vmatprep.mubr.bf16.mxu1 %v4295_v11 }
0x18fe   : > { %4529 = vmatmul.mubr.bf16.vlgmr.msra.gmra.mxu1 %v4294_v51 }
0x18ff   : > { %5622 = vmatprep.mubr.msk.bf16.mxu1 %vm6154_vm1, %v6153_v19  ;;  %5619 = vmatpush3.bf16.msra.mxu1 %v5894_v8 }
0x1900   : > { %5620 = vmatprep.subr.bf16.mxu1 %v6153_v19 }
0x1903   : > { %5621 = vmatpush3.bf16.msra.mxu1 %v5895_v46 }
0x1908   : > { %v5770_v53 = vpop.permute.xlu0 %5769 }
0x1909   : > { %v5772_v22 = vunpack.i.h.bf16 %v5770_v53  ;;  %v5771_v16 = vunpack.i.l.bf16 %v5770_v53 }
0x190b   : > { %v4291_v50 = vsel %vm2273_vm4, %v6995_v24, %v5772_v22  ;;  %v4290_v55 = vsel %vm2273_vm4, %v6993_v1, %v5771_v16  ;;  %v5896_v16 = vld [vmem:[%s7224_s8 + $0x38] sm:$0xff]  }
0x190c   : > { %v4296_v0 = vpack.c.bf16 %v4291_v50, %v4290_v55  ;;  %v5901_v50 = vld [vmem:[%s7224_s8 + $0x10] sm:$0xff]   ;;  %v5902_v55 = vld [vmem:[%s7224_s8 + $0x8] sm:$0xff]  }
0x1930   : > { %v5765_v33 = vpop.permute.xlu1 %5764 }
0x1931   : > { %v5767_v17 = vunpack.i.h.bf16 %v5765_v33  ;;  %v5766_v37 = vunpack.i.l.bf16 %v5765_v33  ;;  %v5897_v33 = vld [vmem:[%s7224_s8 + $0x30] sm:$0xff]  }
0x1933   : > { %v4292_v57 = vsel %vm2273_vm4, %v4121_v48, %v5766_v37  ;;  %v4293_v58 = vsel %vm2273_vm4, %v4124_v13, %v5767_v17  ;;  %v5898_v17 = vld [vmem:[%s7224_s8 + $0x28] sm:$0xff]   ;;  %v5899_v37 = vld [vmem:[%s7224_s8 + $0x20] sm:$0xff]  }
0x1934   : > { %v4297_v26 = vpack.c.bf16 %v4293_v58, %v4292_v57  ;;  %v5903_v57 = vld [vmem:[%s7224_s8] sm:$0xff]  }
0x1935   : > { %v5287_v58 = vld [vmem:[%s7225_s6] ss:$0 sm:$0xff]  ;;  %s7227_s6 = sld [smem:[#allocation31_spill]] }
0x1936   : > { %4569 = vmatprep.mubr.bf16.mxu0 %v4297_v26 }
0x1937   : > { %4570 = vmatmul.mubr.bf16.vlgmr.msra.gmra.mxu0 %v4296_v0 }
0x1938   : > { %5642 = vmatprep.mubr.msk.bf16.mxu0 %vm6154_vm1, %v6153_v19  ;;  %5627 = vmatpush3.bf16.msra.mxu0 %v5896_v16 }
0x1939   : > { %5628 = vmatprep.subr.bf16.mxu0 %v6153_v19 }
0x193c   : > { %5629 = vmatpush3.bf16.msra.mxu0 %v5897_v33 }
0x193d   : > { %5630 = vmatprep.subr.bf16.mxu0 %v6153_v19 }
0x1940   : > { %5631 = vmatpush3.bf16.msra.mxu0 %v5898_v17 }
0x1941   : > { %5632 = vmatprep.subr.bf16.mxu0 %v6153_v19 }
0x1944   : > { %5633 = vmatpush3.bf16.msra.mxu0 %v5899_v37 }
0x1945   : > { %5634 = vmatprep.subr.bf16.mxu0 %v6153_v19 }
0x19be   : > { %v5412_v27 = vpop.f32.mrf.mxu1 }
0x19c0   : > { %v5413_v29 = vpop.f32.mrf.mxu1 }
0x19c1   : > { %v5414_v31 = vadd.f32 %v5413_v29, %v5412_v27 }
0x19c2   : > { %v5415_v3 = vpop.f32.mrf.mxu1 }
0x19c3   : > { %v4531_v1 = vadd.f32 %v5414_v31, %v5252_v34 }
0x19c4   : > { %v5416_v24 = vpop.f32.mrf.mxu1 }
0x19c5   : > { %v5417_v21 = vadd.f32 %v5416_v24, %v5415_v3 }
0x19c7   : > { %v4534_v54 = vadd.f32 %v5417_v21, %v5252_v34 }
0x19f7   : > { %v5434_v62 = vpop.f32.mrf.mxu0 }
0x19f9   : > { %v5435_v4 = vpop.f32.mrf.mxu0 }
0x19fa   : > { %v5436_v39 = vadd.f32 %v5435_v4, %v5434_v62 }
0x19fb   : > { %v5437_v35 = vpop.f32.mrf.mxu0 }
0x19fc   : > { %v4572_v49 = vadd.f32 %v5436_v39, %v4531_v1 }
0x19fd   : > { %v5438_v9 = vpop.f32.mrf.mxu0 }
0x19fe   : > { %v7036_v59 = vadd.f32 %v4572_v49, %v6664_v36  ;;  %v5439_v48 = vadd.f32 %v5438_v9, %v5437_v35 }
0x1a00   : > { %v4575_v10 = vadd.f32 %v5439_v48, %v4534_v54  ;;  %v4580_v52 = vsel %vm2237_vm3, %v7036_v59, 0.0 }
0x1a01   : > { %4581 = vadd.xlane.f32.xlu0 %v4580_v52 }
0x1a02   : > { %v7041_v12 = vadd.f32 %v4575_v10, %v6668_v41 }
0x1a04   : > { %v4583_v13 = vsel %vm2237_vm3, %v7041_v12, 0.0 }
0x1a05   : > { %4584 = vadd.xlane.f32.xlu1 %v4583_v13 }
0x1a8a   : > { %v4582_v2 = vpop.xlane.xlu0 %4581 }
0x1a8b   : > { %v4586_v7 = vmul.f32 0.03125, %v4582_v2 }
0x1a8d   : > { %v4588_v36 = vsub.f32 %v7036_v59, %v4586_v7 }
0x1a8e   : > { %v4585_v14 = vpop.xlane.xlu1 %4584 }
0x1a8f   : > { %v4587_v56 = vmul.f32 0.03125, %v4585_v14  ;;  %v4590_v18 = vmul.f32 %v4588_v36, %v4588_v36  ;;  %v5299_v14 = vld [vmem:[%s7226_s3] ss:$0 sm:$0xff]  ;;  %s7228_s3 = sld [smem:[#allocation32_spill]] }
0x1a91   : > { %v4589_v40 = vsub.f32 %v7041_v12, %v4587_v56  ;;  %v4592_v20 = vsel %vm2237_vm3, %v4590_v18, 0.0 }
0x1a92   : > { %4593 = vadd.xlane.f32.xlu0 %v4592_v20 }
0x1a93   : > { %v4591_v61 = vmul.f32 %v4589_v40, %v4589_v40 }
0x1a95   : > { %v4595_v41 = vsel %vm2237_vm3, %v4591_v61, 0.0 }
0x1a96   : > { %4596 = vadd.xlane.f32.xlu0 %v4595_v41 }
0x1b1b   : > { %v4594_v25 = vpop.xlane.xlu0 %4593 }
0x1b1c   : > { %v4598_v47 = vmul.f32 0.03125, %v4594_v25 }
0x1b1e   : > { %v4600_v28 = vadd.f32 1e-05, %v4598_v47 }
0x1b1f   : > { %v4597_v5 = vpop.xlane.xlu0 %4596 }
0x1b20   : > { %6038 = vrsqrt.f32 %v4600_v28  ;;  %v4599_v30 = vmul.f32 0.03125, %v4597_v5 }
0x1b22   : > { %v4601_v23 = vadd.f32 1e-05, %v4599_v30 }
0x1b24   : > { %6040 = vrsqrt.f32 %v4601_v23 }
0x1b2d   : > { %v6039_v32 = vpop.eup %6038 }
0x1b2e   : > { %v4604_v60 = vmul.f32 %v6039_v32, %v4588_v36 }
0x1b30   : > { %v4612_v15 = vmul.f32 %v5285_v38, %v4604_v60 }
0x1b31   : > { %v6041_v42 = vpop.eup %6040 }
0x1b32   : > { %v4605_v43 = vmul.f32 %v6041_v42, %v4589_v40  ;;  %v4620_v51 = vadd.f32 %v5286_v6, %v4612_v15  ;;  %v5906_v15 = vld [vmem:[%s7195_s4 + $0x14] ss:$8 sps:$4 sm:$0xff]  }
0x1b33   : > { %4899 = vmatprep.subr.bf16.mxu1 %v5906_v15 }
0x1b34   : > { %v4613_v11 = vmul.f32 %v5285_v38, %v4605_v43  ;;  %v5904_v43 = vld [vmem:[%s7195_s4 + $0x10] ss:$8 sps:$4 sm:$0xff]  }
0x1b36   : > { %v4621_v53 = vadd.f32 %v5286_v6, %v4613_v11  ;;  %v5909_v6 = vld [vmem:[%s7195_s4 + $0x4] ss:$8 sps:$4 sm:$0xff]   ;;  %v5907_v11 = vld [vmem:[%s7195_s4] ss:$8 sps:$4 sm:$0xff]   ;;  %s1223_s4 = sand.u32 1, %s6102_s1  }
0x1b37   : > { %s5124_s13 = sshll.u32 %s1223_s4, 5 }
0x1b38   : > { %v4622_v22 = vpack.c.bf16 %v4621_v53, %v4620_v51 }
0x1b3a   : > { %5623 = vmatmul.mubr.msk.bf16.vlgmr.msra.gmra.mxu1 %vm2237_vm3, %v4622_v22 }
0x1b3b   : > { %4919 = vmatprep.mubr.bf16.mxu1 %v6152_v63  ;;  %v5900_v63 = vld [vmem:[%s7224_s8 + $0x18] sm:$0xff]   ;;  %4900 = vmatpush1.bf16.msra.mxu1 %v5904_v43  ;;  %s7231_s8 = sshll.u32 %s7238_s26, 4 }
0x1b3c   : > { %5635 = vmatpush3.bf16.msra.mxu0 %v5900_v63  ;;  %4901 = vmatprep.subr.bf16.mxu1 %v5909_v6  ;;  %s1244_s10 = scalar_lea.vmem %s7230_s5, %s7231_s8  ;;  %s5316_s8 = sshll.u32 %s6395_s0, 9 }
0x1b3d   : > { %5636 = vmatprep.subr.bf16.mxu0 %v6153_v19  ;;  %s7099_s26 = scalar_lea.hbm %s6367_s20, %s5316_s8 }
0x1b3f   : > { %4902 = vmatpush1.bf16.msra.mxu1 %v5907_v11 }
0x1b40   : > { %5637 = vmatpush3.bf16.msra.mxu0 %v5901_v50  ;;  %v5300_v50 = vld [vmem:[%s7227_s6] ss:$0 sm:$0xff]  ;;  %s1225_s6 = scalar_lea.vmem [#allocation2], %s5124_s13 }
0x1b41   : > { %5638 = vmatprep.subr.bf16.mxu0 %v6153_v19  ;;  %s4979_s13 = sshll.u32 %s1225_s6, 4  ;;  %s7095_s13 = int_to_ptr.vmem [resolvable:$true] %s4979_s13 }
0x1b42   : > { %s6050_s5 = scalar_lea.vmem %s7095_s13, 512 }
0x1b43   : > { %p6051_p11 = scmp.ne.s32.totalorder %s7095_s13, %s6050_s5 }
0x1b44   : > { %5639 = vmatpush3.bf16.msra.mxu0 %v5902_v55 }
0x1b45   : > { %5640 = vmatprep.subr.bf16.mxu0 %v6153_v19  ;;  %p6052_p12 = pnand %p6051_p11, %p6412_p5 }
0x1b47   : > { %p6053_p13 = pneg %p6052_p12 }
0x1b48   : > { %5641 = vmatpush3.bf16.msra.mxu0 %v5903_v57 }
0x1bfa   : > { %v4678_v26 = vpop.f32.mrf.mxu1 }
0x1bfb   : > { %v4679_v0 = vadd.f32 %v5287_v58, %v4678_v26  ;;  %v5301_v26 = vld [vmem:[%s7228_s3] ss:$0 sm:$0xff]  ;;  %s6162_s3 = smov [#allocation2]  }
0x1bfc   : > { %v5624_v27 = vpop.f32.mrf.mxu1 }
0x1bfd   : > { %v4685_v29 = vmul.f32 %v4679_v0, %v4679_v0 }
0x1bfe   : > { %v4681_v3 = vpop.f32.mrf.mxu1 }
0x1bff   : > { %v4687_v31 = vmul.f32 %v4685_v29, %v4679_v0  ;;  %v4682_v34 = vadd.f32 %v5287_v58, %v4681_v3 }
0x1c00   : > { %v5625_v24 = vpop.f32.mrf.mxu1 }
0x1c01   : > { %v4689_v62 = vmul.f32 0.044715, %v4687_v31  ;;  %v4686_v4 = vmul.f32 %v4682_v34, %v4682_v34  ;;  %v4852_v31 = vld [vmem:[%s7229_s9] sm:$0x3]  ;;  %s6054_s9 = sshll.u32 %s6162_s3, 4  ;;  %s6055_s9 = int_to_ptr.vmem [resolvable:$false] %s6054_s9 }
0x1c02   : > { %v4861_v24 = vrot.slane %v4852_v31, %v6447_v45  ;;  %p6057_p0 = scmp.lt.s32.totalorder %s7095_s13, %s6055_s9 }
0x1c03   : > { %v4691_v1 = vadd.f32 %v4689_v62, %v4679_v0  ;;  %v4688_v21 = vmul.f32 %v4686_v4, %v4682_v34  ;;  %v4934_v4 = vld [vmem:[%s1244_s10] sm:$0xff] }
0x1c05   : > { %v4693_v39 = vmul.f32 0.7978846, %v4691_v1  ;;  %v4690_v35 = vmul.f32 0.044715, %v4688_v21 }
0x1c07   : > { %6042 = vtanh.f32 %v4693_v39  ;;  %v4692_v19 = vadd.f32 %v4690_v35, %v4682_v34  ;;  %v4935_v39 = vld [vmem:[%s1244_s10 + $0x8] sm:$0xff] }
0x1c09   : > { %v4694_v49 = vmul.f32 0.7978846, %v4692_v19 }
0x1c0b   : > { %6044 = vtanh.f32 %v4694_v49 }
0x1c14   : > { %v6043_v9 = vpop.eup %6042 }
0x1c15   : > { %v4697_v54 = vadd.f32 1.0, %v6043_v9  ;;  %v4936_v9 = vld [vmem:[%s1244_s10 + $0x10] sm:$0xff] }
0x1c17   : > { %v4699_v10 = vmul.f32 0.5, %v4697_v54 }
0x1c18   : > { %v6045_v48 = vpop.eup %6044 }
0x1c19   : > { %v4698_v52 = vadd.f32 1.0, %v6045_v48  ;;  %v4701_v2 = vmul.f32 %v4699_v10, %v4679_v0 }
0x1c1b   : > { %v4700_v13 = vmul.f32 0.5, %v4698_v52  ;;  %v4937_v52 = vld [vmem:[%s1244_s10 + $0x18] sm:$0xff]  ;;  %s7103_s10 = scalar_lea.sflag [#allocation3], %s1223_s4 }
0x1c1d   : > { %v4702_v7 = vmul.f32 %v4700_v13, %v4682_v34  ;;  %v4857_v34 = vrot.slane %v4852_v31, %v6445_v44 }
0x1c1f   : > { %v4703_v36 = vpack.c.bf16 %v4702_v7, %v4701_v2 }
0x1c21   : > { %5643 = vmatmul.mubr.bf16.vlgmr.msra.gmra.mxu0 %v4703_v36 }
0x1ce1   : > { %v4786_v56 = vpop.f32.mrf.mxu0 }
0x1ce2   : > { %v4793_v18 = vadd.f32 %v4786_v56, %v7036_v59 }
0x1ce3   : > { %v5644_v40 = vpop.f32.mrf.mxu0 }
0x1ce4   : > { %v4801_v20 = vadd.f32 %v5299_v14, %v4793_v18 }
0x1ce5   : > { %v4789_v61 = vpop.f32.mrf.mxu0 }
0x1ce6   : > { %v4794_v41 = vadd.f32 %v4789_v61, %v7041_v12  ;;  %v4805_v8 = vsel %vm2237_vm3, %v4801_v20, 0.0 }
0x1ce7   : > { %4806 = vadd.xlane.f32.xlu0 %v4805_v8  ;;  %v5645_v46 = vpop.f32.mrf.mxu0 }
0x1ce8   : > { %v4802_v25 = vadd.f32 %v5299_v14, %v4794_v41 }
0x1cea   : > { %v4808_v47 = vsel %vm2237_vm3, %v4802_v25, 0.0 }
0x1ceb   : > { %4809 = vadd.xlane.f32.xlu0 %v4808_v47 }
0x1d70   : > { %v4807_v28 = vpop.xlane.xlu0 %4806 }
0x1d71   : > { %v4811_v5 = vmul.f32 0.03125, %v4807_v28 }
0x1d73   : > { %v4813_v59 = vsub.f32 %v4801_v20, %v4811_v5 }
0x1d74   : > { %v4810_v30 = vpop.xlane.xlu0 %4809 }
0x1d75   : > { %v4812_v23 = vmul.f32 0.03125, %v4810_v30  ;;  %v4815_v32 = vmul.f32 %v4813_v59, %v4813_v59 }
0x1d77   : > { %v4814_v60 = vsub.f32 %v4802_v25, %v4812_v23  ;;  %v4817_v12 = vsel %vm2237_vm3, %v4815_v32, 0.0 }
0x1d78   : > { %4818 = vadd.xlane.f32.xlu0 %v4817_v12 }
0x1d79   : > { %v4816_v38 = vmul.f32 %v4814_v60, %v4814_v60 }
0x1d7b   : > { %v4820_v42 = vsel %vm2237_vm3, %v4816_v38, 0.0 }
0x1d7c   : > { %4821 = vadd.xlane.f32.xlu1 %v4820_v42 }
0x1e01   : > { %v4819_v51 = vpop.xlane.xlu0 %4818 }
0x1e02   : > { %v4823_v53 = vmul.f32 0.03125, %v4819_v51 }
0x1e04   : > { %v4825_v22 = vadd.f32 1e-05, %v4823_v53 }
0x1e05   : > { %v4822_v16 = vpop.xlane.xlu1 %4821 }
0x1e06   : > { %6046 = vrsqrt.f32 %v4825_v22  ;;  %v4824_v33 = vmul.f32 0.03125, %v4822_v16 }
0x1e08   : > { %v4826_v17 = vadd.f32 1e-05, %v4824_v33 }
0x1e0a   : > { %6048 = vrsqrt.f32 %v4826_v17 }
0x1e13   : > { %v6047_v37 = vpop.eup %6046 }
0x1e14   : > { %v4829_v63 = vmul.f32 %v6047_v37, %v4813_v59 }
0x1e16   : > { %v4837_v58 = vmul.f32 %v5300_v50, %v4829_v63 }
0x1e17   : > { %v6049_v55 = vpop.eup %6048 }
0x1e18   : > { %v4830_v57 = vmul.f32 %v6049_v55, %v4814_v60  ;;  %v4845_v27 = vadd.f32 %v5301_v26, %v4837_v58 }
0x1e1a   : > { %v4838_v0 = vmul.f32 %v5300_v50, %v4830_v57 }
0x1e1c   : > { %v4846_v29 = vadd.f32 %v5301_v26, %v4838_v0 }
0x1e1e   : > { %v4851_v3 = vpack.c.bf16 %v4846_v29, %v4845_v27 }
0x1e20   : > { %5306 = vmatmul.mubr.msk.bf16.vlgmr.msra.gmra.mxu1 %vm2237_vm3, %v4851_v3 }
0x1ee0   : > { %v4921_v62 = vpop.f32.mrf.mxu1 }
0x1ee1   : > { %v4922_v1 = vadd.f32 %v4921_v62, %v4857_v34 }
0x1ee2   : > { %v4923_v21 = vpop.f32.mrf.mxu1 }
0x1ee3   : > { %4930 = vst [vmem:[%s1225_s6] sm:$0xff] %v4922_v1  ;;  %v4938_v35 = vsub.f32 %v4922_v1, %v4934_v4  ;;  %v4924_v19 = vadd.f32 %v4923_v21, %v4861_v24 }
0x1ee4   : > { %v4925_v49 = vpop.f32.mrf.mxu1 }
0x1ee5   : > { %4931 = vst [vmem:[%s1225_s6 + $0x8] sm:$0xff] %v4924_v19  ;;  %v4939_v54 = vsub.f32 %v4924_v19, %v4935_v39  ;;  %v4926_v48 = vadd.f32 %v4925_v49, %v4857_v34  ;;  %v4942_v44 = vmul.f32 %v4938_v35, %v4938_v35 }
0x1ee6   : > { %v4927_v10 = vpop.f32.mrf.mxu1 }
0x1ee7   : > { %v4943_v45 = vmul.f32 %v4939_v54, %v4939_v54  ;;  %4932 = vst [vmem:[%s1225_s6 + $0x10] sm:$0xff] %v4926_v48  ;;  %v4940_v13 = vsub.f32 %v4926_v48, %v4936_v9  ;;  %v4928_v2 = vadd.f32 %v4927_v10, %v4861_v24 }
0x1ee9   : > { %v4946_v7 = vadd.f32 %v4943_v45, %v4942_v44  ;;  %v4944_v36 = vmul.f32 %v4940_v13, %v4940_v13  ;;  %4933 = vst [vmem:[%s1225_s6 + $0x18] sm:$0xff] %v4928_v2  ;;  %v4941_v14 = vsub.f32 %v4928_v2, %v4937_v52  ;;  %s6056_s6 = scalar_lea.vmem %s6055_s9, 1024 }
0x1eea   : > { %p6058_p1 = scmp.lt.s32.totalorder %s6056_s6, %s6050_s5 }
0x1eeb   : > { %v4947_v56 = vadd.f32 %v4946_v7, %v4944_v36  ;;  %v4945_v18 = vmul.f32 %v4941_v14, %v4941_v14 }
0x1eec   : > { %p6059_p2 = por %p6058_p1, %p6057_p0 }
0x1eed   : > { %v4948_v40 = vadd.f32 %v4947_v56, %v4945_v18 }
0x1eee   : > { %p6060_p3 = pnand %p6059_p2, %p6053_p13 }
0x1eef   : > { %4949 = vadd.xlane.f32.xlu0 %v4948_v40 }
0x1ef0   : > { %6063 = shalt.err (!%p6060_p3)
}
0x1ef1   : > { %s6064_s4 = scalar_lea.hbm %s7099_s26, 512  ;;  %s6068_s8 = scalar_lea.hbm %s6367_s20, 1024 }
0x1ef2   : > { %p6065_p4 = scmp.ne.s32.totalorder %s7099_s26, %s6064_s4  ;;  %p6069_p9 = scmp.lt.s32.totalorder %s7099_s26, %s6367_s20 }
0x1ef3   : > { %p6070_p10 = scmp.lt.s32.totalorder %s6068_s8, %s6064_s4 }
0x1ef4   : > { %p6066_p7 = pnand %p6065_p4, %p6412_p5 }
0x1ef5   : > { %p6071_p11 = por %p6070_p10, %p6069_p9 }
0x1ef6   : > { %p6067_p8 = pneg %p6066_p7 }
0x1ef8   : > { %p6072_p12 = pnand %p6071_p11, %p6067_p8 }
0x1efa   : > { %6075 = shalt.err (!%p6072_p12)
}
0x1efb   : > { %s6163_s9 = smov 256   ;;  %s7232_s5 = smov 16  }
0x1efc   : > { %5648 = dma.vmem_to_hbm [thread:$0]  (%p6412_p5), %s7095_s13, 512, %s7099_s26, %s7103_s10, %s6163_s9, %s6163_s9, %s7232_s5  }
0x1efd   : > { %p1247_p13 = scmp.lt.s32.totalorder %s6395_s0, 1 }
0x1eff   : > { %s7240_s0 = smov (!%p1247_p13, %s6395_s0), 1 }
0x1f00   : > { %s5131_s3 = sshll.u32 %s7240_s0, 3 }
0x1f01   : > { %s1250_s22 = scalar_lea.vmem %s6372_s12, %s5131_s3 }
0x1f78   : > { %v4950_v20 = vpop.xlane.xlu0 %4949 }
0x1f79   : > { %v4951_v61 = vrot.slane %v4950_v20, 4 }
0x1f7b   : > { %v4952_v41 = vadd.f32 %v4951_v61, %v4950_v20 }
0x1f7d   : > { %v4953_v8 = vrot.slane %v4952_v41, 2 }
0x1f7f   : > { %v4954_v46 = vadd.f32 %v4953_v8, %v4952_v41 }
0x1f81   : > { %v4955_v25 = vrot.slane %v4954_v46, 1 }
0x1f83   : > { %v4956_v47 = vadd.f32 %v4955_v25, %v4954_v46 }
0x1f85   : > { %5646 = vpush %v4956_v47 }
0x1fb6   : > { %s5647_s6 = spop %5646 }
0x1fb7   : > { %v4958_v28 = vstv %s5647_s6 }
0x1fb8   : > { %4959 = vst [vmem:[%s1250_s22] sm:$0xff] %v4958_v28 }
0x1fb9 PF: > { %p5654_p5 = scmp.ge.s32.totalorder %s6110_s7, 2  ;;  %s4997_s13 = sand.u32 1, %s6098_s28  }
0x1fba   : > { %s4998_s26 = scalar_lea.sflag [#allocation3], %s4997_s13 }
0x1fbb   : > { %p5651_p0 = pnand %p5654_p5, %p6416_p6 }
0x1fbd   : > { %p5652_p1 = pneg %p5651_p0 }
0x1fbf   : > { %6093 = dma.done.wait (%p5652_p1), %s4998_s26, 512  }
0x1fc0   : > { %6095 = vsyncadd (%p5652_p1), %s4998_s26, 4294966784  ;;  %p92_p2 = scmp.ge.s32.totalorder %s6399_s11, 4   ;;  %s7233_s28 = smov %s6102_s1 }
0x1fc1   : > { %s7234_s1 = smov %s6106_s2  ;;  %s7235_s2 = smov %s6410_s18 }
0x1fc2   : > { %s7236_s7 = smov %s6399_s11  ;;  %94 = sbr.rel (!%p92_p2) target bundleno = 81 (0x51), region = 266 }
0x1fc7   :  { %5010 = vsyncpa [#allocation3], 1 }
0x1fc8   :  { %5012 = vsyncpa [#allocation3 + $0x1], 1 }

</bundles_post_ra>
